<compile_context>
chip_gen: v5e
topology: v5e:2x2
jax: 0.10.0
libtpu: 0.0.40
codegen_flags: <defaults>
</compile_context>

<pallas_src>
import jax
import jax.numpy as jnp
from jax.experimental import pallas as pl
from jax.experimental.pallas import tpu as pltpu

FEAT = 1920  # DenseNet final feature count; classifier in_features per module


def backbone_base_dense(x_nchw, wb, bb, wc, bc, *, tile_hw=256, max_tb=4):
    """x_nchw: [B, C, H, W] f32; wb:[C,1920]; bb:[1920]; wc:[1920,NC]; bc:[NC].

    Returns [B, NC] f32 logits (body stand-in -> avgpool(1) -> flatten -> Linear).
    """
    B, C, H, W = x_nchw.shape
    HW = H * W
    NC = wc.shape[1]
    assert wb.shape == (C, FEAT) and wc.shape[0] == FEAT

    # --- static tiling --------------------------------------------------------
    # TB: images per grid step.  Divisor of B (zero batch padding / wasted work)
    # and <= ceil(B/2) so grid[0] >= 2 whenever B >= 2 (both v7x TensorCores busy).
    tb_cap = max(1, min(int(max_tb), (B + 1) // 2))
    TB = max(d for d in range(1, tb_cap + 1) if B % d == 0)
    n_bt = B // TB

    # TILE_HW: spatial positions per step (lane dim of the streamed x tile).
    if HW <= tile_hw:
        TILE_HW = HW                                   # full extent -> always legal
    else:
        TILE_HW = max(128, (int(tile_hw) // 128) * 128)
    n_hw = pl.cdiv(HW, TILE_HW)
    needs_mask = (HW % TILE_HW) != 0                   # mask ragged last HW tile

    NC_PAD = ((NC + 127) // 128) * 128                 # lane-dense classifier output
    inv_hw = 1.0 / float(HW)

    # --- host-side prep (no extra HBM passes over the activation x) -----------
    x3 = x_nchw.reshape(B, C, HW)                      # contiguous reshape: free
    wb_p = wb.astype(jnp.bfloat16)                                     # (C, FEAT)
    bb_p = bb.reshape(1, FEAT).astype(jnp.float32)                     # (1, FEAT)
    wc_p = jnp.pad(wc.astype(jnp.float32) * inv_hw,                    # fold 1/HW
                   ((0, 0), (0, NC_PAD - NC))).astype(jnp.bfloat16)    # (FEAT, NC_PAD)
    bc_p = jnp.pad(bc.astype(jnp.float32),
                   ((0, NC_PAD - NC),)).reshape(1, NC_PAD)             # (1, NC_PAD)

    grid = (n_bt, n_hw)   # (batch tiles [parallel], HW tiles [arbitrary / reduce])

    def kernel(x_ref, wb_ref, bb_ref, wc_ref, bc_ref, o_ref, acc_ref):
        # x_ref : (TB, C, TILE_HW) f32   streamed, lane-dense (lanes = TILE_HW)
        # wb_ref: (C, FEAT) bf16         resident body weight
        # bb_ref: (1, FEAT) f32          resident body bias
        # wc_ref: (FEAT, NC_PAD) bf16    resident classifier weight (1/HW folded in)
        # bc_ref: (1, NC_PAD) f32        resident classifier bias
        # o_ref : (1, TB, NC_PAD) f32    logits for this batch tile
        # acc_ref:(TB, FEAT) f32         running pooled sum (VMEM scratch)
        k = pl.program_id(1)

        @pl.when(k == 0)
        def _():
            acc_ref[...] = jnp.zeros_like(acc_ref)

        bias = bb_ref[...]                               # hoisted out of b-unroll
        if needs_mask:
            row = k * TILE_HW + jax.lax.broadcasted_iota(
                jnp.int32, (TILE_HW, 1), 0)
            valid = row < HW                             # computed once per step

        # ---- body stand-in: 1x1 conv + ReLU, partial spatial sum (MXU) -------
        partials = []
        for b in range(TB):                              # tiny static unroll (TB<=4)
            xb = x_ref[b].astype(jnp.bfloat16)           # (C, TILE_HW)
            h = jax.lax.dot_general(                     # contract C on the MXU
                xb, wb_ref[...], (((0,), (0,)), ((), ())),
                preferred_element_type=jnp.float32)      # (TILE_HW, FEAT) f32
            h = jnp.maximum(h + bias, 0.0)
            if needs_mask:
                h = jnp.where(valid, h, 0.0)
            partials.append(jnp.sum(h, axis=0, keepdims=True))   # (1, FEAT)
        partial = partials[0] if TB == 1 else jnp.concatenate(partials, axis=0)
        acc_ref[...] += partial                          # one dense (TB, FEAT) store

        # ---- last HW step: classifier (mean already folded into wc) ----------
        @pl.when(k == pl.num_programs(1) - 1)
        def _():
            logits = jnp.dot(acc_ref[...].astype(jnp.bfloat16), wc_ref[...],
                             preferred_element_type=jnp.float32) + bc_ref[...]
            o_ref[0] = logits.astype(o_ref.dtype)        # lane-dense store

    out = pl.pallas_call(
        kernel,
        out_shape=jax.ShapeDtypeStruct((n_bt, TB, NC_PAD), jnp.float32),
        grid_spec=pltpu.PrefetchScalarGridSpec(
            num_scalar_prefetch=0,
            grid=grid,
            in_specs=[
                pl.BlockSpec((TB, C, TILE_HW), lambda bi, k: (bi, 0, k)),
                pl.BlockSpec((C, FEAT), lambda bi, k: (0, 0)),
                pl.BlockSpec((1, FEAT), lambda bi, k: (0, 0)),
                pl.BlockSpec((FEAT, NC_PAD), lambda bi, k: (0, 0)),
                pl.BlockSpec((1, NC_PAD), lambda bi, k: (0, 0)),
            ],
            out_specs=pl.BlockSpec((1, TB, NC_PAD), lambda bi, k: (bi, 0, 0)),
            scratch_shapes=[pltpu.VMEM((TB, FEAT), jnp.float32)],
        ),
        compiler_params=pltpu.CompilerParams(
            dimension_semantics=("parallel", "arbitrary")),
    )(x3, wb_p, bb_p, wc_p, bc_p)

    return out.reshape(B, NC_PAD)[:, :NC]


def _reference(x_nchw, wb, bb, wc, bc):
    B, C, H, W = x_nchw.shape
    x = jnp.transpose(x_nchw, (0, 2, 3, 1)).reshape(B, H * W, C)
    h = jnp.maximum(jnp.einsum('bnc,cf->bnf', x, wb) + bb, 0.0)
    pooled = jnp.mean(h, axis=1)                  # AdaptiveAvgPool2d(1) + flatten
    return pooled @ wc + bc                       # Linear(1920, NC)


if __name__ == "__main__":
    key = jax.random.PRNGKey(0)
    B, C_IN, H, W = 2, 4, 16, 16
    NUM_CHANNELS = 16

    k1, k2, k3, k4, k5 = jax.random.split(key, 5)
    x = jax.random.normal(k1, (B, C_IN, H, W), dtype=jnp.float32)
    wb = jax.random.normal(k2, (C_IN, FEAT), dtype=jnp.float32) * 0.05
    bb = jax.random.normal(k3, (FEAT,), dtype=jnp.float32) * 0.05
    wc = jax.random.normal(k4, (FEAT, NUM_CHANNELS), dtype=jnp.float32) * 0.02
    bc = jax.random.normal(k5, (NUM_CHANNELS,), dtype=jnp.float32) * 0.02

    out = jax.block_until_ready(backbone_base_dense(x, wb, bb, wc, bc))
    ref = _reference(x, wb, bb, wc, bc)

    assert out.shape == (B, NUM_CHANNELS)
    # bf16 MXU inputs (body + classifier) -> tolerance loosened vs pure f32
    assert jnp.allclose(out, ref, atol=1e-2, rtol=1e-2), float(
        jnp.max(jnp.abs(out - ref)))
    print("KERNEL_OK")
</pallas_src>

<mosaic_0001>
module attributes {stable_mosaic.version = 11 : i64} {
  func.func @kernel(%arg0: i32, %arg1: i32, %arg2: memref<1x4x256xf32, #tpu.memory_space<vmem>>, %arg3: memref<4x1920xbf16, #tpu.memory_space<vmem>>, %arg4: memref<1x1920xf32, #tpu.memory_space<vmem>>, %arg5: memref<1920x128xbf16, #tpu.memory_space<vmem>>, %arg6: memref<1x128xf32, #tpu.memory_space<vmem>>, %arg7: memref<1x1x128xf32, #tpu.memory_space<vmem>>, %arg8: memref<1x1920xf32, #tpu.memory_space<vmem>>) attributes {dimension_semantics = [#tpu.dimension_semantics<parallel>, #tpu.dimension_semantics<arbitrary>], iteration_bounds = array<i64: 2, 1>, scalar_prefetch = 0 : i64, scratch_operands = 1 : i64, tpu.core_type = #tpu.core_type<tc>, window_params = [{transform_indices = @transform_0, window_bounds = array<i64: 1, 4, 256>}, {pipeline_mode = #tpu.pipeline_mode<synchronous>, transform_indices = @transform_1, window_bounds = array<i64: 4, 1920>}, {pipeline_mode = #tpu.pipeline_mode<synchronous>, transform_indices = @transform_2, window_bounds = array<i64: 1, 1920>}, {pipeline_mode = #tpu.pipeline_mode<synchronous>, transform_indices = @transform_3, window_bounds = array<i64: 1920, 128>}, {pipeline_mode = #tpu.pipeline_mode<synchronous>, transform_indices = @transform_4, window_bounds = array<i64: 1, 128>}, {transform_indices = @transform_5, window_bounds = array<i64: 1, 1, 128>}]} {
    %c0_i32 = arith.constant 0 : i32
    %0 = arith.cmpi eq, %arg1, %c0_i32 : i32
    %1 = arith.extui %0 : i1 to i32
    %c0_i32_0 = arith.constant 0 : i32
    %2 = arith.cmpi ne, %1, %c0_i32_0 : i32
    scf.if %2 {
      %cst_15 = arith.constant 0.000000e+00 : f32
      %21 = vector.broadcast %cst_15 : f32 to vector<1x1920xf32>
      %c0_16 = arith.constant 0 : index
      %c0_17 = arith.constant 0 : index
      %22 = vector.load %arg8[%c0_16, %c0_17] : memref<1x1920xf32, #tpu.memory_space<vmem>>, vector<1x1920xf32>
      tpu.vector_store %arg8[%c0_16, %c0_17], %21 {strides = array<i32>} : memref<1x1920xf32, #tpu.memory_space<vmem>>, vector<1x1920xf32>,
    } else {
    }
    %c0 = arith.constant 0 : index
    %c0_1 = arith.constant 0 : index
    %3 = vector.load %arg4[%c0, %c0_1] : memref<1x1920xf32, #tpu.memory_space<vmem>>, vector<1x1920xf32>
    %c0_2 = arith.constant 0 : index
    %c0_3 = arith.constant 0 : index
    %c0_4 = arith.constant 0 : index
    %4 = vector.load %arg2[%c0_2, %c0_3, %c0_4] : memref<1x4x256xf32, #tpu.memory_space<vmem>>, vector<1x4x256xf32>
    %5 = vector.shape_cast %4 : vector<1x4x256xf32> to vector<4x256xf32>
    %6 = arith.truncf %5 : vector<4x256xf32> to vector<4x256xbf16>
    %c0_5 = arith.constant 0 : index
    %c0_6 = arith.constant 0 : index
    %7 = vector.load %arg3[%c0_5, %c0_6] : memref<4x1920xbf16, #tpu.memory_space<vmem>>, vector<4x1920xbf16>
    %cst = arith.constant dense<0.000000e+00> : vector<256x1920xf32>
    %8 = tpu.matmul %6, %7, %cst {dimension_numbers = #tpu.dot_dimension_numbers<[0], [0], [1], [1], [0, 1, 1, 1], [], []>} : vector<4x256xbf16>, vector<4x1920xbf16>, vector<256x1920xf32> -> vector<256x1920xf32>
    %9 = vector.broadcast %3 : vector<1x1920xf32> to vector<256x1920xf32>
    %10 = arith.addf %8, %9 : vector<256x1920xf32>
    %cst_7 = arith.constant 0.000000e+00 : f32
    %11 = vector.broadcast %cst_7 : f32 to vector<256x1920xf32>
    %12 = arith.maximumf %10, %11 : vector<256x1920xf32>
    %cst_8 = arith.constant dense<0.000000e+00> : vector<1920xf32>
    %13 = vector.multi_reduction <add>, %12, %cst_8 [0] : vector<256x1920xf32> to vector<1920xf32>
    %14 = vector.shape_cast %13 : vector<1920xf32> to vector<1x1920xf32>
    %c0_9 = arith.constant 0 : index
    %c0_10 = arith.constant 0 : index
    %15 = vector.load %arg8[%c0_9, %c0_10] : memref<1x1920xf32, #tpu.memory_space<vmem>>, vector<1x1920xf32>
    %16 = arith.addf %15, %14 : vector<1x1920xf32>
    %c0_11 = arith.constant 0 : index
    %c0_12 = arith.constant 0 : index
    %17 = vector.load %arg8[%c0_11, %c0_12] : memref<1x1920xf32, #tpu.memory_space<vmem>>, vector<1x1920xf32>
    tpu.vector_store %arg8[%c0_11, %c0_12], %16 {strides = array<i32>} : memref<1x1920xf32, #tpu.memory_space<vmem>>, vector<1x1920xf32>,
    %c0_i32_13 = arith.constant 0 : i32
    %18 = arith.cmpi eq, %arg1, %c0_i32_13 : i32
    %19 = arith.extui %18 : i1 to i32
    %c0_i32_14 = arith.constant 0 : i32
    %20 = arith.cmpi ne, %19, %c0_i32_14 : i32
    scf.if %20 {
      %c0_15 = arith.constant 0 : index
      %c0_16 = arith.constant 0 : index
      %21 = vector.load %arg8[%c0_15, %c0_16] : memref<1x1920xf32, #tpu.memory_space<vmem>>, vector<1x1920xf32>
      %22 = arith.truncf %21 : vector<1x1920xf32> to vector<1x1920xbf16>
      %c0_17 = arith.constant 0 : index
      %c0_18 = arith.constant 0 : index
      %23 = vector.load %arg5[%c0_17, %c0_18] : memref<1920x128xbf16, #tpu.memory_space<vmem>>, vector<1920x128xbf16>
      %cst_19 = arith.constant dense<0.000000e+00> : vector<1x128xf32>
      %24 = tpu.matmul %22, %23, %cst_19 {dimension_numbers = #tpu.dot_dimension_numbers<[1], [0], [0], [1], [0, 0, 1, 1], [], []>} : vector<1x1920xbf16>, vector<1920x128xbf16>, vector<1x128xf32> -> vector<1x128xf32>
      %c0_20 = arith.constant 0 : index
      %c0_21 = arith.constant 0 : index
      %25 = vector.load %arg6[%c0_20, %c0_21] : memref<1x128xf32, #tpu.memory_space<vmem>>, vector<1x128xf32>
      %26 = arith.addf %24, %25 : vector<1x128xf32>
      %c0_22 = arith.constant 0 : index
      %c0_23 = arith.constant 0 : index
      %c0_24 = arith.constant 0 : index
      %27 = vector.load %arg7[%c0_22, %c0_23, %c0_24] : memref<1x1x128xf32, #tpu.memory_space<vmem>>, vector<1x1x128xf32>
      %28 = vector.shape_cast %27 : vector<1x1x128xf32> to vector<1x128xf32>
      %29 = vector.shape_cast %26 : vector<1x128xf32> to vector<1x1x128xf32>
      tpu.vector_store %arg7[%c0_22, %c0_23, %c0_24], %29 {strides = array<i32>} : memref<1x1x128xf32, #tpu.memory_space<vmem>>, vector<1x1x128xf32>,
    } else {
    }
    return
  }
  func.func @transform_0(%arg0: i32, %arg1: i32) -> (i32, i32, i32) {
    %c0_i32 = arith.constant 0 : i32
    %c0_i32_0 = arith.constant 0 : i32
    return %arg0, %c0_i32, %arg1 : i32, i32, i32
  }
  func.func @transform_1(%arg0: i32, %arg1: i32) -> (i32, i32) {
    %c0_i32 = arith.constant 0 : i32
    %c0_i32_0 = arith.constant 0 : i32
    %c0_i32_1 = arith.constant 0 : i32
    return %c0_i32, %c0_i32_0 : i32, i32
  }
  func.func @transform_2(%arg0: i32, %arg1: i32) -> (i32, i32) {
    %c0_i32 = arith.constant 0 : i32
    %c0_i32_0 = arith.constant 0 : i32
    %c0_i32_1 = arith.constant 0 : i32
    return %c0_i32, %c0_i32_0 : i32, i32
  }
  func.func @transform_3(%arg0: i32, %arg1: i32) -> (i32, i32) {
    %c0_i32 = arith.constant 0 : i32
    %c0_i32_0 = arith.constant 0 : i32
    %c0_i32_1 = arith.constant 0 : i32
    return %c0_i32, %c0_i32_0 : i32, i32
  }
  func.func @transform_4(%arg0: i32, %arg1: i32) -> (i32, i32) {
    %c0_i32 = arith.constant 0 : i32
    %c0_i32_0 = arith.constant 0 : i32
    %c0_i32_1 = arith.constant 0 : i32
    return %c0_i32, %c0_i32_0 : i32, i32
  }
  func.func @transform_5(%arg0: i32, %arg1: i32) -> (i32, i32, i32) {
    %c0_i32 = arith.constant 0 : i32
    %c0_i32_0 = arith.constant 0 : i32
    %c0_i32_1 = arith.constant 0 : i32
    return %arg0, %c0_i32, %c0_i32_0 : i32, i32, i32
  }
}

</mosaic_0001>

<bundles_post_ra>
// kernel: tpu_custom_call.1
= control target key start
LH: loop header
LB: loop body
LE: loop exit
PB: predicated region body
PF: predicated region fallthrough
CT: control target
= control target key end

     0   :  { %s6781_s0 = inlined_call_operand.hbm [shape: f32[2,4,256], index: 0, kind: input, shape index: {}]   ;;  %s6782_s1 = inlined_call_operand.hbm [shape: bf16[4,1920], index: 1, kind: input, shape index: {}]   ;;  %s6783_s2 = inlined_call_operand.hbm [shape: f32[1,1920], index: 2, kind: input, shape index: {}]   ;;  %s6784_s3 = inlined_call_operand.hbm [shape: bf16[1920,128], index: 3, kind: input, shape index: {}]   ;;  %s6785_s4 = inlined_call_operand.vmem [shape: f32[1,128], index: 4, kind: input, shape index: {}]   ;;  %s6786_s5 = inlined_call_operand.hbm [shape: f32[2,1,128], index: 5, kind: output, shape index: {}]  }
   0x1   :  { %6791 = sst [smem:[#allocation18_spill]] %s6782_s1 }
   0x2   :  { %10 = vsyncpa [#allocation4], 0 }
   0x3   :  { %12 = vsyncpa [#allocation4 + $0x1], 0 }
   0x4   :  { %13 = vsyncpa [#allocation7], 0 }
   0x5   :  { %14 = vsyncpa [#allocation10], 0 }
   0x6   :  { %15 = vsyncpa [#allocation5], 0 }
   0x7   :  { %17 = vsyncpa [#allocation5 + $0x1], 0  ;;  %s5454_s18 = smov 0   ;;  %s5456_s19 = smov 0  }
   0x8   :  { %s5458_s20 = smov 0   ;;  %s5460_s21 = smov 0  }
   0x9   :  { %s5462_s22 = smov 0   ;;  %s5464_s23 = smov 0  }
   0xa LB: > { %s4248_s24 = sadd.s32 4294967295, %s5416_s23   ;;  %s4249_s25 = sadd.s32 4294967294, %s5416_s23   ;;  %s5416_s23 = sphi %s5464_s23, %s23_s23   ;;  %s5412_s22 = sphi %s5462_s22, %s6811_s22   ;;  %s5408_s21 = sphi %s5460_s21, %s6810_s21   ;;  %s5404_s20 = sphi %s5458_s20, %s6809_s20   ;;  %s5400_s19 = sphi %s5456_s19, %s6808_s19   ;;  %s5396_s18 = sphi %s5454_s18, %s6807_s18  }
   0xb   : > { %p57_p0 = scmp.ne.s32.totalorder %s5400_s19, %s5396_s18  ;;  %p5488_p1 = scmp.eq.s32.totalorder %s4248_s24, 0 }
   0xc   : > { %p5492_p2 = scmp.eq.s32.totalorder %s4248_s24, 1  ;;  %p171_p3 = scmp.eq.s32.totalorder %s4249_s25, 1 }
   0xd   : > { %p5498_p4 = por %p5488_p1, %p57_p0  ;;  %p4250_p5 = scmp.ge.s32.totalorder %s5416_s23, 1 }
   0xe   : > { %p5503_p6 = por %p171_p3, %p57_p0  ;;  %p178_p7 = scmp.lt.s32.totalorder %s5416_s23, 3 }
   0xf   : > { %s6796_s1 = sld [smem:[#allocation18_spill]]  ;;  %p4254_p9 = scmp.ge.s32.totalorder %s5416_s23, 2 }
  0x10   : > { %p5511_p8 = pnand %p4250_p5, %p178_p7  ;;  %s5418_s9 = smov [#allocation6]  }
  0x11   : > { %s192_s10 = sshll.u32 %s5418_s9, 4  ;;  %s202_s13 = sshll.u32 %s6783_s2, 4  ;;  %s193_s10 = int_to_ptr.vmem [resolvable:$true] %s192_s10  ;;  %s203_s13 = int_to_ptr.hbm [resolvable:$true] %s202_s13 }
  0x12   : > { %p5122_p10 = pneg %p5511_p8  ;;  %s213_s17 = sshll.u32 %s6784_s3, 4  ;;  %s214_s17 = int_to_ptr.hbm [resolvable:$true] %s213_s17 }
  0x13   : > { %s5419_s24 = smov [#allocation8]   ;;  %s5420_s30 = smov [#allocation9]  }
  0x14   : > { %p5523_p11 = pnand %p5122_p10, %p5488_p1  ;;  %s204_s25 = sshll.u32 %s5419_s24, 4  ;;  %s205_s25 = int_to_ptr.vmem [resolvable:$true] %s204_s25 }
  0x15   : > { %s190_s7 = sshll.u32 %s6796_s1, 4  ;;  %s215_s6 = sshll.u32 %s5420_s30, 4  ;;  %s191_s7 = int_to_ptr.hbm [resolvable:$true] %s190_s7  ;;  %s216_s6 = int_to_ptr.vmem [resolvable:$true] %s215_s6 }
  0x16   : > { %5125 = dma.hbm_to_vmem [thread:$0]  (!%p5523_p11), %s191_s7, 480, %s193_s10, [#allocation7]  }
  0x17   : > { %5128 = dma.hbm_to_vmem [thread:$0]  (!%p5523_p11), %s203_s13, 240, %s205_s25, [#allocation7]  }
  0x18   : > { %s5421_s9 = smov 64   ;;  %s5422_s11 = smov 4  }
  0x19   : > { %5131 = dma.hbm_to_vmem [thread:$0]  (!%p5523_p11), %s214_s17, 15360, %s216_s6, [#allocation10], %s5421_s9, %s5421_s9, %s5422_s11  }
  0x1a   : > { %s44_s12 = sadd.s32 1, %s5404_s20  ;;  %s35_s15 = sadd.s32 1, %s5412_s22 }
  0x1b   : > { %p51_p12 = scmp.ne.s32.totalorder %s5404_s20, %s5400_s19  ;;  %p37_p13 = scmp.ge.s32.totalorder %s35_s15, 2 }
  0x1c   : > { %p52_p0 = scmp.eq.s32.totalorder %s5416_s23, 0  ;;  %p5143_p5 = scmp.lt.s32.totalorder %s5416_s23, 2 }
  0x1d   : > { %p5543_p3 = por %p5492_p2, %p51_p12  ;;  %s6813_s15 = smov (%p37_p13, %s35_s15), 0 }
  0x1e   : > { %p5550_p7 = por %p52_p0, %p51_p12  ;;  %s232_s13 = sand.u32 1, %s5404_s20  }
  0x1f   : > { %s39_s14 = ssub.s32 %s5412_s22, %s6813_s15  ;;  %s4255_s16 = sshll.u32 %s232_s13, 3 }
  0x20   : > { %p42_p10 = scmp.eq.s32.totalorder %s39_s14, 0  ;;  %s4985_s17 = sshll.u32 %s5412_s22, 3 }
  0x21   : > { %s243_s30 = scalar_lea.hbm %s6781_s0, %s4985_s17  ;;  %s236_s6 = scalar_lea.vmem [#allocation3], %s4255_s16 }
  0x22   : > { %s5559_s27 = scalar_select %p42_p10, %s5404_s20, %s44_s12  }
  0x23   : > { %s247_s9 = sshll.u32 %s236_s6, 4  ;;  %s245_s11 = sshll.u32 %s243_s30, 4  ;;  %s248_s9 = int_to_ptr.vmem [resolvable:$true] %s247_s9  ;;  %s246_s11 = int_to_ptr.hbm [resolvable:$true] %s245_s11 }
  0x24   : > { %p5133_p2 = pnand %p5143_p5, %p5550_p7  ;;  %s233_s1 = scalar_lea.sflag [#allocation4], %s232_s13 }
  0x25   : > { %256 = sbr.rel (%p5511_p8) target bundleno = 1576 (0x628), region = 40 }
  0x26   : > { %5135 = dma.hbm_to_vmem [thread:$0]  (!%p5133_p2), %s246_s11, 128, %s248_s9, %s233_s1  }
  0x2a   : > { %s5571_s12 = sand.u32 1, %s5400_s19  }
  0x2b   : > { %s4259_s14 = sshll.u32 %s5571_s12, 3  ;;  %s259_s16 = scalar_lea.sflag [#allocation4], %s5571_s12 }
  0x2c   : > { %s262_s17 = scalar_lea.vmem [#allocation3], %s4259_s14 }
  0x2d   : > { %5379 = dma.done.wait (%p5498_p4), %s259_s16, 128  }
  0x2e   : > { %5381 = vsyncadd (%p5498_p4), %s259_s16, 4294967168 }
  0x2f   : > { %5383 = dma.done.wait (%p5488_p1), [#allocation7], 720  }
  0x30   : > { %5385 = vsyncadd (%p5488_p1), [#allocation7], 4294966576 }
  0x31   : > { %5387 = dma.done.wait (%p5488_p1), [#allocation10], 15360  }
  0x32   : > { %5389 = vsyncadd (%p5488_p1), [#allocation10], 4294951936  ;;  %v318_v0 = vld [vmem:[%s262_s17] sm:$0xff]  ;;  %v327_v1 = vld [vmem:[#allocation6] sm:$0xff]  ;;  %vm460_vm0 = vcmask 1041408   ;;  %vm411_vm1 = vcmask 31744   ;;  %s4138_s10 = scalar_lea.hbm %s6786_s5, %s5408_s21 }
  0x33   : > { %320 = vst [vmem:[#allocation1] ss:$2 sm:$0xff] %v318_v0  ;;  %v329_v6 = vld [vmem:[#allocation6 + $0x10] sm:$0xff]  ;;  %v328_v15 = vld [vmem:[#allocation6 + $0x8] sm:$0xff]  ;;  %v316_v37 = vld [vmem:[#allocation8] sm:$0xff]  ;;  %vm2891_vm2 = vcmask 1040384  }
  0x34   : > { %391 = vst [vmem:[#allocation1 + $0x20] ss:$4 sm:$0xff] %v328_v15  ;;  %v5688_v40 = vperm.slane %v316_v37, 0  ;;  %v5690_v41 = vperm.slane %v316_v37, 1  ;;  %v5704_v50 = vperm.slane %v316_v37, 2  ;;  %v5706_v51 = vperm.slane %v316_v37, 3 }
  0x35   : > { %vm2893_vm3 = vcmask 1042434   ;;  %vm2896_vm4 = vcmask 1044484   ;;  %vm2898_vm5 = vcmask 1046534   ;;  %vm2900_vm6 = vcmask 1045508   ;;  %s303_s13 = scalar_lea.vmem [#allocation11], %s5571_s12  ;;  %s4142_s25 = sshll.u32 %s4138_s10, 4  ;;  %s4143_s25 = int_to_ptr.hbm [resolvable:$true] %s4142_s25 }
  0x36   : > { %vm2902_vm7 = vcmask 1043456   ;;  %s4140_s24 = sshll.u32 %s303_s13, 4  ;;  %s4130_s30 = scalar_lea.sflag [#allocation5], %s5571_s12  ;;  %s4141_s24 = int_to_ptr.vmem [resolvable:$true] %s4140_s24 }
  0x37   : > { %s5340_s6 = sshra.s32 %s4143_s25, 4  ;;  %s5346_s14 = scalar_lea.hbm %s6786_s5, 2  ;;  %s5341_s6 = int_to_ptr.hbm [resolvable:$true] %s5340_s6 }
  0x38   : > { %s5342_s9 = scalar_lea.hbm %s5341_s6, 1  ;;  %p5347_p11 = scmp.lt.s32.totalorder %s5341_s6, %s6786_s5 }
  0x39   : > { %p5343_p1 = scmp.ne.s32.totalorder %s5341_s6, %s5342_s9  ;;  %p5348_p12 = scmp.lt.s32.totalorder %s5346_s14, %s5342_s9 }
  0x3a   : > { %v321_v2 = vld.sshfl [vmem:[#allocation1] sm:$0xff pattern:$0x75316420]  ;;  %v322_v3 = vld.sshfl [vmem:[#allocation1 + $0x8] sm:$0xff pattern:$0x75316420] }
  0x3b   : > { %v325_v4 = vpack.c.bf16 %v321_v2, %v321_v2  ;;  %v326_v5 = vpack.c.bf16 %v322_v3, %v322_v3  ;;  %388 = vst [vmem:[#allocation1] ss:$4 sm:$0xff] %v327_v1  ;;  %v398_v16 = vld.sshfl [vmem:[#allocation1 + $0x30] sm:$0xff pattern:$0x73625140]  ;;  %p5344_p4 = pnand %p5343_p1, %p5543_p3  ;;  %p5349_p13 = por %p5348_p12, %p5347_p11 }
  0x3c   : > { %v396_v17 = vld.sshfl [vmem:[#allocation1 + $0x20] sm:$0xff pattern:$0x73625140]  ;;  %v473_v18 = vsel %vm460_vm0, %v398_v16, 0 }
  0x3d   : > { %363 = vxpose.binary.xlu0.c.b16.start.end [1/2] (short) %v326_v5, %v325_v4, 128  ;;  %v469_v19 = vsel %vm460_vm0, %v396_v17, 0  ;;  %v397_v20 = vld.sshfl [vmem:[#allocation1 + $0x28] sm:$0xff pattern:$0x73625140]  ;;  %p5345_p8 = pneg %p5344_p4 }
  0x3e   : > { %v471_v21 = vsel %vm460_vm0, %v397_v20, 0 }
  0x3f   : > { %p5350_p0 = pnand %p5349_p13, %p5345_p8 }
  0x42   : > { %v392_v7 = vld.sshfl [vmem:[#allocation1] sm:$0xff pattern:$0x73625140]  ;;  %v393_v8 = vld.sshfl [vmem:[#allocation1 + $0x8] sm:$0xff pattern:$0x73625140] }
  0x43   : > { %v461_v9 = vsel %vm460_vm0, %v392_v7, 0  ;;  %v463_v10 = vsel %vm460_vm0, %v393_v8, 0  ;;  %v394_v11 = vld.sshfl [vmem:[#allocation1 + $0x10] sm:$0xff pattern:$0x73625140] }
  0x44   : > { %498 = vmatpush.bf16.msra.mxu0 %v461_v9  ;;  %587 = vmatpush.bf16.msra.mxu1 %v463_v10  ;;  %v465_v12 = vsel %vm460_vm0, %v394_v11, 0  ;;  %v395_v13 = vld.sshfl [vmem:[#allocation1 + $0x18] sm:$0xff pattern:$0x73625140] }
  0x45   : > { %676 = vmatpush.bf16.msra.mxu2 %v465_v12  ;;  %401 = vst [vmem:[#allocation1] ss:$4 sm:$0xff] %v329_v6  ;;  %v467_v14 = vsel %vm460_vm0, %v395_v13, 0 }
  0x46   : > { %765 = vmatpush.bf16.msra.mxu3 %v467_v14 }
  0x48   : > { %854 = vmatpush.bf16.msrb.mxu0 %v469_v19  ;;  %943 = vmatpush.bf16.msrb.mxu1 %v471_v21 }
  0x49   : > { %1032 = vmatpush.bf16.msrb.mxu2 %v473_v18 }
  0xe9   : > { %v5594_v22 = vpop.trf.xlu0 }
  0xea   : > { %4263 = vmatmul.msk.bf16.vlgmr.msra.gmra.mxu0 %vm411_vm1, %v5594_v22  ;;  %4279 = vmatmul.msk.bf16.vlgmr.msra.gmra.mxu1 %vm411_vm1, %v5594_v22 }
  0xeb   : > { %4295 = vmatmul.msk.bf16.vlgmr.msra.gmra.mxu2 %vm411_vm1, %v5594_v22  ;;  %4311 = vmatmul.msk.bf16.vlgmr.msra.gmra.mxu3 %vm411_vm1, %v5594_v22 }
  0xf1   : > { %v5604_v23 = vpop.trf.xlu0 }
  0xf9   : > { %v5606_v24 = vpop.trf.xlu0 }
  0xfa   : > { %4264 = vmatmul.msk.bf16.gmra.mxu0 %vm411_vm1, %v5606_v24  ;;  %4280 = vmatmul.msk.bf16.gmra.mxu1 %vm411_vm1, %v5606_v24 }
  0xfb   : > { %4296 = vmatmul.msk.bf16.gmra.mxu2 %vm411_vm1, %v5606_v24  ;;  %4312 = vmatmul.msk.bf16.gmra.mxu3 %vm411_vm1, %v5606_v24 }
 0x101   : > { %v5616_v25 = vpop.trf.xlu0 }
 0x109   : > { %v5618_v26 = vpop.trf.xlu0 }
 0x10a   : > { %4265 = vmatmul.msk.bf16.gmra.mxu0 %vm411_vm1, %v5618_v26  ;;  %4281 = vmatmul.msk.bf16.gmra.mxu1 %vm411_vm1, %v5618_v26 }
 0x10b   : > { %4297 = vmatmul.msk.bf16.gmra.mxu2 %vm411_vm1, %v5618_v26  ;;  %4313 = vmatmul.msk.bf16.gmra.mxu3 %vm411_vm1, %v5618_v26 }
 0x111   : > { %v5628_v27 = vpop.trf.xlu0 }
 0x119   : > { %v5630_v28 = vpop.trf.xlu0 }
 0x11a   : > { %4266 = vmatmul.msk.bf16.gmra.mxu0 %vm411_vm1, %v5630_v28  ;;  %4282 = vmatmul.msk.bf16.gmra.mxu1 %vm411_vm1, %v5630_v28 }
 0x11b   : > { %4298 = vmatmul.msk.bf16.gmra.mxu2 %vm411_vm1, %v5630_v28  ;;  %4314 = vmatmul.msk.bf16.gmra.mxu3 %vm411_vm1, %v5630_v28 }
 0x121   : > { %v5640_v29 = vpop.trf.xlu0 }
 0x129   : > { %v5642_v30 = vpop.trf.xlu0 }
 0x12a   : > { %6801 = vst [vmem:[#allocation16_spill] sm:$0xff] %v5642_v30  ;;  %4267 = vmatmul.msk.bf16.gmra.mxu0 %vm411_vm1, %v5642_v30  ;;  %4283 = vmatmul.msk.bf16.gmra.mxu1 %vm411_vm1, %v5642_v30 }
 0x12b   : > { %4299 = vmatmul.msk.bf16.gmra.mxu2 %vm411_vm1, %v5642_v30  ;;  %4315 = vmatmul.msk.bf16.gmra.mxu3 %vm411_vm1, %v5642_v30 }
 0x131   : > { %v5652_v31 = vpop.trf.xlu0 }
 0x139   : > { %v5654_v32 = vpop.trf.xlu0 }
 0x13a   : > { %6802 = vst [vmem:[#allocation17_spill] sm:$0xff] %v5654_v32  ;;  %4268 = vmatmul.msk.bf16.gmra.mxu0 %vm411_vm1, %v5654_v32  ;;  %4284 = vmatmul.msk.bf16.gmra.mxu1 %vm411_vm1, %v5654_v32 }
 0x13b   : > { %4300 = vmatmul.msk.bf16.gmra.mxu2 %vm411_vm1, %v5654_v32  ;;  %4316 = vmatmul.msk.bf16.gmra.mxu3 %vm411_vm1, %v5654_v32 }
 0x141   : > { %v5664_v33 = vpop.trf.xlu0 }
 0x149   : > { %v5666_v34 = vpop.trf.xlu0 }
 0x14a   : > { %4269 = vmatmul.msk.bf16.gmra.mxu0 %vm411_vm1, %v5666_v34  ;;  %4285 = vmatmul.msk.bf16.gmra.mxu1 %vm411_vm1, %v5666_v34 }
 0x14b   : > { %4301 = vmatmul.msk.bf16.gmra.mxu2 %vm411_vm1, %v5666_v34  ;;  %4317 = vmatmul.msk.bf16.gmra.mxu3 %vm411_vm1, %v5666_v34 }
 0x151   : > { %v5676_v35 = vpop.trf.xlu0 }
 0x159   : > { %v5678_v36 = vpop.trf.xlu0 }
 0x15a   : > { %4270 = vmatmul.msk.bf16.gmra.mxu0 %vm411_vm1, %v5678_v36  ;;  %4286 = vmatmul.msk.bf16.gmra.mxu1 %vm411_vm1, %v5678_v36 }
 0x15b   : > { %4302 = vmatmul.msk.bf16.gmra.mxu2 %vm411_vm1, %v5678_v36  ;;  %4318 = vmatmul.msk.bf16.gmra.mxu3 %vm411_vm1, %v5678_v36 }
 0x167   : > { %v500_v38 = vpop.f32.mrf.mxu0  ;;  %v589_v39 = vpop.f32.mrf.mxu1 }
 0x168   : > { %v501_v42 = vadd.f32 %v500_v38, %v5688_v40  ;;  %v590_v43 = vadd.f32 %v589_v39, %v5690_v41 }
 0x16a   : > { %4271 = vmatmul.msk.bf16.gmra.mxu0 %vm411_vm1, %v5604_v23  ;;  %4287 = vmatmul.msk.bf16.gmra.mxu1 %vm411_vm1, %v5604_v23  ;;  %v1826_v52 = vmax.f32 %v501_v42, 0.0  ;;  %v1827_v53 = vmax.f32 %v590_v43, 0.0 }
 0x16b   : > { %4303 = vmatmul.msk.bf16.gmra.mxu2 %vm411_vm1, %v5604_v23  ;;  %4319 = vmatmul.msk.bf16.gmra.mxu3 %vm411_vm1, %v5604_v23 }
 0x16e   : > { %v678_v44 = vpop.f32.mrf.mxu2  ;;  %v767_v45 = vpop.f32.mrf.mxu3 }
 0x16f   : > { %v502_v46 = vpop.f32.mrf.mxu0  ;;  %v591_v47 = vpop.f32.mrf.mxu1  ;;  %v679_v58 = vadd.f32 %v678_v44, %v5704_v50  ;;  %v768_v59 = vadd.f32 %v767_v45, %v5706_v51 }
 0x170   : > { %v503_v48 = vadd.f32 %v502_v46, %v5688_v40  ;;  %v592_v49 = vadd.f32 %v591_v47, %v5690_v41 }
 0x171   : > { %v1828_v4 = vmax.f32 %v679_v58, 0.0  ;;  %v1829_v5 = vmax.f32 %v768_v59, 0.0 }
 0x172   : > { %v1841_v54 = vmax.f32 %v503_v48, 0.0  ;;  %v1842_v55 = vmax.f32 %v592_v49, 0.0 }
 0x174   : > { %v2306_v56 = vadd.f32 %v1841_v54, %v1826_v52  ;;  %v2343_v57 = vadd.f32 %v1842_v55, %v1827_v53 }
 0x176   : > { %v680_v60 = vpop.f32.mrf.mxu2  ;;  %v769_v61 = vpop.f32.mrf.mxu3 }
 0x177   : > { %v681_v62 = vadd.f32 %v680_v60, %v5704_v50  ;;  %v770_v63 = vadd.f32 %v769_v61, %v5706_v51  ;;  %v505_v0 = vpop.f32.mrf.mxu0  ;;  %v594_v1 = vpop.f32.mrf.mxu1 }
 0x178   : > { %v506_v2 = vadd.f32 %v505_v0, %v5688_v40  ;;  %v595_v3 = vadd.f32 %v594_v1, %v5690_v41 }
 0x179   : > { %v1843_v6 = vmax.f32 %v681_v62, 0.0  ;;  %v1844_v7 = vmax.f32 %v770_v63, 0.0 }
 0x17a   : > { %v1856_v8 = vmax.f32 %v506_v2, 0.0  ;;  %v1857_v9 = vmax.f32 %v595_v3, 0.0  ;;  %4272 = vmatmul.msk.bf16.gmra.mxu0 %vm411_vm1, %v5616_v25  ;;  %4288 = vmatmul.msk.bf16.gmra.mxu1 %vm411_vm1, %v5616_v25 }
 0x17b   : > { %v2380_v10 = vadd.f32 %v1843_v6, %v1828_v4  ;;  %v2417_v11 = vadd.f32 %v1844_v7, %v1829_v5  ;;  %4304 = vmatmul.msk.bf16.gmra.mxu2 %vm411_vm1, %v5616_v25  ;;  %4320 = vmatmul.msk.bf16.gmra.mxu3 %vm411_vm1, %v5616_v25 }
 0x17c   : > { %v2307_v12 = vadd.f32 %v2306_v56, %v1856_v8  ;;  %v2344_v13 = vadd.f32 %v2343_v57, %v1857_v9 }
 0x17e   : > { %v683_v14 = vpop.f32.mrf.mxu2  ;;  %v772_v15 = vpop.f32.mrf.mxu3 }
 0x17f   : > { %v684_v16 = vadd.f32 %v683_v14, %v5704_v50  ;;  %v773_v17 = vadd.f32 %v772_v15, %v5706_v51  ;;  %v507_v18 = vpop.f32.mrf.mxu0  ;;  %v596_v19 = vpop.f32.mrf.mxu1 }
 0x180   : > { %v508_v20 = vadd.f32 %v507_v18, %v5688_v40  ;;  %v597_v21 = vadd.f32 %v596_v19, %v5690_v41 }
 0x181   : > { %v1858_v37 = vmax.f32 %v684_v16, 0.0  ;;  %v1859_v38 = vmax.f32 %v773_v17, 0.0 }
 0x182   : > { %v1871_v39 = vmax.f32 %v508_v20, 0.0  ;;  %v1872_v42 = vmax.f32 %v597_v21, 0.0 }
 0x183   : > { %v2381_v43 = vadd.f32 %v2380_v10, %v1858_v37  ;;  %v2418_v44 = vadd.f32 %v2417_v11, %v1859_v38 }
 0x184   : > { %v2308_v45 = vadd.f32 %v2307_v12, %v1871_v39  ;;  %v2345_v46 = vadd.f32 %v2344_v13, %v1872_v42 }
 0x186   : > { %v685_v47 = vpop.f32.mrf.mxu2  ;;  %v774_v48 = vpop.f32.mrf.mxu3 }
 0x187   : > { %v686_v49 = vadd.f32 %v685_v47, %v5704_v50  ;;  %v775_v52 = vadd.f32 %v774_v48, %v5706_v51  ;;  %v510_v53 = vpop.f32.mrf.mxu0  ;;  %v599_v54 = vpop.f32.mrf.mxu1 }
 0x188   : > { %v511_v55 = vadd.f32 %v510_v53, %v5688_v40  ;;  %v600_v56 = vadd.f32 %v599_v54, %v5690_v41 }
 0x189   : > { %v1873_v57 = vmax.f32 %v686_v49, 0.0  ;;  %v1874_v58 = vmax.f32 %v775_v52, 0.0 }
 0x18a   : > { %v1886_v59 = vmax.f32 %v511_v55, 0.0  ;;  %v1887_v60 = vmax.f32 %v600_v56, 0.0  ;;  %4273 = vmatmul.msk.bf16.gmra.mxu0 %vm411_vm1, %v5628_v27  ;;  %4289 = vmatmul.msk.bf16.gmra.mxu1 %vm411_vm1, %v5628_v27 }
 0x18b   : > { %v2382_v61 = vadd.f32 %v2381_v43, %v1873_v57  ;;  %v2419_v62 = vadd.f32 %v2418_v44, %v1874_v58  ;;  %4305 = vmatmul.msk.bf16.gmra.mxu2 %vm411_vm1, %v5628_v27  ;;  %4321 = vmatmul.msk.bf16.gmra.mxu3 %vm411_vm1, %v5628_v27 }
 0x18c   : > { %v2309_v63 = vadd.f32 %v2308_v45, %v1886_v59  ;;  %v2346_v0 = vadd.f32 %v2345_v46, %v1887_v60 }
 0x18e   : > { %v688_v1 = vpop.f32.mrf.mxu2  ;;  %v777_v2 = vpop.f32.mrf.mxu3 }
 0x18f   : > { %v689_v3 = vadd.f32 %v688_v1, %v5704_v50  ;;  %v778_v4 = vadd.f32 %v777_v2, %v5706_v51  ;;  %v512_v5 = vpop.f32.mrf.mxu0  ;;  %v601_v6 = vpop.f32.mrf.mxu1 }
 0x190   : > { %v513_v7 = vadd.f32 %v512_v5, %v5688_v40  ;;  %v602_v8 = vadd.f32 %v601_v6, %v5690_v41 }
 0x191   : > { %v1888_v9 = vmax.f32 %v689_v3, 0.0  ;;  %v1889_v10 = vmax.f32 %v778_v4, 0.0 }
 0x192   : > { %v1901_v11 = vmax.f32 %v513_v7, 0.0  ;;  %v1902_v12 = vmax.f32 %v602_v8, 0.0 }
 0x193   : > { %v2383_v13 = vadd.f32 %v2382_v61, %v1888_v9  ;;  %v2420_v14 = vadd.f32 %v2419_v62, %v1889_v10 }
 0x194   : > { %v2310_v15 = vadd.f32 %v2309_v63, %v1901_v11  ;;  %v2347_v16 = vadd.f32 %v2346_v0, %v1902_v12 }
 0x196   : > { %v690_v17 = vpop.f32.mrf.mxu2  ;;  %v779_v18 = vpop.f32.mrf.mxu3 }
 0x197   : > { %v691_v19 = vadd.f32 %v690_v17, %v5704_v50  ;;  %v780_v20 = vadd.f32 %v779_v18, %v5706_v51  ;;  %v515_v21 = vpop.f32.mrf.mxu0  ;;  %v604_v37 = vpop.f32.mrf.mxu1 }
 0x198   : > { %v516_v38 = vadd.f32 %v515_v21, %v5688_v40  ;;  %v605_v39 = vadd.f32 %v604_v37, %v5690_v41 }
 0x199   : > { %v1903_v42 = vmax.f32 %v691_v19, 0.0  ;;  %v1904_v43 = vmax.f32 %v780_v20, 0.0 }
 0x19a   : > { %v1916_v44 = vmax.f32 %v516_v38, 0.0  ;;  %v1917_v45 = vmax.f32 %v605_v39, 0.0  ;;  %4274 = vmatmul.msk.bf16.gmra.mxu0 %vm411_vm1, %v5640_v29  ;;  %4290 = vmatmul.msk.bf16.gmra.mxu1 %vm411_vm1, %v5640_v29 }
 0x19b   : > { %v2384_v46 = vadd.f32 %v2383_v13, %v1903_v42  ;;  %v2421_v47 = vadd.f32 %v2420_v14, %v1904_v43  ;;  %4306 = vmatmul.msk.bf16.gmra.mxu2 %vm411_vm1, %v5640_v29  ;;  %4322 = vmatmul.msk.bf16.gmra.mxu3 %vm411_vm1, %v5640_v29 }
 0x19c   : > { %v2311_v48 = vadd.f32 %v2310_v15, %v1916_v44  ;;  %v2348_v49 = vadd.f32 %v2347_v16, %v1917_v45 }
 0x19e   : > { %v693_v52 = vpop.f32.mrf.mxu2  ;;  %v782_v53 = vpop.f32.mrf.mxu3 }
 0x19f   : > { %v694_v54 = vadd.f32 %v693_v52, %v5704_v50  ;;  %v783_v55 = vadd.f32 %v782_v53, %v5706_v51  ;;  %v517_v56 = vpop.f32.mrf.mxu0  ;;  %v606_v57 = vpop.f32.mrf.mxu1 }
 0x1a0   : > { %v518_v58 = vadd.f32 %v517_v56, %v5688_v40  ;;  %v607_v59 = vadd.f32 %v606_v57, %v5690_v41 }
 0x1a1   : > { %v1918_v60 = vmax.f32 %v694_v54, 0.0  ;;  %v1919_v61 = vmax.f32 %v783_v55, 0.0 }
 0x1a2   : > { %v1931_v62 = vmax.f32 %v518_v58, 0.0  ;;  %v1932_v63 = vmax.f32 %v607_v59, 0.0 }
 0x1a3   : > { %v2385_v0 = vadd.f32 %v2384_v46, %v1918_v60  ;;  %v2422_v1 = vadd.f32 %v2421_v47, %v1919_v61 }
 0x1a4   : > { %v2312_v2 = vadd.f32 %v2311_v48, %v1931_v62  ;;  %v2349_v3 = vadd.f32 %v2348_v49, %v1932_v63 }
 0x1a6   : > { %v695_v4 = vpop.f32.mrf.mxu2  ;;  %v784_v5 = vpop.f32.mrf.mxu3 }
 0x1a7   : > { %v696_v6 = vadd.f32 %v695_v4, %v5704_v50  ;;  %v785_v7 = vadd.f32 %v784_v5, %v5706_v51  ;;  %v520_v8 = vpop.f32.mrf.mxu0  ;;  %v609_v9 = vpop.f32.mrf.mxu1 }
 0x1a8   : > { %v521_v10 = vadd.f32 %v520_v8, %v5688_v40  ;;  %v610_v11 = vadd.f32 %v609_v9, %v5690_v41 }
 0x1a9   : > { %v1933_v12 = vmax.f32 %v696_v6, 0.0  ;;  %v1934_v13 = vmax.f32 %v785_v7, 0.0 }
 0x1aa   : > { %v1946_v14 = vmax.f32 %v521_v10, 0.0  ;;  %v1947_v15 = vmax.f32 %v610_v11, 0.0  ;;  %4275 = vmatmul.msk.bf16.gmra.mxu0 %vm411_vm1, %v5652_v31  ;;  %4291 = vmatmul.msk.bf16.gmra.mxu1 %vm411_vm1, %v5652_v31 }
 0x1ab   : > { %v2386_v16 = vadd.f32 %v2385_v0, %v1933_v12  ;;  %v2423_v17 = vadd.f32 %v2422_v1, %v1934_v13  ;;  %4307 = vmatmul.msk.bf16.gmra.mxu2 %vm411_vm1, %v5652_v31  ;;  %4323 = vmatmul.msk.bf16.gmra.mxu3 %vm411_vm1, %v5652_v31 }
 0x1ac   : > { %v2313_v18 = vadd.f32 %v2312_v2, %v1946_v14  ;;  %v2350_v19 = vadd.f32 %v2349_v3, %v1947_v15 }
 0x1ae   : > { %v698_v20 = vpop.f32.mrf.mxu2  ;;  %v787_v21 = vpop.f32.mrf.mxu3 }
 0x1af   : > { %v699_v37 = vadd.f32 %v698_v20, %v5704_v50  ;;  %v788_v38 = vadd.f32 %v787_v21, %v5706_v51  ;;  %v522_v39 = vpop.f32.mrf.mxu0  ;;  %v611_v42 = vpop.f32.mrf.mxu1 }
 0x1b0   : > { %v523_v43 = vadd.f32 %v522_v39, %v5688_v40  ;;  %v612_v44 = vadd.f32 %v611_v42, %v5690_v41  ;;  %v399_v42 = vld.sshfl [vmem:[#allocation1 + $0x38] sm:$0xff pattern:$0x73625140] }
 0x1b1   : > { %v1948_v45 = vmax.f32 %v699_v37, 0.0  ;;  %v1949_v46 = vmax.f32 %v788_v38, 0.0 }
 0x1b2   : > { %v1961_v47 = vmax.f32 %v523_v43, 0.0  ;;  %v1962_v48 = vmax.f32 %v612_v44, 0.0 }
 0x1b3   : > { %v2387_v49 = vadd.f32 %v2386_v16, %v1948_v45  ;;  %v2424_v52 = vadd.f32 %v2423_v17, %v1949_v46 }
 0x1b4   : > { %v2314_v53 = vadd.f32 %v2313_v18, %v1961_v47  ;;  %v2351_v54 = vadd.f32 %v2350_v19, %v1962_v48  ;;  %v475_v47 = vsel %vm460_vm0, %v399_v42, 0 }
 0x1b5   : > { %1121 = vmatpush.bf16.msrb.mxu3 %v475_v47 }
 0x1b6   : > { %v700_v55 = vpop.f32.mrf.mxu2  ;;  %v789_v56 = vpop.f32.mrf.mxu3 }
 0x1b7   : > { %v701_v57 = vadd.f32 %v700_v55, %v5704_v50  ;;  %v790_v58 = vadd.f32 %v789_v56, %v5706_v51  ;;  %v525_v59 = vpop.f32.mrf.mxu0  ;;  %v614_v60 = vpop.f32.mrf.mxu1 }
 0x1b8   : > { %v526_v61 = vadd.f32 %v525_v59, %v5688_v40  ;;  %v615_v62 = vadd.f32 %v614_v60, %v5690_v41  ;;  %v330_v60 = vld [vmem:[#allocation6 + $0x18] sm:$0x3f] }
 0x1b9   : > { %v1963_v63 = vmax.f32 %v701_v57, 0.0  ;;  %v1964_v0 = vmax.f32 %v790_v58, 0.0  ;;  %403 = vst [vmem:[#allocation1 + $0x20] ss:$4 sm:$0xff] %v330_v60 }
 0x1ba   : > { %v1976_v1 = vmax.f32 %v526_v61, 0.0  ;;  %v1977_v2 = vmax.f32 %v615_v62, 0.0  ;;  %4276 = vmatmul.msk.bf16.gmra.mxu0 %vm411_vm1, %v5664_v33  ;;  %4292 = vmatmul.msk.bf16.gmra.mxu1 %vm411_vm1, %v5664_v33  ;;  %v406_v61 = vld.sshfl [vmem:[#allocation1 + $0x10] sm:$0xff pattern:$0x73625140] }
 0x1bb   : > { %v2388_v3 = vadd.f32 %v2387_v49, %v1963_v63  ;;  %v2425_v4 = vadd.f32 %v2424_v52, %v1964_v0  ;;  %4308 = vmatmul.msk.bf16.gmra.mxu2 %vm411_vm1, %v5664_v33  ;;  %4324 = vmatmul.msk.bf16.gmra.mxu3 %vm411_vm1, %v5664_v33  ;;  %v481_v62 = vsel %vm460_vm0, %v406_v61, 0 }
 0x1bc   : > { %v2315_v5 = vadd.f32 %v2314_v53, %v1976_v1  ;;  %v2352_v6 = vadd.f32 %v2351_v54, %v1977_v2  ;;  %1388 = vmatpush.bf16.msra.mxu2 %v481_v62 }
 0x1be   : > { %v703_v7 = vpop.f32.mrf.mxu2  ;;  %v792_v8 = vpop.f32.mrf.mxu3 }
 0x1bf   : > { %v704_v9 = vadd.f32 %v703_v7, %v5704_v50  ;;  %v793_v10 = vadd.f32 %v792_v8, %v5706_v51  ;;  %v527_v11 = vpop.f32.mrf.mxu0  ;;  %v616_v12 = vpop.f32.mrf.mxu1 }
 0x1c0   : > { %v528_v13 = vadd.f32 %v527_v11, %v5688_v40  ;;  %v617_v14 = vadd.f32 %v616_v12, %v5690_v41 }
 0x1c1   : > { %v1978_v15 = vmax.f32 %v704_v9, 0.0  ;;  %v1979_v16 = vmax.f32 %v793_v10, 0.0 }
 0x1c2   : > { %v1991_v17 = vmax.f32 %v528_v13, 0.0  ;;  %v1992_v18 = vmax.f32 %v617_v14, 0.0 }
 0x1c3   : > { %v2389_v19 = vadd.f32 %v2388_v3, %v1978_v15  ;;  %v2426_v20 = vadd.f32 %v2425_v4, %v1979_v16  ;;  %v404_v15 = vld.sshfl [vmem:[#allocation1] sm:$0xff pattern:$0x73625140]  ;;  %v405_v16 = vld.sshfl [vmem:[#allocation1 + $0x8] sm:$0xff pattern:$0x73625140] }
 0x1c4   : > { %v2316_v21 = vadd.f32 %v2315_v5, %v1991_v17  ;;  %v2353_v37 = vadd.f32 %v2352_v6, %v1992_v18  ;;  %v5808_v17 = vpop.trf.xlu0  ;;  %v477_v18 = vsel %vm460_vm0, %v404_v15, 0 }
 0x1c5   : > { %1210 = vmatpush.bf16.msra.mxu0 %v477_v18 }
 0x1c6   : > { %v705_v38 = vpop.f32.mrf.mxu2  ;;  %v794_v39 = vpop.f32.mrf.mxu3 }
 0x1c7   : > { %v706_v43 = vadd.f32 %v705_v38, %v5704_v50  ;;  %v795_v44 = vadd.f32 %v794_v39, %v5706_v51  ;;  %v530_v45 = vpop.f32.mrf.mxu0  ;;  %v619_v46 = vpop.f32.mrf.mxu1 }
 0x1c8   : > { %v531_v48 = vadd.f32 %v530_v45, %v5688_v40  ;;  %v620_v49 = vadd.f32 %v619_v46, %v5690_v41 }
 0x1c9   : > { %v1993_v52 = vmax.f32 %v706_v43, 0.0  ;;  %v1994_v53 = vmax.f32 %v795_v44, 0.0 }
 0x1ca   : > { %v2006_v54 = vmax.f32 %v531_v48, 0.0  ;;  %v2007_v55 = vmax.f32 %v620_v49, 0.0  ;;  %4277 = vmatmul.msk.bf16.gmra.mxu0 %vm411_vm1, %v5676_v35  ;;  %4293 = vmatmul.msk.bf16.gmra.mxu1 %vm411_vm1, %v5676_v35 }
 0x1cb   : > { %v2390_v56 = vadd.f32 %v2389_v19, %v1993_v52  ;;  %v2427_v57 = vadd.f32 %v2426_v20, %v1994_v53  ;;  %4309 = vmatmul.msk.bf16.gmra.mxu2 %vm411_vm1, %v5676_v35  ;;  %4325 = vmatmul.msk.bf16.gmra.mxu3 %vm411_vm1, %v5676_v35  ;;  %v479_v19 = vsel %vm460_vm0, %v405_v16, 0 }
 0x1cc   : > { %v2317_v58 = vadd.f32 %v2316_v21, %v2006_v54  ;;  %v2354_v59 = vadd.f32 %v2353_v37, %v2007_v55  ;;  %1299 = vmatpush.bf16.msra.mxu1 %v479_v19 }
 0x1ce   : > { %v708_v63 = vpop.f32.mrf.mxu2  ;;  %v797_v0 = vpop.f32.mrf.mxu3 }
 0x1cf   : > { %v709_v1 = vadd.f32 %v708_v63, %v5704_v50  ;;  %v798_v2 = vadd.f32 %v797_v0, %v5706_v51  ;;  %v532_v3 = vpop.f32.mrf.mxu0  ;;  %v621_v4 = vpop.f32.mrf.mxu1 }
 0x1d0   : > { %v533_v5 = vadd.f32 %v532_v3, %v5688_v40  ;;  %v622_v6 = vadd.f32 %v621_v4, %v5690_v41 }
 0x1d1   : > { %v2008_v7 = vmax.f32 %v709_v1, 0.0  ;;  %v2009_v8 = vmax.f32 %v798_v2, 0.0 }
 0x1d2   : > { %v2021_v9 = vmax.f32 %v533_v5, 0.0  ;;  %v2022_v10 = vmax.f32 %v622_v6, 0.0 }
 0x1d3   : > { %v2391_v11 = vadd.f32 %v2390_v56, %v2008_v7  ;;  %v2428_v12 = vadd.f32 %v2427_v57, %v2009_v8 }
 0x1d4   : > { %v2318_v13 = vadd.f32 %v2317_v58, %v2021_v9  ;;  %v2355_v14 = vadd.f32 %v2354_v59, %v2022_v10 }
 0x1d6   : > { %v710_v20 = vpop.f32.mrf.mxu2  ;;  %v799_v21 = vpop.f32.mrf.mxu3 }
 0x1d7   : > { %v711_v37 = vadd.f32 %v710_v20, %v5704_v50  ;;  %v800_v38 = vadd.f32 %v799_v21, %v5706_v51  ;;  %v535_v39 = vpop.f32.mrf.mxu0  ;;  %v624_v42 = vpop.f32.mrf.mxu1 }
 0x1d8   : > { %v536_v43 = vadd.f32 %v535_v39, %v5688_v40  ;;  %v625_v44 = vadd.f32 %v624_v42, %v5690_v41 }
 0x1d9   : > { %v2023_v45 = vmax.f32 %v711_v37, 0.0  ;;  %v2024_v46 = vmax.f32 %v800_v38, 0.0 }
 0x1da   : > { %v2036_v47 = vmax.f32 %v536_v43, 0.0  ;;  %v2037_v48 = vmax.f32 %v625_v44, 0.0  ;;  %4278 = vmatmul.msk.bf16.gmra.mxu0 %vm411_vm1, %v5808_v17  ;;  %4294 = vmatmul.msk.bf16.gmra.mxu1 %vm411_vm1, %v5808_v17 }
 0x1db   : > { %v2392_v49 = vadd.f32 %v2391_v11, %v2023_v45  ;;  %v2429_v52 = vadd.f32 %v2428_v12, %v2024_v46  ;;  %4310 = vmatmul.msk.bf16.gmra.mxu2 %vm411_vm1, %v5808_v17  ;;  %4326 = vmatmul.msk.bf16.gmra.mxu3 %vm411_vm1, %v5808_v17 }
 0x1dc   : > { %v2319_v53 = vadd.f32 %v2318_v13, %v2036_v47  ;;  %v2356_v54 = vadd.f32 %v2355_v14, %v2037_v48 }
 0x1de   : > { %v713_v55 = vpop.f32.mrf.mxu2  ;;  %v802_v56 = vpop.f32.mrf.mxu3 }
 0x1df   : > { %v714_v57 = vadd.f32 %v713_v55, %v5704_v50  ;;  %v803_v58 = vadd.f32 %v802_v56, %v5706_v51  ;;  %v537_v59 = vpop.f32.mrf.mxu0  ;;  %v626_v60 = vpop.f32.mrf.mxu1 }
 0x1e0   : > { %v538_v61 = vadd.f32 %v537_v59, %v5688_v40  ;;  %v627_v62 = vadd.f32 %v626_v60, %v5690_v41 }
 0x1e1   : > { %v2038_v63 = vmax.f32 %v714_v57, 0.0  ;;  %v2039_v0 = vmax.f32 %v803_v58, 0.0 }
 0x1e2   : > { %v2051_v1 = vmax.f32 %v538_v61, 0.0  ;;  %v2052_v2 = vmax.f32 %v627_v62, 0.0 }
 0x1e3   : > { %v2393_v3 = vadd.f32 %v2392_v49, %v2038_v63  ;;  %v2430_v4 = vadd.f32 %v2429_v52, %v2039_v0 }
 0x1e4   : > { %v2320_v5 = vadd.f32 %v2319_v53, %v2051_v1  ;;  %v2357_v6 = vadd.f32 %v2356_v54, %v2052_v2 }
 0x1e6   : > { %v715_v7 = vpop.f32.mrf.mxu2  ;;  %v804_v8 = vpop.f32.mrf.mxu3 }
 0x1e7   : > { %v716_v9 = vadd.f32 %v715_v7, %v5704_v50  ;;  %v805_v10 = vadd.f32 %v804_v8, %v5706_v51  ;;  %v540_v11 = vpop.f32.mrf.mxu0  ;;  %v629_v12 = vpop.f32.mrf.mxu1 }
 0x1e8   : > { %v541_v13 = vadd.f32 %v540_v11, %v5688_v40  ;;  %v630_v14 = vadd.f32 %v629_v12, %v5690_v41 }
 0x1e9   : > { %v2053_v15 = vmax.f32 %v716_v9, 0.0  ;;  %v2054_v16 = vmax.f32 %v805_v10, 0.0 }
 0x1ea   : > { %v2066_v18 = vmax.f32 %v541_v13, 0.0  ;;  %v2067_v19 = vmax.f32 %v630_v14, 0.0  ;;  %4327 = vmatmul.msk.bf16.vlgmr.msrb.gmra.mxu0 %vm411_vm1, %v5594_v22  ;;  %4343 = vmatmul.msk.bf16.vlgmr.msrb.gmra.mxu1 %vm411_vm1, %v5594_v22 }
 0x1eb   : > { %v2394_v20 = vadd.f32 %v2393_v3, %v2053_v15  ;;  %v2431_v21 = vadd.f32 %v2430_v4, %v2054_v16  ;;  %4359 = vmatmul.msk.bf16.vlgmr.msrb.gmra.mxu2 %vm411_vm1, %v5594_v22  ;;  %4375 = vmatmul.msk.bf16.vlgmr.msrb.gmra.mxu3 %vm411_vm1, %v5594_v22 }
 0x1ec   : > { %v2321_v37 = vadd.f32 %v2320_v5, %v2066_v18  ;;  %v2358_v38 = vadd.f32 %v2357_v6, %v2067_v19 }
 0x1ee   : > { %v718_v39 = vpop.f32.mrf.mxu2  ;;  %v807_v42 = vpop.f32.mrf.mxu3 }
 0x1ef   : > { %v719_v43 = vadd.f32 %v718_v39, %v5704_v50  ;;  %v808_v44 = vadd.f32 %v807_v42, %v5706_v51  ;;  %v542_v45 = vpop.f32.mrf.mxu0  ;;  %v631_v46 = vpop.f32.mrf.mxu1 }
 0x1f0   : > { %v543_v47 = vadd.f32 %v542_v45, %v5688_v40  ;;  %v632_v48 = vadd.f32 %v631_v46, %v5690_v41 }
 0x1f1   : > { %v2068_v49 = vmax.f32 %v719_v43, 0.0  ;;  %v2069_v52 = vmax.f32 %v808_v44, 0.0 }
 0x1f2   : > { %v2081_v53 = vmax.f32 %v543_v47, 0.0  ;;  %v2082_v54 = vmax.f32 %v632_v48, 0.0 }
 0x1f3   : > { %v2395_v55 = vadd.f32 %v2394_v20, %v2068_v49  ;;  %v2432_v56 = vadd.f32 %v2431_v21, %v2069_v52 }
 0x1f4   : > { %v2322_v57 = vadd.f32 %v2321_v37, %v2081_v53  ;;  %v2359_v58 = vadd.f32 %v2358_v38, %v2082_v54 }
 0x1f6   : > { %v720_v59 = vpop.f32.mrf.mxu2  ;;  %v809_v60 = vpop.f32.mrf.mxu3 }
 0x1f7   : > { %v721_v61 = vadd.f32 %v720_v59, %v5704_v50  ;;  %v810_v62 = vadd.f32 %v809_v60, %v5706_v51  ;;  %v545_v63 = vpop.f32.mrf.mxu0  ;;  %v634_v0 = vpop.f32.mrf.mxu1 }
 0x1f8   : > { %v546_v1 = vadd.f32 %v545_v63, %v5688_v40  ;;  %v635_v2 = vadd.f32 %v634_v0, %v5690_v41 }
 0x1f9   : > { %v2083_v3 = vmax.f32 %v721_v61, 0.0  ;;  %v2084_v4 = vmax.f32 %v810_v62, 0.0 }
 0x1fa   : > { %v2096_v5 = vmax.f32 %v546_v1, 0.0  ;;  %v2097_v6 = vmax.f32 %v635_v2, 0.0  ;;  %4328 = vmatmul.msk.bf16.gmra.mxu0 %vm411_vm1, %v5606_v24  ;;  %4344 = vmatmul.msk.bf16.gmra.mxu1 %vm411_vm1, %v5606_v24 }
 0x1fb   : > { %v2396_v7 = vadd.f32 %v2395_v55, %v2083_v3  ;;  %v2433_v8 = vadd.f32 %v2432_v56, %v2084_v4  ;;  %4360 = vmatmul.msk.bf16.gmra.mxu2 %vm411_vm1, %v5606_v24  ;;  %4376 = vmatmul.msk.bf16.gmra.mxu3 %vm411_vm1, %v5606_v24 }
 0x1fc   : > { %v2323_v9 = vadd.f32 %v2322_v57, %v2096_v5  ;;  %v2360_v10 = vadd.f32 %v2359_v58, %v2097_v6 }
 0x1fe   : > { %v723_v11 = vpop.f32.mrf.mxu2  ;;  %v812_v12 = vpop.f32.mrf.mxu3 }
 0x1ff   : > { %v724_v13 = vadd.f32 %v723_v11, %v5704_v50  ;;  %v813_v14 = vadd.f32 %v812_v12, %v5706_v51  ;;  %v547_v15 = vpop.f32.mrf.mxu0  ;;  %v636_v16 = vpop.f32.mrf.mxu1 }
 0x200   : > { %v548_v18 = vadd.f32 %v547_v15, %v5688_v40  ;;  %v637_v19 = vadd.f32 %v636_v16, %v5690_v41 }
 0x201   : > { %v2098_v20 = vmax.f32 %v724_v13, 0.0  ;;  %v2099_v21 = vmax.f32 %v813_v14, 0.0 }
 0x202   : > { %v2111_v37 = vmax.f32 %v548_v18, 0.0  ;;  %v2112_v38 = vmax.f32 %v637_v19, 0.0 }
 0x203   : > { %v2397_v39 = vadd.f32 %v2396_v7, %v2098_v20  ;;  %v2434_v42 = vadd.f32 %v2433_v8, %v2099_v21 }
 0x204   : > { %v2324_v43 = vadd.f32 %v2323_v9, %v2111_v37  ;;  %v2361_v44 = vadd.f32 %v2360_v10, %v2112_v38 }
 0x206   : > { %v725_v45 = vpop.f32.mrf.mxu2  ;;  %v814_v46 = vpop.f32.mrf.mxu3 }
 0x207   : > { %v726_v47 = vadd.f32 %v725_v45, %v5704_v50  ;;  %v815_v48 = vadd.f32 %v814_v46, %v5706_v51  ;;  %v550_v49 = vpop.f32.mrf.mxu0  ;;  %v639_v52 = vpop.f32.mrf.mxu1 }
 0x208   : > { %v551_v53 = vadd.f32 %v550_v49, %v5688_v40  ;;  %v640_v54 = vadd.f32 %v639_v52, %v5690_v41 }
 0x209   : > { %v2113_v55 = vmax.f32 %v726_v47, 0.0  ;;  %v2114_v56 = vmax.f32 %v815_v48, 0.0 }
 0x20a   : > { %v2126_v57 = vmax.f32 %v551_v53, 0.0  ;;  %v2127_v58 = vmax.f32 %v640_v54, 0.0  ;;  %4329 = vmatmul.msk.bf16.gmra.mxu0 %vm411_vm1, %v5618_v26  ;;  %4345 = vmatmul.msk.bf16.gmra.mxu1 %vm411_vm1, %v5618_v26 }
 0x20b   : > { %v2398_v59 = vadd.f32 %v2397_v39, %v2113_v55  ;;  %v2435_v60 = vadd.f32 %v2434_v42, %v2114_v56  ;;  %4361 = vmatmul.msk.bf16.gmra.mxu2 %vm411_vm1, %v5618_v26  ;;  %4377 = vmatmul.msk.bf16.gmra.mxu3 %vm411_vm1, %v5618_v26 }
 0x20c   : > { %v2325_v61 = vadd.f32 %v2324_v43, %v2126_v57  ;;  %v2362_v62 = vadd.f32 %v2361_v44, %v2127_v58 }
 0x20e   : > { %v728_v63 = vpop.f32.mrf.mxu2  ;;  %v817_v0 = vpop.f32.mrf.mxu3 }
 0x20f   : > { %v729_v1 = vadd.f32 %v728_v63, %v5704_v50  ;;  %v818_v2 = vadd.f32 %v817_v0, %v5706_v51  ;;  %v552_v3 = vpop.f32.mrf.mxu0  ;;  %v641_v4 = vpop.f32.mrf.mxu1 }
 0x210   : > { %v553_v5 = vadd.f32 %v552_v3, %v5688_v40  ;;  %v642_v6 = vadd.f32 %v641_v4, %v5690_v41 }
 0x211   : > { %v2128_v7 = vmax.f32 %v729_v1, 0.0  ;;  %v2129_v8 = vmax.f32 %v818_v2, 0.0 }
 0x212   : > { %v2141_v9 = vmax.f32 %v553_v5, 0.0  ;;  %v2142_v10 = vmax.f32 %v642_v6, 0.0 }
 0x213   : > { %v2399_v11 = vadd.f32 %v2398_v59, %v2128_v7  ;;  %v2436_v12 = vadd.f32 %v2435_v60, %v2129_v8 }
 0x214   : > { %v2326_v13 = vadd.f32 %v2325_v61, %v2141_v9  ;;  %v2363_v14 = vadd.f32 %v2362_v62, %v2142_v10 }
 0x216   : > { %v730_v15 = vpop.f32.mrf.mxu2  ;;  %v819_v16 = vpop.f32.mrf.mxu3 }
 0x217   : > { %v731_v18 = vadd.f32 %v730_v15, %v5704_v50  ;;  %v820_v19 = vadd.f32 %v819_v16, %v5706_v51  ;;  %v555_v20 = vpop.f32.mrf.mxu0  ;;  %v644_v21 = vpop.f32.mrf.mxu1 }
 0x218   : > { %v556_v37 = vadd.f32 %v555_v20, %v5688_v40  ;;  %v645_v38 = vadd.f32 %v644_v21, %v5690_v41 }
 0x219   : > { %v2143_v39 = vmax.f32 %v731_v18, 0.0  ;;  %v2144_v42 = vmax.f32 %v820_v19, 0.0 }
 0x21a   : > { %v2156_v43 = vmax.f32 %v556_v37, 0.0  ;;  %v2157_v44 = vmax.f32 %v645_v38, 0.0  ;;  %4330 = vmatmul.msk.bf16.gmra.mxu0 %vm411_vm1, %v5630_v28  ;;  %4346 = vmatmul.msk.bf16.gmra.mxu1 %vm411_vm1, %v5630_v28 }
 0x21b   : > { %v2400_v45 = vadd.f32 %v2399_v11, %v2143_v39  ;;  %v2437_v46 = vadd.f32 %v2436_v12, %v2144_v42  ;;  %4362 = vmatmul.msk.bf16.gmra.mxu2 %vm411_vm1, %v5630_v28  ;;  %4378 = vmatmul.msk.bf16.gmra.mxu3 %vm411_vm1, %v5630_v28 }
 0x21c   : > { %v2327_v47 = vadd.f32 %v2326_v13, %v2156_v43  ;;  %v2364_v48 = vadd.f32 %v2363_v14, %v2157_v44 }
 0x21e   : > { %v733_v49 = vpop.f32.mrf.mxu2  ;;  %v822_v52 = vpop.f32.mrf.mxu3 }
 0x21f   : > { %v734_v53 = vadd.f32 %v733_v49, %v5704_v50  ;;  %v823_v54 = vadd.f32 %v822_v52, %v5706_v51  ;;  %v557_v55 = vpop.f32.mrf.mxu0  ;;  %v646_v56 = vpop.f32.mrf.mxu1 }
 0x220   : > { %v558_v57 = vadd.f32 %v557_v55, %v5688_v40  ;;  %v647_v58 = vadd.f32 %v646_v56, %v5690_v41 }
 0x221   : > { %v2158_v59 = vmax.f32 %v734_v53, 0.0  ;;  %v2159_v60 = vmax.f32 %v823_v54, 0.0 }
 0x222   : > { %v2171_v61 = vmax.f32 %v558_v57, 0.0  ;;  %v2172_v62 = vmax.f32 %v647_v58, 0.0 }
 0x223   : > { %v2401_v63 = vadd.f32 %v2400_v45, %v2158_v59  ;;  %v2438_v0 = vadd.f32 %v2437_v46, %v2159_v60 }
 0x224   : > { %v2328_v1 = vadd.f32 %v2327_v47, %v2171_v61  ;;  %v2365_v2 = vadd.f32 %v2364_v48, %v2172_v62 }
 0x226   : > { %v735_v3 = vpop.f32.mrf.mxu2  ;;  %v824_v4 = vpop.f32.mrf.mxu3 }
 0x227   : > { %v736_v5 = vadd.f32 %v735_v3, %v5704_v50  ;;  %v825_v6 = vadd.f32 %v824_v4, %v5706_v51  ;;  %v560_v7 = vpop.f32.mrf.mxu0  ;;  %v649_v8 = vpop.f32.mrf.mxu1 }
 0x228   : > { %v561_v9 = vadd.f32 %v560_v7, %v5688_v40  ;;  %v650_v10 = vadd.f32 %v649_v8, %v5690_v41 }
 0x229   : > { %v2173_v11 = vmax.f32 %v736_v5, 0.0  ;;  %v2174_v12 = vmax.f32 %v825_v6, 0.0 }
 0x22a   : > { %v2186_v13 = vmax.f32 %v561_v9, 0.0  ;;  %v2187_v14 = vmax.f32 %v650_v10, 0.0  ;;  %4331 = vmatmul.msk.bf16.gmra.mxu0 %vm411_vm1, %v5642_v30  ;;  %4347 = vmatmul.msk.bf16.gmra.mxu1 %vm411_vm1, %v5642_v30 }
 0x22b   : > { %v2402_v15 = vadd.f32 %v2401_v63, %v2173_v11  ;;  %v2439_v16 = vadd.f32 %v2438_v0, %v2174_v12  ;;  %4363 = vmatmul.msk.bf16.gmra.mxu2 %vm411_vm1, %v5642_v30  ;;  %4379 = vmatmul.msk.bf16.gmra.mxu3 %vm411_vm1, %v5642_v30 }
 0x22c   : > { %v2329_v18 = vadd.f32 %v2328_v1, %v2186_v13  ;;  %v2366_v19 = vadd.f32 %v2365_v2, %v2187_v14 }
 0x22e   : > { %v738_v20 = vpop.f32.mrf.mxu2  ;;  %v827_v21 = vpop.f32.mrf.mxu3 }
 0x22f   : > { %v739_v37 = vadd.f32 %v738_v20, %v5704_v50  ;;  %v828_v38 = vadd.f32 %v827_v21, %v5706_v51  ;;  %v562_v39 = vpop.f32.mrf.mxu0  ;;  %v651_v42 = vpop.f32.mrf.mxu1 }
 0x230   : > { %v563_v43 = vadd.f32 %v562_v39, %v5688_v40  ;;  %v652_v44 = vadd.f32 %v651_v42, %v5690_v41 }
 0x231   : > { %v2188_v45 = vmax.f32 %v739_v37, 0.0  ;;  %v2189_v46 = vmax.f32 %v828_v38, 0.0 }
 0x232   : > { %v2201_v47 = vmax.f32 %v563_v43, 0.0  ;;  %v2202_v48 = vmax.f32 %v652_v44, 0.0 }
 0x233   : > { %v2403_v49 = vadd.f32 %v2402_v15, %v2188_v45  ;;  %v2440_v52 = vadd.f32 %v2439_v16, %v2189_v46 }
 0x234   : > { %v2330_v53 = vadd.f32 %v2329_v18, %v2201_v47  ;;  %v2367_v54 = vadd.f32 %v2366_v19, %v2202_v48 }
 0x236   : > { %v740_v55 = vpop.f32.mrf.mxu2  ;;  %v829_v56 = vpop.f32.mrf.mxu3 }
 0x237   : > { %v741_v57 = vadd.f32 %v740_v55, %v5704_v50  ;;  %v830_v58 = vadd.f32 %v829_v56, %v5706_v51  ;;  %v565_v59 = vpop.f32.mrf.mxu0  ;;  %v654_v60 = vpop.f32.mrf.mxu1 }
 0x238   : > { %v566_v61 = vadd.f32 %v565_v59, %v5688_v40  ;;  %v655_v62 = vadd.f32 %v654_v60, %v5690_v41 }
 0x239   : > { %v2203_v63 = vmax.f32 %v741_v57, 0.0  ;;  %v2204_v0 = vmax.f32 %v830_v58, 0.0 }
 0x23a   : > { %v2216_v1 = vmax.f32 %v566_v61, 0.0  ;;  %v2217_v2 = vmax.f32 %v655_v62, 0.0  ;;  %4332 = vmatmul.msk.bf16.gmra.mxu0 %vm411_vm1, %v5654_v32  ;;  %4348 = vmatmul.msk.bf16.gmra.mxu1 %vm411_vm1, %v5654_v32 }
 0x23b   : > { %v2404_v3 = vadd.f32 %v2403_v49, %v2203_v63  ;;  %v2441_v4 = vadd.f32 %v2440_v52, %v2204_v0  ;;  %4364 = vmatmul.msk.bf16.gmra.mxu2 %vm411_vm1, %v5654_v32  ;;  %4380 = vmatmul.msk.bf16.gmra.mxu3 %vm411_vm1, %v5654_v32 }
 0x23c   : > { %v2331_v5 = vadd.f32 %v2330_v53, %v2216_v1  ;;  %v2368_v6 = vadd.f32 %v2367_v54, %v2217_v2 }
 0x23e   : > { %v743_v7 = vpop.f32.mrf.mxu2  ;;  %v832_v8 = vpop.f32.mrf.mxu3 }
 0x23f   : > { %v744_v9 = vadd.f32 %v743_v7, %v5704_v50  ;;  %v833_v10 = vadd.f32 %v832_v8, %v5706_v51  ;;  %v567_v11 = vpop.f32.mrf.mxu0  ;;  %v656_v12 = vpop.f32.mrf.mxu1 }
 0x240   : > { %v568_v13 = vadd.f32 %v567_v11, %v5688_v40  ;;  %v657_v14 = vadd.f32 %v656_v12, %v5690_v41 }
 0x241   : > { %v2218_v15 = vmax.f32 %v744_v9, 0.0  ;;  %v2219_v16 = vmax.f32 %v833_v10, 0.0 }
 0x242   : > { %v2231_v18 = vmax.f32 %v568_v13, 0.0  ;;  %v2232_v19 = vmax.f32 %v657_v14, 0.0 }
 0x243   : > { %v2405_v20 = vadd.f32 %v2404_v3, %v2218_v15  ;;  %v2442_v21 = vadd.f32 %v2441_v4, %v2219_v16 }
 0x244   : > { %v2332_v37 = vadd.f32 %v2331_v5, %v2231_v18  ;;  %v2369_v38 = vadd.f32 %v2368_v6, %v2232_v19 }
 0x246   : > { %v745_v39 = vpop.f32.mrf.mxu2  ;;  %v834_v42 = vpop.f32.mrf.mxu3 }
 0x247   : > { %v746_v43 = vadd.f32 %v745_v39, %v5704_v50  ;;  %v835_v44 = vadd.f32 %v834_v42, %v5706_v51  ;;  %v570_v45 = vpop.f32.mrf.mxu0  ;;  %v659_v46 = vpop.f32.mrf.mxu1 }
 0x248   : > { %v571_v47 = vadd.f32 %v570_v45, %v5688_v40  ;;  %v660_v48 = vadd.f32 %v659_v46, %v5690_v41 }
 0x249   : > { %v2233_v49 = vmax.f32 %v746_v43, 0.0  ;;  %v2234_v52 = vmax.f32 %v835_v44, 0.0 }
 0x24a   : > { %v2246_v53 = vmax.f32 %v571_v47, 0.0  ;;  %v2247_v54 = vmax.f32 %v660_v48, 0.0  ;;  %4333 = vmatmul.msk.bf16.gmra.mxu0 %vm411_vm1, %v5666_v34  ;;  %4349 = vmatmul.msk.bf16.gmra.mxu1 %vm411_vm1, %v5666_v34 }
 0x24b   : > { %v2406_v55 = vadd.f32 %v2405_v20, %v2233_v49  ;;  %v2443_v56 = vadd.f32 %v2442_v21, %v2234_v52  ;;  %4365 = vmatmul.msk.bf16.gmra.mxu2 %vm411_vm1, %v5666_v34  ;;  %4381 = vmatmul.msk.bf16.gmra.mxu3 %vm411_vm1, %v5666_v34 }
 0x24c   : > { %v2333_v57 = vadd.f32 %v2332_v37, %v2246_v53  ;;  %v2370_v58 = vadd.f32 %v2369_v38, %v2247_v54 }
 0x24e   : > { %v748_v59 = vpop.f32.mrf.mxu2  ;;  %v837_v60 = vpop.f32.mrf.mxu3 }
 0x24f   : > { %v749_v61 = vadd.f32 %v748_v59, %v5704_v50  ;;  %v838_v62 = vadd.f32 %v837_v60, %v5706_v51  ;;  %v572_v63 = vpop.f32.mrf.mxu0  ;;  %v661_v0 = vpop.f32.mrf.mxu1 }
 0x250   : > { %v573_v1 = vadd.f32 %v572_v63, %v5688_v40  ;;  %v662_v2 = vadd.f32 %v661_v0, %v5690_v41 }
 0x251   : > { %v2248_v3 = vmax.f32 %v749_v61, 0.0  ;;  %v2249_v4 = vmax.f32 %v838_v62, 0.0 }
 0x252   : > { %v2261_v5 = vmax.f32 %v573_v1, 0.0  ;;  %v2262_v6 = vmax.f32 %v662_v2, 0.0 }
 0x253   : > { %v2407_v7 = vadd.f32 %v2406_v55, %v2248_v3  ;;  %v2444_v8 = vadd.f32 %v2443_v56, %v2249_v4 }
 0x254   : > { %v2334_v9 = vadd.f32 %v2333_v57, %v2261_v5  ;;  %v2371_v10 = vadd.f32 %v2370_v58, %v2262_v6 }
 0x256   : > { %v750_v11 = vpop.f32.mrf.mxu2  ;;  %v839_v12 = vpop.f32.mrf.mxu3 }
 0x257   : > { %v751_v13 = vadd.f32 %v750_v11, %v5704_v50  ;;  %v840_v14 = vadd.f32 %v839_v12, %v5706_v51  ;;  %v575_v15 = vpop.f32.mrf.mxu0  ;;  %v664_v16 = vpop.f32.mrf.mxu1 }
 0x258   : > { %v576_v18 = vadd.f32 %v575_v15, %v5688_v40  ;;  %v665_v19 = vadd.f32 %v664_v16, %v5690_v41 }
 0x259   : > { %v2263_v20 = vmax.f32 %v751_v13, 0.0  ;;  %v2264_v21 = vmax.f32 %v840_v14, 0.0 }
 0x25a   : > { %v2276_v37 = vmax.f32 %v576_v18, 0.0  ;;  %v2277_v38 = vmax.f32 %v665_v19, 0.0  ;;  %4334 = vmatmul.msk.bf16.gmra.mxu0 %vm411_vm1, %v5678_v36  ;;  %4350 = vmatmul.msk.bf16.gmra.mxu1 %vm411_vm1, %v5678_v36 }
 0x25b   : > { %v2408_v39 = vadd.f32 %v2407_v7, %v2263_v20  ;;  %v2445_v42 = vadd.f32 %v2444_v8, %v2264_v21  ;;  %4366 = vmatmul.msk.bf16.gmra.mxu2 %vm411_vm1, %v5678_v36  ;;  %4382 = vmatmul.msk.bf16.gmra.mxu3 %vm411_vm1, %v5678_v36 }
 0x25c   : > { %v2335_v43 = vadd.f32 %v2334_v9, %v2276_v37  ;;  %v2372_v44 = vadd.f32 %v2371_v10, %v2277_v38  ;;  %v5203_v9 = vld [vmem:[#allocation8] sm:$0xff] }
 0x25d   : > { %v5958_v10 = vperm.slane %v5203_v9, 4  ;;  %v5960_v11 = vperm.slane %v5203_v9, 5 }
 0x25e   : > { %v753_v45 = vpop.f32.mrf.mxu2  ;;  %v842_v46 = vpop.f32.mrf.mxu3 }
 0x25f   : > { %v754_v47 = vadd.f32 %v753_v45, %v5704_v50  ;;  %v843_v48 = vadd.f32 %v842_v46, %v5706_v51  ;;  %v577_v49 = vpop.f32.mrf.mxu0  ;;  %v666_v52 = vpop.f32.mrf.mxu1  ;;  %v5974_v45 = vperm.slane %v5203_v9, 7 }
 0x260   : > { %v578_v53 = vadd.f32 %v577_v49, %v5688_v40  ;;  %v667_v54 = vadd.f32 %v666_v52, %v5690_v41 }
 0x261   : > { %v2278_v55 = vmax.f32 %v754_v47, 0.0  ;;  %v2279_v56 = vmax.f32 %v843_v48, 0.0 }
 0x262   : > { %v2291_v57 = vmax.f32 %v578_v53, 0.0  ;;  %v2292_v58 = vmax.f32 %v667_v54, 0.0 }
 0x263   : > { %v2409_v59 = vadd.f32 %v2408_v39, %v2278_v55  ;;  %v2446_v60 = vadd.f32 %v2445_v42, %v2279_v56 }
 0x264   : > { %v2336_v61 = vadd.f32 %v2335_v43, %v2291_v57  ;;  %v2373_v62 = vadd.f32 %v2372_v44, %v2292_v58  ;;  %v5972_v44 = vperm.slane %v5203_v9, 6 }
 0x266   : > { %v2337_v63 = vrot.slane %v2336_v61, 4  ;;  %v2374_v0 = vrot.slane %v2373_v62, 4  ;;  %v755_v1 = vpop.f32.mrf.mxu2  ;;  %v844_v2 = vpop.f32.mrf.mxu3 }
 0x267   : > { %v756_v3 = vadd.f32 %v755_v1, %v5704_v50  ;;  %v845_v4 = vadd.f32 %v844_v2, %v5706_v51  ;;  %v856_v5 = vpop.f32.mrf.mxu0  ;;  %v945_v40 = vpop.f32.mrf.mxu1 }
 0x268   : > { %v2338_v6 = vadd.f32 %v2337_v63, %v2336_v61  ;;  %v2375_v41 = vadd.f32 %v2374_v0, %v2373_v62  ;;  %v857_v19 = vadd.f32 %v856_v5, %v5958_v10  ;;  %v946_v20 = vadd.f32 %v945_v40, %v5960_v11 }
 0x269   : > { %v2293_v7 = vmax.f32 %v756_v3, 0.0  ;;  %v2294_v8 = vmax.f32 %v845_v4, 0.0 }
 0x26a   : > { %v2339_v12 = vrot.slane %v2338_v6, 2  ;;  %v2376_v13 = vrot.slane %v2375_v41, 2  ;;  %4335 = vmatmul.msk.bf16.gmra.mxu0 %vm411_vm1, %v5604_v23  ;;  %4351 = vmatmul.msk.bf16.gmra.mxu1 %vm411_vm1, %v5604_v23  ;;  %v1830_v55 = vmax.f32 %v857_v19, 0.0  ;;  %v1831_v56 = vmax.f32 %v946_v20, 0.0 }
 0x26b   : > { %v2410_v50 = vadd.f32 %v2409_v59, %v2293_v7  ;;  %v2447_v51 = vadd.f32 %v2446_v60, %v2294_v8  ;;  %4367 = vmatmul.msk.bf16.gmra.mxu2 %vm411_vm1, %v5604_v23  ;;  %4383 = vmatmul.msk.bf16.gmra.mxu3 %vm411_vm1, %v5604_v23 }
 0x26c   : > { %v2340_v14 = vadd.f32 %v2339_v12, %v2338_v6  ;;  %v2377_v15 = vadd.f32 %v2376_v13, %v2375_v41 }
 0x26d   : > { %v2411_v16 = vrot.slane %v2410_v50, 4  ;;  %v2448_v18 = vrot.slane %v2447_v51, 4 }
 0x26e   : > { %v2341_v21 = vrot.slane %v2340_v14, 1  ;;  %v2378_v37 = vrot.slane %v2377_v15, 1  ;;  %v1034_v38 = vpop.f32.mrf.mxu2  ;;  %v1123_v39 = vpop.f32.mrf.mxu3 }
 0x26f   : > { %v2412_v42 = vadd.f32 %v2411_v16, %v2410_v50  ;;  %v2449_v43 = vadd.f32 %v2448_v18, %v2447_v51  ;;  %v858_v46 = vpop.f32.mrf.mxu0  ;;  %v947_v47 = vpop.f32.mrf.mxu1  ;;  %v1035_v63 = vadd.f32 %v1034_v38, %v5972_v44  ;;  %v1124_v1 = vadd.f32 %v1123_v39, %v5974_v45 }
 0x270   : > { %v2379_v48 = vadd.f32 %v2378_v37, %v2377_v15  ;;  %v859_v49 = vadd.f32 %v858_v46, %v5958_v10  ;;  %v948_v52 = vadd.f32 %v947_v47, %v5960_v11  ;;  %v2342_v57 = vadd.f32 %v2341_v21, %v2340_v14 }
 0x271   : > { %v2413_v53 = vrot.slane %v2412_v42, 2  ;;  %v2450_v54 = vrot.slane %v2449_v43, 2  ;;  %v1832_v50 = vmax.f32 %v1035_v63, 0.0  ;;  %v1833_v51 = vmax.f32 %v1124_v1, 0.0 }
 0x272   : > { %v2878_v58 = vrot.slane %v2379_v48, 7  ;;  %v1845_v59 = vmax.f32 %v859_v49, 0.0  ;;  %v1846_v60 = vmax.f32 %v948_v52, 0.0 }
 0x273   : > { %v2414_v61 = vadd.f32 %v2413_v53, %v2412_v42  ;;  %v2451_v62 = vadd.f32 %v2450_v54, %v2449_v43 }
 0x274   : > { %v2892_v0 = vsel %vm2891_vm2, %v2342_v57, %v2878_v58  ;;  %v2454_v2 = vadd.f32 %v1845_v59, %v1830_v55  ;;  %v2491_v3 = vadd.f32 %v1846_v60, %v1831_v56 }
 0x275   : > { %v2415_v4 = vrot.slane %v2414_v61, 1  ;;  %v2452_v5 = vrot.slane %v2451_v62, 1 }
 0x276   : > { %v1036_v40 = vpop.f32.mrf.mxu2  ;;  %v1125_v6 = vpop.f32.mrf.mxu3 }
 0x277   : > { %v2416_v41 = vadd.f32 %v2415_v4, %v2414_v61  ;;  %v2453_v7 = vadd.f32 %v2452_v5, %v2451_v62  ;;  %v1037_v8 = vadd.f32 %v1036_v40, %v5972_v44  ;;  %v1126_v9 = vadd.f32 %v1125_v6, %v5974_v45  ;;  %v861_v12 = vpop.f32.mrf.mxu0  ;;  %v950_v13 = vpop.f32.mrf.mxu1 }
 0x278   : > { %v862_v14 = vadd.f32 %v861_v12, %v5958_v10  ;;  %v951_v15 = vadd.f32 %v950_v13, %v5960_v11 }
 0x279   : > { %v2879_v16 = vrot.slane %v2416_v41, 6  ;;  %v2880_v18 = vrot.slane %v2453_v7, 5  ;;  %v1847_v19 = vmax.f32 %v1037_v8, 0.0  ;;  %v1848_v20 = vmax.f32 %v1126_v9, 0.0 }
 0x27a   : > { %v1860_v21 = vmax.f32 %v862_v14, 0.0  ;;  %v1861_v37 = vmax.f32 %v951_v15, 0.0  ;;  %4336 = vmatmul.msk.bf16.gmra.mxu0 %vm411_vm1, %v5616_v25  ;;  %4352 = vmatmul.msk.bf16.gmra.mxu1 %vm411_vm1, %v5616_v25 }
 0x27b   : > { %v2894_v38 = vsel %vm2893_vm3, %v2879_v16, %v2880_v18  ;;  %v2528_v39 = vadd.f32 %v1847_v19, %v1832_v50  ;;  %v2565_v42 = vadd.f32 %v1848_v20, %v1833_v51  ;;  %4368 = vmatmul.msk.bf16.gmra.mxu2 %vm411_vm1, %v5616_v25  ;;  %4384 = vmatmul.msk.bf16.gmra.mxu3 %vm411_vm1, %v5616_v25 }
 0x27c   : > { %v5995_v43 = vsel %vm460_vm0, %v2892_v0, %v2894_v38  ;;  %v2455_v46 = vadd.f32 %v2454_v2, %v1860_v21  ;;  %v2492_v47 = vadd.f32 %v2491_v3, %v1861_v37 }
 0x27e   : > { %v1039_v48 = vpop.f32.mrf.mxu2  ;;  %v1128_v49 = vpop.f32.mrf.mxu3 }
 0x27f   : > { %v1040_v52 = vadd.f32 %v1039_v48, %v5972_v44  ;;  %v1129_v53 = vadd.f32 %v1128_v49, %v5974_v45  ;;  %v863_v54 = vpop.f32.mrf.mxu0  ;;  %v952_v55 = vpop.f32.mrf.mxu1 }
 0x280   : > { %v864_v56 = vadd.f32 %v863_v54, %v5958_v10  ;;  %v953_v57 = vadd.f32 %v952_v55, %v5960_v11 }
 0x281   : > { %v1862_v58 = vmax.f32 %v1040_v52, 0.0  ;;  %v1863_v59 = vmax.f32 %v1129_v53, 0.0 }
 0x282   : > { %v1875_v60 = vmax.f32 %v864_v56, 0.0  ;;  %v1876_v61 = vmax.f32 %v953_v57, 0.0 }
 0x283   : > { %v2529_v62 = vadd.f32 %v2528_v39, %v1862_v58  ;;  %v2566_v63 = vadd.f32 %v2565_v42, %v1863_v59 }
 0x284   : > { %v2456_v0 = vadd.f32 %v2455_v46, %v1875_v60  ;;  %v2493_v1 = vadd.f32 %v2492_v47, %v1876_v61 }
 0x286   : > { %v1041_v2 = vpop.f32.mrf.mxu2  ;;  %v1130_v3 = vpop.f32.mrf.mxu3 }
 0x287   : > { %v1042_v4 = vadd.f32 %v1041_v2, %v5972_v44  ;;  %v1131_v5 = vadd.f32 %v1130_v3, %v5974_v45  ;;  %v866_v40 = vpop.f32.mrf.mxu0  ;;  %v955_v6 = vpop.f32.mrf.mxu1 }
 0x288   : > { %v867_v41 = vadd.f32 %v866_v40, %v5958_v10  ;;  %v956_v7 = vadd.f32 %v955_v6, %v5960_v11 }
 0x289   : > { %v1877_v8 = vmax.f32 %v1042_v4, 0.0  ;;  %v1878_v9 = vmax.f32 %v1131_v5, 0.0 }
 0x28a   : > { %v1890_v12 = vmax.f32 %v867_v41, 0.0  ;;  %v1891_v13 = vmax.f32 %v956_v7, 0.0  ;;  %4337 = vmatmul.msk.bf16.gmra.mxu0 %vm411_vm1, %v5628_v27  ;;  %4353 = vmatmul.msk.bf16.gmra.mxu1 %vm411_vm1, %v5628_v27 }
 0x28b   : > { %v2530_v50 = vadd.f32 %v2529_v62, %v1877_v8  ;;  %v2567_v51 = vadd.f32 %v2566_v63, %v1878_v9  ;;  %4369 = vmatmul.msk.bf16.gmra.mxu2 %vm411_vm1, %v5628_v27  ;;  %4385 = vmatmul.msk.bf16.gmra.mxu3 %vm411_vm1, %v5628_v27 }
 0x28c   : > { %v2457_v14 = vadd.f32 %v2456_v0, %v1890_v12  ;;  %v2494_v15 = vadd.f32 %v2493_v1, %v1891_v13 }
 0x28e   : > { %v1044_v16 = vpop.f32.mrf.mxu2  ;;  %v1133_v18 = vpop.f32.mrf.mxu3 }
 0x28f   : > { %v1045_v19 = vadd.f32 %v1044_v16, %v5972_v44  ;;  %v1134_v20 = vadd.f32 %v1133_v18, %v5974_v45  ;;  %v868_v21 = vpop.f32.mrf.mxu0  ;;  %v957_v37 = vpop.f32.mrf.mxu1 }
 0x290   : > { %v869_v38 = vadd.f32 %v868_v21, %v5958_v10  ;;  %v958_v39 = vadd.f32 %v957_v37, %v5960_v11 }
 0x291   : > { %v1892_v42 = vmax.f32 %v1045_v19, 0.0  ;;  %v1893_v46 = vmax.f32 %v1134_v20, 0.0 }
 0x292   : > { %v1905_v47 = vmax.f32 %v869_v38, 0.0  ;;  %v1906_v48 = vmax.f32 %v958_v39, 0.0 }
 0x293   : > { %v2531_v49 = vadd.f32 %v2530_v50, %v1892_v42  ;;  %v2568_v52 = vadd.f32 %v2567_v51, %v1893_v46 }
 0x294   : > { %v2458_v53 = vadd.f32 %v2457_v14, %v1905_v47  ;;  %v2495_v54 = vadd.f32 %v2494_v15, %v1906_v48 }
 0x296   : > { %v1046_v55 = vpop.f32.mrf.mxu2  ;;  %v1135_v56 = vpop.f32.mrf.mxu3 }
 0x297   : > { %v1047_v57 = vadd.f32 %v1046_v55, %v5972_v44  ;;  %v1136_v58 = vadd.f32 %v1135_v56, %v5974_v45  ;;  %v871_v59 = vpop.f32.mrf.mxu0  ;;  %v960_v60 = vpop.f32.mrf.mxu1 }
 0x298   : > { %v872_v61 = vadd.f32 %v871_v59, %v5958_v10  ;;  %v961_v62 = vadd.f32 %v960_v60, %v5960_v11 }
 0x299   : > { %v1907_v63 = vmax.f32 %v1047_v57, 0.0  ;;  %v1908_v0 = vmax.f32 %v1136_v58, 0.0 }
 0x29a   : > { %v1920_v1 = vmax.f32 %v872_v61, 0.0  ;;  %v1921_v2 = vmax.f32 %v961_v62, 0.0  ;;  %4338 = vmatmul.msk.bf16.gmra.mxu0 %vm411_vm1, %v5640_v29  ;;  %4354 = vmatmul.msk.bf16.gmra.mxu1 %vm411_vm1, %v5640_v29 }
 0x29b   : > { %v2532_v3 = vadd.f32 %v2531_v49, %v1907_v63  ;;  %v2569_v4 = vadd.f32 %v2568_v52, %v1908_v0  ;;  %4370 = vmatmul.msk.bf16.gmra.mxu2 %vm411_vm1, %v5640_v29  ;;  %4386 = vmatmul.msk.bf16.gmra.mxu3 %vm411_vm1, %v5640_v29 }
 0x29c   : > { %v2459_v5 = vadd.f32 %v2458_v53, %v1920_v1  ;;  %v2496_v40 = vadd.f32 %v2495_v54, %v1921_v2 }
 0x29e   : > { %v1049_v6 = vpop.f32.mrf.mxu2  ;;  %v1138_v41 = vpop.f32.mrf.mxu3 }
 0x29f   : > { %v1050_v7 = vadd.f32 %v1049_v6, %v5972_v44  ;;  %v1139_v8 = vadd.f32 %v1138_v41, %v5974_v45  ;;  %v873_v9 = vpop.f32.mrf.mxu0  ;;  %v962_v12 = vpop.f32.mrf.mxu1 }
 0x2a0   : > { %v874_v13 = vadd.f32 %v873_v9, %v5958_v10  ;;  %v963_v50 = vadd.f32 %v962_v12, %v5960_v11 }
 0x2a1   : > { %v1922_v51 = vmax.f32 %v1050_v7, 0.0  ;;  %v1923_v14 = vmax.f32 %v1139_v8, 0.0 }
 0x2a2   : > { %v1935_v15 = vmax.f32 %v874_v13, 0.0  ;;  %v1936_v16 = vmax.f32 %v963_v50, 0.0 }
 0x2a3   : > { %v2533_v18 = vadd.f32 %v2532_v3, %v1922_v51  ;;  %v2570_v19 = vadd.f32 %v2569_v4, %v1923_v14 }
 0x2a4   : > { %v2460_v20 = vadd.f32 %v2459_v5, %v1935_v15  ;;  %v2497_v21 = vadd.f32 %v2496_v40, %v1936_v16 }
 0x2a6   : > { %v1051_v37 = vpop.f32.mrf.mxu2  ;;  %v1140_v38 = vpop.f32.mrf.mxu3 }
 0x2a7   : > { %v1052_v39 = vadd.f32 %v1051_v37, %v5972_v44  ;;  %v1141_v42 = vadd.f32 %v1140_v38, %v5974_v45  ;;  %v876_v46 = vpop.f32.mrf.mxu0  ;;  %v965_v47 = vpop.f32.mrf.mxu1 }
 0x2a8   : > { %v877_v48 = vadd.f32 %v876_v46, %v5958_v10  ;;  %v966_v49 = vadd.f32 %v965_v47, %v5960_v11 }
 0x2a9   : > { %v1937_v52 = vmax.f32 %v1052_v39, 0.0  ;;  %v1938_v53 = vmax.f32 %v1141_v42, 0.0 }
 0x2aa   : > { %v1950_v54 = vmax.f32 %v877_v48, 0.0  ;;  %v1951_v55 = vmax.f32 %v966_v49, 0.0  ;;  %4339 = vmatmul.msk.bf16.gmra.mxu0 %vm411_vm1, %v5652_v31  ;;  %4355 = vmatmul.msk.bf16.gmra.mxu1 %vm411_vm1, %v5652_v31 }
 0x2ab   : > { %v2534_v56 = vadd.f32 %v2533_v18, %v1937_v52  ;;  %v2571_v57 = vadd.f32 %v2570_v19, %v1938_v53  ;;  %4371 = vmatmul.msk.bf16.gmra.mxu2 %vm411_vm1, %v5652_v31  ;;  %4387 = vmatmul.msk.bf16.gmra.mxu3 %vm411_vm1, %v5652_v31 }
 0x2ac   : > { %v2461_v58 = vadd.f32 %v2460_v20, %v1950_v54  ;;  %v2498_v59 = vadd.f32 %v2497_v21, %v1951_v55 }
 0x2ae   : > { %v1054_v60 = vpop.f32.mrf.mxu2  ;;  %v1143_v61 = vpop.f32.mrf.mxu3 }
 0x2af   : > { %v1055_v62 = vadd.f32 %v1054_v60, %v5972_v44  ;;  %v1144_v63 = vadd.f32 %v1143_v61, %v5974_v45  ;;  %v878_v0 = vpop.f32.mrf.mxu0  ;;  %v967_v1 = vpop.f32.mrf.mxu1 }
 0x2b0   : > { %v879_v2 = vadd.f32 %v878_v0, %v5958_v10  ;;  %v968_v3 = vadd.f32 %v967_v1, %v5960_v11 }
 0x2b1   : > { %v1952_v4 = vmax.f32 %v1055_v62, 0.0  ;;  %v1953_v5 = vmax.f32 %v1144_v63, 0.0 }
 0x2b2   : > { %v1965_v40 = vmax.f32 %v879_v2, 0.0  ;;  %v1966_v6 = vmax.f32 %v968_v3, 0.0  ;;  %v407_v3 = vld.sshfl [vmem:[#allocation1 + $0x18] sm:$0xff pattern:$0x73625140] }
 0x2b3   : > { %v2535_v41 = vadd.f32 %v2534_v56, %v1952_v4  ;;  %v2572_v7 = vadd.f32 %v2571_v57, %v1953_v5 }
 0x2b4   : > { %v2462_v8 = vadd.f32 %v2461_v58, %v1965_v40  ;;  %v2499_v9 = vadd.f32 %v2498_v59, %v1966_v6 }
 0x2b6   : > { %v1056_v12 = vpop.f32.mrf.mxu2  ;;  %v1145_v13 = vpop.f32.mrf.mxu3 }
 0x2b7   : > { %v1057_v50 = vadd.f32 %v1056_v12, %v5972_v44  ;;  %v1146_v51 = vadd.f32 %v1145_v13, %v5974_v45  ;;  %v881_v14 = vpop.f32.mrf.mxu0  ;;  %v970_v15 = vpop.f32.mrf.mxu1 }
 0x2b8   : > { %v882_v16 = vadd.f32 %v881_v14, %v5958_v10  ;;  %v971_v18 = vadd.f32 %v970_v15, %v5960_v11 }
 0x2b9   : > { %v1967_v19 = vmax.f32 %v1057_v50, 0.0  ;;  %v1968_v20 = vmax.f32 %v1146_v51, 0.0 }
 0x2ba   : > { %v1980_v21 = vmax.f32 %v882_v16, 0.0  ;;  %v1981_v37 = vmax.f32 %v971_v18, 0.0  ;;  %4340 = vmatmul.msk.bf16.gmra.mxu0 %vm411_vm1, %v5664_v33  ;;  %4356 = vmatmul.msk.bf16.gmra.mxu1 %vm411_vm1, %v5664_v33  ;;  %v410_v18 = vld.sshfl [vmem:[#allocation1 + $0x30] sm:$0xff pattern:$0x73625140] }
 0x2bb   : > { %v2536_v38 = vadd.f32 %v2535_v41, %v1967_v19  ;;  %v2573_v39 = vadd.f32 %v2572_v7, %v1968_v20  ;;  %4372 = vmatmul.msk.bf16.gmra.mxu2 %vm411_vm1, %v5664_v33  ;;  %4388 = vmatmul.msk.bf16.gmra.mxu3 %vm411_vm1, %v5664_v33  ;;  %v483_v41 = vsel %vm460_vm0, %v407_v3, 0  ;;  %v489_v19 = vsel %vm460_vm0, %v410_v18, 0 }
 0x2bc   : > { %v2463_v42 = vadd.f32 %v2462_v8, %v1980_v21  ;;  %v2500_v46 = vadd.f32 %v2499_v9, %v1981_v37  ;;  %1477 = vmatpush.bf16.msra.mxu3 %v483_v41  ;;  %1744 = vmatpush.bf16.msrb.mxu2 %v489_v19 }
 0x2be   : > { %v1059_v47 = vpop.f32.mrf.mxu2  ;;  %v1148_v48 = vpop.f32.mrf.mxu3 }
 0x2bf   : > { %v1060_v49 = vadd.f32 %v1059_v47, %v5972_v44  ;;  %v1149_v52 = vadd.f32 %v1148_v48, %v5974_v45  ;;  %v883_v53 = vpop.f32.mrf.mxu0  ;;  %v972_v54 = vpop.f32.mrf.mxu1 }
 0x2c0   : > { %v884_v55 = vadd.f32 %v883_v53, %v5958_v10  ;;  %v973_v56 = vadd.f32 %v972_v54, %v5960_v11 }
 0x2c1   : > { %v1982_v57 = vmax.f32 %v1060_v49, 0.0  ;;  %v1983_v58 = vmax.f32 %v1149_v52, 0.0 }
 0x2c2   : > { %v1995_v59 = vmax.f32 %v884_v55, 0.0  ;;  %v1996_v60 = vmax.f32 %v973_v56, 0.0 }
 0x2c3   : > { %v2537_v61 = vadd.f32 %v2536_v38, %v1982_v57  ;;  %v2574_v62 = vadd.f32 %v2573_v39, %v1983_v58  ;;  %v408_v58 = vld.sshfl [vmem:[#allocation1 + $0x20] sm:$0xff pattern:$0x73625140] }
 0x2c4   : > { %v2464_v63 = vadd.f32 %v2463_v42, %v1995_v59  ;;  %v2501_v0 = vadd.f32 %v2500_v46, %v1996_v60  ;;  %v409_v59 = vld.sshfl [vmem:[#allocation1 + $0x28] sm:$0xff pattern:$0x73625140]  ;;  %v485_v60 = vsel %vm460_vm0, %v408_v58, 0 }
 0x2c5   : > { %1566 = vmatpush.bf16.msrb.mxu0 %v485_v60 }
 0x2c6   : > { %v1061_v1 = vpop.f32.mrf.mxu2  ;;  %v1150_v2 = vpop.f32.mrf.mxu3 }
 0x2c7   : > { %v1062_v4 = vadd.f32 %v1061_v1, %v5972_v44  ;;  %v1151_v5 = vadd.f32 %v1150_v2, %v5974_v45  ;;  %v886_v40 = vpop.f32.mrf.mxu0  ;;  %v975_v6 = vpop.f32.mrf.mxu1 }
 0x2c8   : > { %v887_v7 = vadd.f32 %v886_v40, %v5958_v10  ;;  %v976_v8 = vadd.f32 %v975_v6, %v5960_v11 }
 0x2c9   : > { %v1997_v9 = vmax.f32 %v1062_v4, 0.0  ;;  %v1998_v12 = vmax.f32 %v1151_v5, 0.0 }
 0x2ca   : > { %v2010_v13 = vmax.f32 %v887_v7, 0.0  ;;  %v2011_v50 = vmax.f32 %v976_v8, 0.0  ;;  %4341 = vmatmul.msk.bf16.gmra.mxu0 %vm411_vm1, %v5676_v35  ;;  %4357 = vmatmul.msk.bf16.gmra.mxu1 %vm411_vm1, %v5676_v35 }
 0x2cb   : > { %v2538_v51 = vadd.f32 %v2537_v61, %v1997_v9  ;;  %v2575_v14 = vadd.f32 %v2574_v62, %v1998_v12  ;;  %4373 = vmatmul.msk.bf16.gmra.mxu2 %vm411_vm1, %v5676_v35  ;;  %4389 = vmatmul.msk.bf16.gmra.mxu3 %vm411_vm1, %v5676_v35  ;;  %v487_v61 = vsel %vm460_vm0, %v409_v59, 0 }
 0x2cc   : > { %v2465_v15 = vadd.f32 %v2464_v63, %v2010_v13  ;;  %v2502_v16 = vadd.f32 %v2501_v0, %v2011_v50  ;;  %1655 = vmatpush.bf16.msrb.mxu1 %v487_v61 }
 0x2ce   : > { %v1064_v20 = vpop.f32.mrf.mxu2  ;;  %v1153_v21 = vpop.f32.mrf.mxu3 }
 0x2cf   : > { %v1065_v37 = vadd.f32 %v1064_v20, %v5972_v44  ;;  %v1154_v38 = vadd.f32 %v1153_v21, %v5974_v45  ;;  %v888_v39 = vpop.f32.mrf.mxu0  ;;  %v977_v42 = vpop.f32.mrf.mxu1 }
 0x2d0   : > { %v889_v46 = vadd.f32 %v888_v39, %v5958_v10  ;;  %v978_v47 = vadd.f32 %v977_v42, %v5960_v11 }
 0x2d1   : > { %v2012_v48 = vmax.f32 %v1065_v37, 0.0  ;;  %v2013_v49 = vmax.f32 %v1154_v38, 0.0 }
 0x2d2   : > { %v2025_v52 = vmax.f32 %v889_v46, 0.0  ;;  %v2026_v53 = vmax.f32 %v978_v47, 0.0 }
 0x2d3   : > { %v2539_v54 = vadd.f32 %v2538_v51, %v2012_v48  ;;  %v2576_v55 = vadd.f32 %v2575_v14, %v2013_v49 }
 0x2d4   : > { %v2466_v56 = vadd.f32 %v2465_v15, %v2025_v52  ;;  %v2503_v57 = vadd.f32 %v2502_v16, %v2026_v53 }
 0x2d6   : > { %v1066_v62 = vpop.f32.mrf.mxu2  ;;  %v1155_v63 = vpop.f32.mrf.mxu3 }
 0x2d7   : > { %v1067_v0 = vadd.f32 %v1066_v62, %v5972_v44  ;;  %v1156_v1 = vadd.f32 %v1155_v63, %v5974_v45  ;;  %v891_v2 = vpop.f32.mrf.mxu0  ;;  %v980_v3 = vpop.f32.mrf.mxu1 }
 0x2d8   : > { %v892_v4 = vadd.f32 %v891_v2, %v5958_v10  ;;  %v981_v5 = vadd.f32 %v980_v3, %v5960_v11 }
 0x2d9   : > { %v2027_v40 = vmax.f32 %v1067_v0, 0.0  ;;  %v2028_v6 = vmax.f32 %v1156_v1, 0.0 }
 0x2da   : > { %v2040_v41 = vmax.f32 %v892_v4, 0.0  ;;  %v2041_v7 = vmax.f32 %v981_v5, 0.0  ;;  %4342 = vmatmul.msk.bf16.gmra.mxu0 %vm411_vm1, %v5808_v17  ;;  %4358 = vmatmul.msk.bf16.gmra.mxu1 %vm411_vm1, %v5808_v17 }
 0x2db   : > { %v2540_v8 = vadd.f32 %v2539_v54, %v2027_v40  ;;  %v2577_v9 = vadd.f32 %v2576_v55, %v2028_v6  ;;  %4374 = vmatmul.msk.bf16.gmra.mxu2 %vm411_vm1, %v5808_v17  ;;  %4390 = vmatmul.msk.bf16.gmra.mxu3 %vm411_vm1, %v5808_v17 }
 0x2dc   : > { %v2467_v12 = vadd.f32 %v2466_v56, %v2040_v41  ;;  %v2504_v13 = vadd.f32 %v2503_v57, %v2041_v7 }
 0x2de   : > { %v1069_v50 = vpop.f32.mrf.mxu2  ;;  %v1158_v51 = vpop.f32.mrf.mxu3 }
 0x2df   : > { %v1070_v14 = vadd.f32 %v1069_v50, %v5972_v44  ;;  %v1159_v15 = vadd.f32 %v1158_v51, %v5974_v45  ;;  %v893_v16 = vpop.f32.mrf.mxu0  ;;  %v982_v18 = vpop.f32.mrf.mxu1 }
 0x2e0   : > { %v894_v19 = vadd.f32 %v893_v16, %v5958_v10  ;;  %v983_v20 = vadd.f32 %v982_v18, %v5960_v11 }
 0x2e1   : > { %v2042_v21 = vmax.f32 %v1070_v14, 0.0  ;;  %v2043_v37 = vmax.f32 %v1159_v15, 0.0 }
 0x2e2   : > { %v2055_v38 = vmax.f32 %v894_v19, 0.0  ;;  %v2056_v39 = vmax.f32 %v983_v20, 0.0 }
 0x2e3   : > { %v2541_v42 = vadd.f32 %v2540_v8, %v2042_v21  ;;  %v2578_v46 = vadd.f32 %v2577_v9, %v2043_v37 }
 0x2e4   : > { %v2468_v47 = vadd.f32 %v2467_v12, %v2055_v38  ;;  %v2505_v48 = vadd.f32 %v2504_v13, %v2056_v39 }
 0x2e6   : > { %v1071_v49 = vpop.f32.mrf.mxu2  ;;  %v1160_v52 = vpop.f32.mrf.mxu3 }
 0x2e7   : > { %v1072_v53 = vadd.f32 %v1071_v49, %v5972_v44  ;;  %v1161_v54 = vadd.f32 %v1160_v52, %v5974_v45  ;;  %v896_v55 = vpop.f32.mrf.mxu0  ;;  %v985_v56 = vpop.f32.mrf.mxu1 }
 0x2e8   : > { %v897_v57 = vadd.f32 %v896_v55, %v5958_v10  ;;  %v986_v58 = vadd.f32 %v985_v56, %v5960_v11 }
 0x2e9   : > { %v2057_v59 = vmax.f32 %v1072_v53, 0.0  ;;  %v2058_v60 = vmax.f32 %v1161_v54, 0.0 }
 0x2ea   : > { %v2070_v61 = vmax.f32 %v897_v57, 0.0  ;;  %v2071_v62 = vmax.f32 %v986_v58, 0.0  ;;  %4391 = vmatmul.msk.bf16.vlgmr.msra.gmra.mxu0 %vm411_vm1, %v5594_v22  ;;  %4407 = vmatmul.msk.bf16.vlgmr.msra.gmra.mxu1 %vm411_vm1, %v5594_v22 }
 0x2eb   : > { %v2542_v63 = vadd.f32 %v2541_v42, %v2057_v59  ;;  %v2579_v0 = vadd.f32 %v2578_v46, %v2058_v60  ;;  %4423 = vmatmul.msk.bf16.vlgmr.msra.gmra.mxu2 %vm411_vm1, %v5594_v22  ;;  %4439 = vmatmul.msk.bf16.vlgmr.msra.gmra.mxu3 %vm411_vm1, %v5594_v22 }
 0x2ec   : > { %v2469_v1 = vadd.f32 %v2468_v47, %v2070_v61  ;;  %v2506_v2 = vadd.f32 %v2505_v48, %v2071_v62 }
 0x2ee   : > { %v1074_v3 = vpop.f32.mrf.mxu2  ;;  %v1163_v4 = vpop.f32.mrf.mxu3 }
 0x2ef   : > { %v1075_v5 = vadd.f32 %v1074_v3, %v5972_v44  ;;  %v1164_v40 = vadd.f32 %v1163_v4, %v5974_v45  ;;  %v898_v6 = vpop.f32.mrf.mxu0  ;;  %v987_v41 = vpop.f32.mrf.mxu1 }
 0x2f0   : > { %v899_v7 = vadd.f32 %v898_v6, %v5958_v10  ;;  %v988_v8 = vadd.f32 %v987_v41, %v5960_v11 }
 0x2f1   : > { %v2072_v9 = vmax.f32 %v1075_v5, 0.0  ;;  %v2073_v12 = vmax.f32 %v1164_v40, 0.0 }
 0x2f2   : > { %v2085_v13 = vmax.f32 %v899_v7, 0.0  ;;  %v2086_v50 = vmax.f32 %v988_v8, 0.0 }
 0x2f3   : > { %v2543_v51 = vadd.f32 %v2542_v63, %v2072_v9  ;;  %v2580_v14 = vadd.f32 %v2579_v0, %v2073_v12 }
 0x2f4   : > { %v2470_v15 = vadd.f32 %v2469_v1, %v2085_v13  ;;  %v2507_v16 = vadd.f32 %v2506_v2, %v2086_v50 }
 0x2f6   : > { %v1076_v18 = vpop.f32.mrf.mxu2  ;;  %v1165_v19 = vpop.f32.mrf.mxu3 }
 0x2f7   : > { %v1077_v20 = vadd.f32 %v1076_v18, %v5972_v44  ;;  %v1166_v21 = vadd.f32 %v1165_v19, %v5974_v45  ;;  %v901_v37 = vpop.f32.mrf.mxu0  ;;  %v990_v38 = vpop.f32.mrf.mxu1 }
 0x2f8   : > { %v902_v39 = vadd.f32 %v901_v37, %v5958_v10  ;;  %v991_v42 = vadd.f32 %v990_v38, %v5960_v11 }
 0x2f9   : > { %v2087_v46 = vmax.f32 %v1077_v20, 0.0  ;;  %v2088_v47 = vmax.f32 %v1166_v21, 0.0 }
 0x2fa   : > { %v2100_v48 = vmax.f32 %v902_v39, 0.0  ;;  %v2101_v49 = vmax.f32 %v991_v42, 0.0  ;;  %4392 = vmatmul.msk.bf16.gmra.mxu0 %vm411_vm1, %v5606_v24  ;;  %4408 = vmatmul.msk.bf16.gmra.mxu1 %vm411_vm1, %v5606_v24 }
 0x2fb   : > { %v2544_v52 = vadd.f32 %v2543_v51, %v2087_v46  ;;  %v2581_v53 = vadd.f32 %v2580_v14, %v2088_v47  ;;  %4424 = vmatmul.msk.bf16.gmra.mxu2 %vm411_vm1, %v5606_v24  ;;  %4440 = vmatmul.msk.bf16.gmra.mxu3 %vm411_vm1, %v5606_v24 }
 0x2fc   : > { %v2471_v54 = vadd.f32 %v2470_v15, %v2100_v48  ;;  %v2508_v55 = vadd.f32 %v2507_v16, %v2101_v49 }
 0x2fe   : > { %v1079_v56 = vpop.f32.mrf.mxu2  ;;  %v1168_v57 = vpop.f32.mrf.mxu3 }
 0x2ff   : > { %v1080_v58 = vadd.f32 %v1079_v56, %v5972_v44  ;;  %v1169_v59 = vadd.f32 %v1168_v57, %v5974_v45  ;;  %v903_v60 = vpop.f32.mrf.mxu0  ;;  %v992_v61 = vpop.f32.mrf.mxu1 }
 0x300   : > { %v904_v62 = vadd.f32 %v903_v60, %v5958_v10  ;;  %v993_v63 = vadd.f32 %v992_v61, %v5960_v11 }
 0x301   : > { %v2102_v0 = vmax.f32 %v1080_v58, 0.0  ;;  %v2103_v1 = vmax.f32 %v1169_v59, 0.0 }
 0x302   : > { %v2115_v2 = vmax.f32 %v904_v62, 0.0  ;;  %v2116_v3 = vmax.f32 %v993_v63, 0.0 }
 0x303   : > { %v2545_v4 = vadd.f32 %v2544_v52, %v2102_v0  ;;  %v2582_v5 = vadd.f32 %v2581_v53, %v2103_v1 }
 0x304   : > { %v2472_v40 = vadd.f32 %v2471_v54, %v2115_v2  ;;  %v2509_v6 = vadd.f32 %v2508_v55, %v2116_v3 }
 0x306   : > { %v1081_v41 = vpop.f32.mrf.mxu2  ;;  %v1170_v7 = vpop.f32.mrf.mxu3 }
 0x307   : > { %v1082_v8 = vadd.f32 %v1081_v41, %v5972_v44  ;;  %v1171_v9 = vadd.f32 %v1170_v7, %v5974_v45  ;;  %v906_v12 = vpop.f32.mrf.mxu0  ;;  %v995_v13 = vpop.f32.mrf.mxu1 }
 0x308   : > { %v907_v50 = vadd.f32 %v906_v12, %v5958_v10  ;;  %v996_v51 = vadd.f32 %v995_v13, %v5960_v11 }
 0x309   : > { %v2117_v14 = vmax.f32 %v1082_v8, 0.0  ;;  %v2118_v15 = vmax.f32 %v1171_v9, 0.0 }
 0x30a   : > { %v2130_v16 = vmax.f32 %v907_v50, 0.0  ;;  %v2131_v18 = vmax.f32 %v996_v51, 0.0  ;;  %4393 = vmatmul.msk.bf16.gmra.mxu0 %vm411_vm1, %v5618_v26  ;;  %4409 = vmatmul.msk.bf16.gmra.mxu1 %vm411_vm1, %v5618_v26 }
 0x30b   : > { %v2546_v19 = vadd.f32 %v2545_v4, %v2117_v14  ;;  %v2583_v20 = vadd.f32 %v2582_v5, %v2118_v15  ;;  %4425 = vmatmul.msk.bf16.gmra.mxu2 %vm411_vm1, %v5618_v26  ;;  %4441 = vmatmul.msk.bf16.gmra.mxu3 %vm411_vm1, %v5618_v26 }
 0x30c   : > { %v6145_v21 = vadd.f32 %v2472_v40, %v2130_v16  ;;  %v6147_v37 = vadd.f32 %v2509_v6, %v2131_v18 }
 0x30e   : > { %v1084_v38 = vpop.f32.mrf.mxu2  ;;  %v1173_v39 = vpop.f32.mrf.mxu3 }
 0x30f   : > { %v1085_v42 = vadd.f32 %v1084_v38, %v5972_v44  ;;  %v1174_v46 = vadd.f32 %v1173_v39, %v5974_v45  ;;  %v908_v47 = vpop.f32.mrf.mxu0  ;;  %v997_v48 = vpop.f32.mrf.mxu1 }
 0x310   : > { %v909_v51 = vadd.f32 %v908_v47, %v5958_v10  ;;  %v998_v14 = vadd.f32 %v997_v48, %v5960_v11 }
 0x311   : > { %v2132_v49 = vmax.f32 %v1085_v42, 0.0  ;;  %v2133_v52 = vmax.f32 %v1174_v46, 0.0 }
 0x312   : > { %v2145_v39 = vmax.f32 %v909_v51, 0.0  ;;  %v2146_v42 = vmax.f32 %v998_v14, 0.0 }
 0x313   : > { %v6151_v53 = vadd.f32 %v2546_v19, %v2132_v49  ;;  %v6153_v54 = vadd.f32 %v2583_v20, %v2133_v52 }
 0x316   : > { %v1086_v55 = vpop.f32.mrf.mxu2  ;;  %v1175_v56 = vpop.f32.mrf.mxu3 }
 0x317   : > { %v911_v57 = vpop.f32.mrf.mxu0  ;;  %v1000_v58 = vpop.f32.mrf.mxu1  ;;  %v1087_v15 = vadd.f32 %v1086_v55, %v5972_v44  ;;  %v1176_v16 = vadd.f32 %v1175_v56, %v5974_v45 }
 0x318   : > { %v912_v18 = vadd.f32 %v911_v57, %v5958_v10  ;;  %v1001_v19 = vadd.f32 %v1000_v58, %v5960_v11 }
 0x319   : > { %v2147_v46 = vmax.f32 %v1087_v15, 0.0  ;;  %v2148_v56 = vmax.f32 %v1176_v16, 0.0 }
 0x31a   : > { %4394 = vmatmul.msk.bf16.gmra.mxu0 %vm411_vm1, %v5630_v28  ;;  %4410 = vmatmul.msk.bf16.gmra.mxu1 %vm411_vm1, %v5630_v28  ;;  %v2160_v57 = vmax.f32 %v912_v18, 0.0  ;;  %v2161_v58 = vmax.f32 %v1001_v19, 0.0 }
 0x31b   : > { %4426 = vmatmul.msk.bf16.gmra.mxu2 %vm411_vm1, %v5630_v28  ;;  %4442 = vmatmul.msk.bf16.gmra.mxu3 %vm411_vm1, %v5630_v28  ;;  %v2585_v16 = vadd.f32 %v6153_v54, %v2148_v56 }
 0x31e   : > { %v1089_v59 = vpop.f32.mrf.mxu2  ;;  %v1178_v60 = vpop.f32.mrf.mxu3 }
 0x31f   : > { %v913_v61 = vpop.f32.mrf.mxu0  ;;  %v1002_v62 = vpop.f32.mrf.mxu1  ;;  %v1090_v49 = vadd.f32 %v1089_v59, %v5972_v44  ;;  %v1179_v52 = vadd.f32 %v1178_v60, %v5974_v45  ;;  %v2474_v59 = vadd.f32 %v6145_v21, %v2145_v39  ;;  %v2511_v60 = vadd.f32 %v6147_v37, %v2146_v42 }
 0x320   : > { %v914_v55 = vadd.f32 %v913_v61, %v5958_v10  ;;  %v2548_v61 = vadd.f32 %v6151_v53, %v2147_v46 }
 0x321   : > { %v2162_v15 = vmax.f32 %v1090_v49, 0.0  ;;  %v2475_v21 = vadd.f32 %v2474_v59, %v2160_v57  ;;  %v2512_v18 = vadd.f32 %v2511_v60, %v2161_v58 }
 0x326   : > { %v1091_v63 = vpop.f32.mrf.mxu2  ;;  %v1180_v0 = vpop.f32.mrf.mxu3 }
 0x327   : > { %v916_v1 = vpop.f32.mrf.mxu0  ;;  %v1005_v2 = vpop.f32.mrf.mxu1  ;;  %v1181_v51 = vadd.f32 %v1180_v0, %v5974_v45 }
 0x328   : > { %v917_v14 = vadd.f32 %v916_v1, %v5958_v10  ;;  %v1006_v0 = vadd.f32 %v1005_v2, %v5960_v11 }
 0x329   : > { %v2178_v53 = vmax.f32 %v1181_v51, 0.0 }
 0x32a   : > { %4395 = vmatmul.msk.bf16.gmra.mxu0 %vm411_vm1, %v5642_v30  ;;  %4411 = vmatmul.msk.bf16.gmra.mxu1 %vm411_vm1, %v5642_v30  ;;  %v2190_v39 = vmax.f32 %v917_v14, 0.0 }
 0x32b   : > { %4427 = vmatmul.msk.bf16.gmra.mxu2 %vm411_vm1, %v5642_v30  ;;  %4443 = vmatmul.msk.bf16.gmra.mxu3 %vm411_vm1, %v5642_v30  ;;  %v1092_v30 = vadd.f32 %v1091_v63, %v5972_v44  ;;  %v2175_v63 = vmax.f32 %v914_v55, 0.0 }
 0x32d   : > { %v2177_v19 = vmax.f32 %v1092_v30, 0.0  ;;  %v2191_v30 = vmax.f32 %v1006_v0, 0.0 }
 0x32e   : > { %v1094_v3 = vpop.f32.mrf.mxu2  ;;  %v1183_v4 = vpop.f32.mrf.mxu3 }
 0x32f   : > { %v918_v5 = vpop.f32.mrf.mxu0  ;;  %v1007_v40 = vpop.f32.mrf.mxu1  ;;  %v1095_v1 = vadd.f32 %v1094_v3, %v5972_v44  ;;  %v1184_v42 = vadd.f32 %v1183_v4, %v5974_v45 }
 0x330   : > { %v919_v55 = vadd.f32 %v918_v5, %v5958_v10  ;;  %v1008_v2 = vadd.f32 %v1007_v40, %v5960_v11 }
 0x331   : > { %v2192_v58 = vmax.f32 %v1095_v1, 0.0 }
 0x332   : > { %v2205_v40 = vmax.f32 %v919_v55, 0.0 }
 0x336   : > { %v1096_v6 = vpop.f32.mrf.mxu2  ;;  %v6171_v41 = vpop.f32.mrf.mxu3 }
 0x337   : > { %v6173_v7 = vpop.f32.mrf.mxu0  ;;  %v6175_v8 = vpop.f32.mrf.mxu1  ;;  %v1097_v3 = vadd.f32 %v1096_v6, %v5972_v44 }
 0x338   : > { %v922_v4 = vadd.f32 %v6173_v7, %v5958_v10  ;;  %v1011_v14 = vadd.f32 %v6175_v8, %v5960_v11 }
 0x339   : > { %v2207_v6 = vmax.f32 %v1097_v3, 0.0 }
 0x33a   : > { %4396 = vmatmul.msk.bf16.gmra.mxu0 %vm411_vm1, %v5654_v32  ;;  %4412 = vmatmul.msk.bf16.gmra.mxu1 %vm411_vm1, %v5654_v32  ;;  %v2221_v8 = vmax.f32 %v1011_v14, 0.0 }
 0x33b   : > { %4428 = vmatmul.msk.bf16.gmra.mxu2 %vm411_vm1, %v5654_v32  ;;  %4444 = vmatmul.msk.bf16.gmra.mxu3 %vm411_vm1, %v5654_v32  ;;  %v1003_v32 = vadd.f32 %v1002_v62, %v5960_v11  ;;  %v2163_v62 = vmax.f32 %v1179_v52, 0.0  ;;  %v2549_v52 = vadd.f32 %v2548_v61, %v2162_v15  ;;  %v2193_v61 = vmax.f32 %v1184_v42, 0.0 }
 0x33c   : > { %v2206_v15 = vmax.f32 %v1008_v2, 0.0 }
 0x33d   : > { %v2176_v37 = vmax.f32 %v1003_v32, 0.0  ;;  %v2586_v57 = vadd.f32 %v2585_v16, %v2163_v62  ;;  %v2476_v32 = vadd.f32 %v2475_v21, %v2175_v63  ;;  %v2550_v59 = vadd.f32 %v2549_v52, %v2177_v19 }
 0x33e   : > { %v6185_v9 = vpop.f32.mrf.mxu2  ;;  %v6187_v12 = vpop.f32.mrf.mxu3  ;;  %v1186_v62 = vadd.f32 %v6171_v41, %v5974_v45  ;;  %v2220_v16 = vmax.f32 %v922_v4, 0.0 }
 0x33f   : > { %v6189_v13 = vpop.f32.mrf.mxu0  ;;  %v6191_v50 = vpop.f32.mrf.mxu1  ;;  %v2513_v51 = vadd.f32 %v2512_v18, %v2176_v37  ;;  %v2587_v60 = vadd.f32 %v2586_v57, %v2178_v53  ;;  %v2477_v5 = vadd.f32 %v2476_v32, %v2190_v39  ;;  %v2551_v0 = vadd.f32 %v2550_v59, %v2192_v58 }
 0x340   : > { %v924_v1 = vadd.f32 %v6189_v13, %v5958_v10  ;;  %v1013_v7 = vadd.f32 %v6191_v50, %v5960_v11  ;;  %v1100_v21 = vadd.f32 %v6185_v9, %v5972_v44  ;;  %v1189_v18 = vadd.f32 %v6187_v12, %v5974_v45 }
 0x341   : > { %v2514_v63 = vadd.f32 %v2513_v51, %v2191_v30  ;;  %v2588_v37 = vadd.f32 %v2587_v60, %v2193_v61  ;;  %v2478_v39 = vadd.f32 %v2477_v5, %v2205_v40  ;;  %v2552_v50 = vadd.f32 %v2551_v0, %v2207_v6 }
 0x342   : > { %v2208_v52 = vmax.f32 %v1186_v62, 0.0  ;;  %v2235_v3 = vmax.f32 %v924_v1, 0.0  ;;  %v2236_v9 = vmax.f32 %v1013_v7, 0.0  ;;  %v2223_v58 = vmax.f32 %v1189_v18, 0.0 }
 0x343   : > { %v2515_v42 = vadd.f32 %v2514_v63, %v2206_v15  ;;  %v2479_v32 = vadd.f32 %v2478_v39, %v2220_v16 }
 0x344   : > { %v2589_v59 = vadd.f32 %v2588_v37, %v2208_v52 }
 0x345   : > { %v2516_v30 = vadd.f32 %v2515_v42, %v2221_v8  ;;  %v2480_v60 = vadd.f32 %v2479_v32, %v2235_v3 }
 0x346   : > { %v6199_v20 = vpop.f32.mrf.mxu2  ;;  %v6201_v38 = vpop.f32.mrf.mxu3  ;;  %v2590_v6 = vadd.f32 %v2589_v59, %v2223_v58 }
 0x347   : > { %v6204_v47 = vpop.f32.mrf.mxu0  ;;  %v6206_v48 = vpop.f32.mrf.mxu1  ;;  %v2517_v5 = vadd.f32 %v2516_v30, %v2236_v9 }
 0x348   : > { %v927_v41 = vadd.f32 %v6204_v47, %v5958_v10  ;;  %v1016_v19 = vadd.f32 %v6206_v48, %v5960_v11  ;;  %v2222_v47 = vmax.f32 %v1100_v21, 0.0 }
 0x34a   : > { %4397 = vmatmul.msk.bf16.gmra.mxu0 %vm411_vm1, %v5666_v34  ;;  %4413 = vmatmul.msk.bf16.gmra.mxu1 %vm411_vm1, %v5666_v34  ;;  %v2250_v51 = vmax.f32 %v927_v41, 0.0  ;;  %v2251_v48 = vmax.f32 %v1016_v19, 0.0  ;;  %v2553_v15 = vadd.f32 %v2552_v50, %v2222_v47 }
 0x34b   : > { %4429 = vmatmul.msk.bf16.gmra.mxu2 %vm411_vm1, %v5666_v34  ;;  %4445 = vmatmul.msk.bf16.gmra.mxu3 %vm411_vm1, %v5666_v34 }
 0x34c   : > { %v2481_v63 = vadd.f32 %v2480_v60, %v2250_v51 }
 0x34e   : > { %v6229_v46 = vpop.f32.mrf.mxu2  ;;  %v6231_v49 = vpop.f32.mrf.mxu3 }
 0x34f   : > { %v928_v54 = vpop.f32.mrf.mxu0  ;;  %v1017_v56 = vpop.f32.mrf.mxu1  ;;  %v1105_v62 = vadd.f32 %v6229_v46, %v5972_v44 }
 0x350   : > { %v929_v57 = vadd.f32 %v928_v54, %v5958_v10  ;;  %v1018_v12 = vadd.f32 %v1017_v56, %v5960_v11  ;;  %v1102_v54 = vadd.f32 %v6199_v20, %v5972_v44  ;;  %v1191_v56 = vadd.f32 %v6201_v38, %v5974_v45 }
 0x351   : > { %v1194_v20 = vadd.f32 %v6231_v49, %v5974_v45  ;;  %v2518_v38 = vadd.f32 %v2517_v5, %v2251_v48  ;;  %v2252_v50 = vmax.f32 %v1105_v62, 0.0 }
 0x352   : > { %v2265_v61 = vmax.f32 %v929_v57, 0.0  ;;  %v2266_v40 = vmax.f32 %v1018_v12, 0.0  ;;  %v2237_v8 = vmax.f32 %v1102_v54, 0.0  ;;  %v2238_v21 = vmax.f32 %v1191_v56, 0.0 }
 0x353   : > { %v2253_v52 = vmax.f32 %v1194_v20, 0.0 }
 0x354   : > { %v2482_v39 = vadd.f32 %v2481_v63, %v2265_v61  ;;  %v2519_v42 = vadd.f32 %v2518_v38, %v2266_v40  ;;  %v2554_v12 = vadd.f32 %v2553_v15, %v2237_v8 }
 0x356   : > { %v1106_v53 = vpop.f32.mrf.mxu2  ;;  %v1195_v13 = vpop.f32.mrf.mxu3  ;;  %v2555_v51 = vadd.f32 %v2554_v12, %v2252_v50 }
 0x357   : > { %v931_v55 = vpop.f32.mrf.mxu0  ;;  %v1020_v2 = vpop.f32.mrf.mxu1  ;;  %v1107_v18 = vadd.f32 %v1106_v53, %v5972_v44  ;;  %v1196_v37 = vadd.f32 %v1195_v13, %v5974_v45  ;;  %v2591_v13 = vadd.f32 %v2590_v6, %v2238_v21 }
 0x358   : > { %v932_v4 = vadd.f32 %v931_v55, %v5958_v10  ;;  %v1021_v14 = vadd.f32 %v1020_v2, %v5960_v11 }
 0x359   : > { %v2267_v32 = vmax.f32 %v1107_v18, 0.0  ;;  %v2268_v30 = vmax.f32 %v1196_v37, 0.0 }
 0x35a   : > { %4398 = vmatmul.msk.bf16.gmra.mxu0 %vm411_vm1, %v5678_v36  ;;  %4414 = vmatmul.msk.bf16.gmra.mxu1 %vm411_vm1, %v5678_v36  ;;  %v2280_v0 = vmax.f32 %v932_v4, 0.0  ;;  %v2281_v1 = vmax.f32 %v1021_v14, 0.0  ;;  %v317_v4 = vld [vmem:[#allocation8 + $0x8] sm:$0xff] }
 0x35b   : > { %4430 = vmatmul.msk.bf16.gmra.mxu2 %vm411_vm1, %v5678_v36  ;;  %4446 = vmatmul.msk.bf16.gmra.mxu3 %vm411_vm1, %v5678_v36  ;;  %v2556_v60 = vadd.f32 %v2555_v51, %v2267_v32  ;;  %v6282_v63 = vperm.slane %v317_v4, 0  ;;  %v6284_v38 = vperm.slane %v317_v4, 1  ;;  %v6296_v50 = vperm.slane %v317_v4, 2 }
 0x35c   : > { %v2483_v3 = vadd.f32 %v2482_v39, %v2280_v0  ;;  %v2520_v9 = vadd.f32 %v2519_v42, %v2281_v1 }
 0x35e   : > { %v1109_v7 = vpop.f32.mrf.mxu2  ;;  %v1198_v16 = vpop.f32.mrf.mxu3 }
 0x35f   : > { %v933_v41 = vpop.f32.mrf.mxu0  ;;  %v1022_v19 = vpop.f32.mrf.mxu1  ;;  %v1110_v55 = vadd.f32 %v1109_v7, %v5972_v44  ;;  %v1199_v2 = vadd.f32 %v1198_v16, %v5974_v45 }
 0x360   : > { %v934_v46 = vadd.f32 %v933_v41, %v5958_v10  ;;  %v1023_v49 = vadd.f32 %v1022_v19, %v5960_v11  ;;  %v2592_v10 = vadd.f32 %v2591_v13, %v2253_v52 }
 0x361   : > { %v2282_v48 = vmax.f32 %v1110_v55, 0.0  ;;  %v2283_v11 = vmax.f32 %v1199_v2, 0.0 }
 0x362   : > { %v2295_v57 = vmax.f32 %v934_v46, 0.0  ;;  %v2296_v53 = vmax.f32 %v1023_v49, 0.0  ;;  %v2593_v5 = vadd.f32 %v2592_v10, %v2268_v30 }
 0x363   : > { %v2557_v0 = vadd.f32 %v2556_v60, %v2282_v48 }
 0x364   : > { %v2484_v47 = vadd.f32 %v2483_v3, %v2295_v57  ;;  %v2521_v58 = vadd.f32 %v2520_v9, %v2296_v53  ;;  %v2594_v1 = vadd.f32 %v2593_v5, %v2283_v11  ;;  %v6298_v9 = vperm.slane %v317_v4, 3 }
 0x366   : > { %v2485_v14 = vrot.slane %v2484_v47, 4  ;;  %v2522_v59 = vrot.slane %v2521_v58, 4  ;;  %v1111_v54 = vpop.f32.mrf.mxu2  ;;  %v1200_v56 = vpop.f32.mrf.mxu3 }
 0x367   : > { %v1112_v61 = vadd.f32 %v1111_v54, %v5972_v44  ;;  %v1201_v40 = vadd.f32 %v1200_v56, %v5974_v45  ;;  %v1212_v15 = vpop.f32.mrf.mxu0  ;;  %v1301_v6 = vpop.f32.mrf.mxu1 }
 0x368   : > { %v2486_v62 = vadd.f32 %v2485_v14, %v2484_v47  ;;  %v2523_v20 = vadd.f32 %v2522_v59, %v2521_v58  ;;  %v1213_v39 = vadd.f32 %v1212_v15, %v6282_v63  ;;  %v1302_v42 = vadd.f32 %v1301_v6, %v6284_v38 }
 0x369   : > { %v2297_v7 = vmax.f32 %v1112_v61, 0.0  ;;  %v2298_v16 = vmax.f32 %v1201_v40, 0.0 }
 0x36a   : > { %v2487_v8 = vrot.slane %v2486_v62, 2  ;;  %v2524_v21 = vrot.slane %v2523_v20, 2  ;;  %4399 = vmatmul.msk.bf16.gmra.mxu0 %vm411_vm1, %v5604_v23  ;;  %4415 = vmatmul.msk.bf16.gmra.mxu1 %vm411_vm1, %v5604_v23  ;;  %v1834_v51 = vmax.f32 %v1213_v39, 0.0  ;;  %v1835_v10 = vmax.f32 %v1302_v42, 0.0 }
 0x36b   : > { %v2558_v44 = vadd.f32 %v2557_v0, %v2297_v7  ;;  %v2595_v45 = vadd.f32 %v2594_v1, %v2298_v16  ;;  %4431 = vmatmul.msk.bf16.gmra.mxu2 %vm411_vm1, %v5604_v23  ;;  %4447 = vmatmul.msk.bf16.gmra.mxu3 %vm411_vm1, %v5604_v23 }
 0x36c   : > { %v2488_v18 = vadd.f32 %v2487_v8, %v2486_v62  ;;  %v2525_v37 = vadd.f32 %v2524_v21, %v2523_v20 }
 0x36d   : > { %v2559_v41 = vrot.slane %v2558_v44, 4  ;;  %v2596_v19 = vrot.slane %v2595_v45, 4 }
 0x36e   : > { %v2489_v46 = vrot.slane %v2488_v18, 1  ;;  %v2526_v49 = vrot.slane %v2525_v37, 1  ;;  %v1390_v52 = vpop.f32.mrf.mxu2  ;;  %v1479_v55 = vpop.f32.mrf.mxu3 }
 0x36f   : > { %v2560_v2 = vadd.f32 %v2559_v41, %v2558_v44  ;;  %v2597_v3 = vadd.f32 %v2596_v19, %v2595_v45  ;;  %v1214_v57 = vpop.f32.mrf.mxu0  ;;  %v1303_v53 = vpop.f32.mrf.mxu1  ;;  %v1391_v4 = vadd.f32 %v1390_v52, %v6296_v50  ;;  %v1480_v5 = vadd.f32 %v1479_v55, %v6298_v9 }
 0x370   : > { %v2490_v12 = vadd.f32 %v2489_v46, %v2488_v18  ;;  %v2527_v13 = vadd.f32 %v2526_v49, %v2525_v37  ;;  %v1215_v32 = vadd.f32 %v1214_v57, %v6282_v63  ;;  %v1304_v30 = vadd.f32 %v1303_v53, %v6284_v38 }
 0x371   : > { %v2561_v47 = vrot.slane %v2560_v2, 2  ;;  %v2598_v58 = vrot.slane %v2597_v3, 2  ;;  %v1836_v44 = vmax.f32 %v1391_v4, 0.0  ;;  %v1837_v45 = vmax.f32 %v1480_v5, 0.0 }
 0x372   : > { %v2881_v48 = vrot.slane %v2490_v12, 4  ;;  %v2882_v11 = vrot.slane %v2527_v13, 3  ;;  %v1849_v14 = vmax.f32 %v1215_v32, 0.0  ;;  %v1850_v59 = vmax.f32 %v1304_v30, 0.0 }
 0x373   : > { %v2562_v54 = vadd.f32 %v2561_v47, %v2560_v2  ;;  %v2599_v56 = vadd.f32 %v2598_v58, %v2597_v3 }
 0x374   : > { %v2897_v60 = vsel %vm2896_vm4, %v2881_v48, %v2882_v11  ;;  %v2602_v61 = vadd.f32 %v1849_v14, %v1834_v51  ;;  %v2639_v40 = vadd.f32 %v1850_v59, %v1835_v10 }
 0x375   : > { %v2563_v15 = vrot.slane %v2562_v54, 1  ;;  %v2600_v6 = vrot.slane %v2599_v56, 1 }
 0x376   : > { %v1392_v62 = vpop.f32.mrf.mxu2  ;;  %v1481_v20 = vpop.f32.mrf.mxu3 }
 0x377   : > { %v2564_v0 = vadd.f32 %v2563_v15, %v2562_v54  ;;  %v2601_v1 = vadd.f32 %v2600_v6, %v2599_v56  ;;  %v1393_v7 = vadd.f32 %v1392_v62, %v6296_v50  ;;  %v1482_v16 = vadd.f32 %v1481_v20, %v6298_v9  ;;  %v1217_v8 = vpop.f32.mrf.mxu0  ;;  %v1306_v21 = vpop.f32.mrf.mxu1 }
 0x378   : > { %v1218_v18 = vadd.f32 %v1217_v8, %v6282_v63  ;;  %v1307_v37 = vadd.f32 %v1306_v21, %v6284_v38 }
 0x379   : > { %v2883_v41 = vrot.slane %v2564_v0, 2  ;;  %v2884_v19 = vrot.slane %v2601_v1, 1  ;;  %v1851_v39 = vmax.f32 %v1393_v7, 0.0  ;;  %v1852_v42 = vmax.f32 %v1482_v16, 0.0 }
 0x37a   : > { %v1864_v46 = vmax.f32 %v1218_v18, 0.0  ;;  %v1865_v49 = vmax.f32 %v1307_v37, 0.0  ;;  %4400 = vmatmul.msk.bf16.gmra.mxu0 %vm411_vm1, %v5616_v25  ;;  %4416 = vmatmul.msk.bf16.gmra.mxu1 %vm411_vm1, %v5616_v25 }
 0x37b   : > { %v2899_v52 = vsel %vm2898_vm5, %v2883_v41, %v2884_v19  ;;  %v2676_v55 = vadd.f32 %v1851_v39, %v1836_v44  ;;  %v2713_v2 = vadd.f32 %v1852_v42, %v1837_v45  ;;  %4432 = vmatmul.msk.bf16.gmra.mxu2 %vm411_vm1, %v5616_v25  ;;  %4448 = vmatmul.msk.bf16.gmra.mxu3 %vm411_vm1, %v5616_v25 }
 0x37c   : > { %v2901_v3 = vsel %vm2900_vm6, %v2897_v60, %v2899_v52  ;;  %v2603_v57 = vadd.f32 %v2602_v61, %v1864_v46  ;;  %v2640_v53 = vadd.f32 %v2639_v40, %v1865_v49  ;;  %v4993_v49 = vld [vmem:[#allocation9 + $0x38] sm:$0xff] }
 0x37d   : > { %v6321_v12 = vsel %vm2902_vm7, %v5995_v43, %v2901_v3  ;;  %3933 = vmatpush.bf16.msrb.mxu3 %v4993_v49  ;;  %v4988_v49 = vld [vmem:[#allocation9 + $0x10] sm:$0xff] }
 0x37e   : > { %v1395_v13 = vpop.f32.mrf.mxu2  ;;  %v1484_v32 = vpop.f32.mrf.mxu3  ;;  %2914 = vst [vmem:[#allocation2] sm:$0xff] %v6321_v12 }
 0x37f   : > { %v1396_v30 = vadd.f32 %v1395_v13, %v6296_v50  ;;  %v1485_v47 = vadd.f32 %v1484_v32, %v6298_v9  ;;  %v1219_v58 = vpop.f32.mrf.mxu0  ;;  %v1308_v51 = vpop.f32.mrf.mxu1 }
 0x380   : > { %v1220_v10 = vadd.f32 %v1219_v58, %v6282_v63  ;;  %v1309_v48 = vadd.f32 %v1308_v51, %v6284_v38 }
 0x381   : > { %v1866_v11 = vmax.f32 %v1396_v30, 0.0  ;;  %v1867_v14 = vmax.f32 %v1485_v47, 0.0  ;;  %v4992_v30 = vld [vmem:[#allocation9 + $0x30] sm:$0xff] }
 0x382   : > { %v1879_v59 = vmax.f32 %v1220_v10, 0.0  ;;  %v1880_v54 = vmax.f32 %v1309_v48, 0.0  ;;  %3934 = vmatpush.bf16.msrb.mxu3 %v4992_v30  ;;  %v4987_v30 = vld [vmem:[#allocation9 + $0x8] sm:$0xff] }
 0x383   : > { %v2677_v43 = vadd.f32 %v2676_v55, %v1866_v11  ;;  %v2714_v56 = vadd.f32 %v2713_v2, %v1867_v14 }
 0x384   : > { %v2604_v4 = vadd.f32 %v2603_v57, %v1879_v59  ;;  %v2641_v60 = vadd.f32 %v2640_v53, %v1880_v54  ;;  %v4991_v54 = vld [vmem:[#allocation9 + $0x28] sm:$0xff] }
 0x386   : > { %v1397_v5 = vpop.f32.mrf.mxu2  ;;  %v1486_v61 = vpop.f32.mrf.mxu3  ;;  %3935 = vmatpush.bf16.msrb.mxu3 %v4991_v54  ;;  %v4986_v54 = vld [vmem:[#allocation9] sm:$0xff] }
 0x387   : > { %v1398_v40 = vadd.f32 %v1397_v5, %v6296_v50  ;;  %v1487_v15 = vadd.f32 %v1486_v61, %v6298_v9  ;;  %v1222_v6 = vpop.f32.mrf.mxu0  ;;  %v1311_v62 = vpop.f32.mrf.mxu1 }
 0x388   : > { %v1223_v20 = vadd.f32 %v1222_v6, %v6282_v63  ;;  %v1312_v0 = vadd.f32 %v1311_v62, %v6284_v38  ;;  %v4990_v6 = vld [vmem:[#allocation9 + $0x20] sm:$0xff] }
 0x389   : > { %v1881_v1 = vmax.f32 %v1398_v40, 0.0  ;;  %v1882_v7 = vmax.f32 %v1487_v15, 0.0 }
 0x38a   : > { %v1894_v16 = vmax.f32 %v1223_v20, 0.0  ;;  %v1895_v8 = vmax.f32 %v1312_v0, 0.0  ;;  %4401 = vmatmul.msk.bf16.gmra.mxu0 %vm411_vm1, %v5628_v27  ;;  %4417 = vmatmul.msk.bf16.gmra.mxu1 %vm411_vm1, %v5628_v27 }
 0x38b   : > { %v2678_v21 = vadd.f32 %v2677_v43, %v1881_v1  ;;  %v2715_v44 = vadd.f32 %v2714_v56, %v1882_v7  ;;  %4433 = vmatmul.msk.bf16.gmra.mxu2 %vm411_vm1, %v5628_v27  ;;  %4449 = vmatmul.msk.bf16.gmra.mxu3 %vm411_vm1, %v5628_v27 }
 0x38c   : > { %v2605_v45 = vadd.f32 %v2604_v4, %v1894_v16  ;;  %v2642_v18 = vadd.f32 %v2641_v60, %v1895_v8  ;;  %3936 = vmatpush.bf16.msrb.mxu3 %v4990_v6 }
 0x38e   : > { %v1400_v37 = vpop.f32.mrf.mxu2  ;;  %v1489_v41 = vpop.f32.mrf.mxu3 }
 0x38f   : > { %v1401_v19 = vadd.f32 %v1400_v37, %v6296_v50  ;;  %v1490_v39 = vadd.f32 %v1489_v41, %v6298_v9  ;;  %v1224_v42 = vpop.f32.mrf.mxu0  ;;  %v1313_v46 = vpop.f32.mrf.mxu1 }
 0x390   : > { %v1225_v52 = vadd.f32 %v1224_v42, %v6282_v63  ;;  %v1314_v55 = vadd.f32 %v1313_v46, %v6284_v38 }
 0x391   : > { %v1896_v2 = vmax.f32 %v1401_v19, 0.0  ;;  %v1897_v3 = vmax.f32 %v1490_v39, 0.0 }
 0x392   : > { %v1909_v57 = vmax.f32 %v1225_v52, 0.0  ;;  %v1910_v53 = vmax.f32 %v1314_v55, 0.0 }
 0x393   : > { %v2679_v13 = vadd.f32 %v2678_v21, %v1896_v2  ;;  %v2716_v32 = vadd.f32 %v2715_v44, %v1897_v3  ;;  %v4989_v44 = vld [vmem:[#allocation9 + $0x18] sm:$0xff] }
 0x394   : > { %v2606_v47 = vadd.f32 %v2605_v45, %v1909_v57  ;;  %v2643_v58 = vadd.f32 %v2642_v18, %v1910_v53  ;;  %3937 = vmatpush.bf16.msrb.mxu3 %v4989_v44 }
 0x396   : > { %v1402_v51 = vpop.f32.mrf.mxu2  ;;  %v1491_v10 = vpop.f32.mrf.mxu3 }
 0x397   : > { %v1403_v48 = vadd.f32 %v1402_v51, %v6296_v50  ;;  %v1492_v11 = vadd.f32 %v1491_v10, %v6298_v9  ;;  %v1227_v14 = vpop.f32.mrf.mxu0  ;;  %v1316_v59 = vpop.f32.mrf.mxu1 }
 0x398   : > { %v1228_v43 = vadd.f32 %v1227_v14, %v6282_v63  ;;  %v1317_v56 = vadd.f32 %v1316_v59, %v6284_v38  ;;  %3938 = vmatpush.bf16.msrb.mxu3 %v4988_v49 }
 0x399   : > { %v1911_v4 = vmax.f32 %v1403_v48, 0.0  ;;  %v1912_v60 = vmax.f32 %v1492_v11, 0.0 }
 0x39a   : > { %v1924_v5 = vmax.f32 %v1228_v43, 0.0  ;;  %v1925_v61 = vmax.f32 %v1317_v56, 0.0  ;;  %4402 = vmatmul.msk.bf16.gmra.mxu0 %vm411_vm1, %v5640_v29  ;;  %4418 = vmatmul.msk.bf16.gmra.mxu1 %vm411_vm1, %v5640_v29 }
 0x39b   : > { %v2680_v40 = vadd.f32 %v2679_v13, %v1911_v4  ;;  %v2717_v15 = vadd.f32 %v2716_v32, %v1912_v60  ;;  %4434 = vmatmul.msk.bf16.gmra.mxu2 %vm411_vm1, %v5640_v29  ;;  %4450 = vmatmul.msk.bf16.gmra.mxu3 %vm411_vm1, %v5640_v29  ;;  %v5001_v4 = vld [vmem:[#allocation9 + $0x78] sm:$0xff] }
 0x39c   : > { %v2607_v62 = vadd.f32 %v2606_v47, %v1924_v5  ;;  %v2644_v20 = vadd.f32 %v2643_v58, %v1925_v61  ;;  %3939 = vmatpush.bf16.msrb.mxu3 %v4987_v30 }
 0x39e   : > { %v1405_v0 = vpop.f32.mrf.mxu2  ;;  %v1494_v1 = vpop.f32.mrf.mxu3 }
 0x39f   : > { %v1406_v7 = vadd.f32 %v1405_v0, %v6296_v50  ;;  %v1495_v16 = vadd.f32 %v1494_v1, %v6298_v9  ;;  %v1229_v8 = vpop.f32.mrf.mxu0  ;;  %v1318_v21 = vpop.f32.mrf.mxu1  ;;  %v5000_v0 = vld [vmem:[#allocation9 + $0x70] sm:$0xff] }
 0x3a0   : > { %v1230_v45 = vadd.f32 %v1229_v8, %v6282_v63  ;;  %v1319_v18 = vadd.f32 %v1318_v21, %v6284_v38  ;;  %3940 = vmatpush.bf16.msrb.mxu3 %v4986_v54 }
 0x3a1   : > { %v1926_v37 = vmax.f32 %v1406_v7, 0.0  ;;  %v1927_v41 = vmax.f32 %v1495_v16, 0.0 }
 0x3a2   : > { %v1939_v19 = vmax.f32 %v1230_v45, 0.0  ;;  %v1940_v39 = vmax.f32 %v1319_v18, 0.0 }
 0x3a3   : > { %v2681_v42 = vadd.f32 %v2680_v40, %v1926_v37  ;;  %v2718_v46 = vadd.f32 %v2717_v15, %v1927_v41  ;;  %v4999_v37 = vld [vmem:[#allocation9 + $0x68] sm:$0xff] }
 0x3a4   : > { %v2608_v52 = vadd.f32 %v2607_v62, %v1939_v19  ;;  %v2645_v55 = vadd.f32 %v2644_v20, %v1940_v39  ;;  %3946 = vmatpush.bf16.msra.mxu3 %v5001_v4  ;;  %v4996_v4 = vld [vmem:[#allocation9 + $0x50] sm:$0xff] }
 0x3a6   : > { %v1407_v2 = vpop.f32.mrf.mxu2  ;;  %v1496_v3 = vpop.f32.mrf.mxu3 }
 0x3a7   : > { %v1408_v57 = vadd.f32 %v1407_v2, %v6296_v50  ;;  %v1497_v53 = vadd.f32 %v1496_v3, %v6298_v9  ;;  %v1232_v13 = vpop.f32.mrf.mxu0  ;;  %v1321_v32 = vpop.f32.mrf.mxu1  ;;  %v4998_v2 = vld [vmem:[#allocation9 + $0x60] sm:$0xff] }
 0x3a8   : > { %v1233_v47 = vadd.f32 %v1232_v13, %v6282_v63  ;;  %v1322_v58 = vadd.f32 %v1321_v32, %v6284_v38  ;;  %3947 = vmatpush.bf16.msra.mxu3 %v5000_v0  ;;  %v4995_v0 = vld [vmem:[#allocation9 + $0x48] sm:$0xff] }
 0x3a9   : > { %v1941_v51 = vmax.f32 %v1408_v57, 0.0  ;;  %v1942_v10 = vmax.f32 %v1497_v53, 0.0 }
 0x3aa   : > { %v1954_v48 = vmax.f32 %v1233_v47, 0.0  ;;  %v1955_v11 = vmax.f32 %v1322_v58, 0.0  ;;  %4403 = vmatmul.msk.bf16.gmra.mxu0 %vm411_vm1, %v5652_v31  ;;  %4419 = vmatmul.msk.bf16.gmra.mxu1 %vm411_vm1, %v5652_v31 }
 0x3ab   : > { %v2682_v14 = vadd.f32 %v2681_v42, %v1941_v51  ;;  %v2719_v59 = vadd.f32 %v2718_v46, %v1942_v10  ;;  %4435 = vmatmul.msk.bf16.gmra.mxu2 %vm411_vm1, %v5652_v31  ;;  %4451 = vmatmul.msk.bf16.gmra.mxu3 %vm411_vm1, %v5652_v31  ;;  %v4997_v51 = vld [vmem:[#allocation9 + $0x58] sm:$0xff] }
 0x3ac   : > { %v2609_v43 = vadd.f32 %v2608_v52, %v1954_v48  ;;  %v2646_v56 = vadd.f32 %v2645_v55, %v1955_v11  ;;  %3948 = vmatpush.bf16.msra.mxu3 %v4999_v37  ;;  %v4994_v37 = vld [vmem:[#allocation9 + $0x40] sm:$0xff] }
 0x3ae   : > { %v1410_v60 = vpop.f32.mrf.mxu2  ;;  %v1499_v5 = vpop.f32.mrf.mxu3 }
 0x3af   : > { %v1411_v61 = vadd.f32 %v1410_v60, %v6296_v50  ;;  %v1500_v40 = vadd.f32 %v1499_v5, %v6298_v9  ;;  %v1234_v15 = vpop.f32.mrf.mxu0  ;;  %v1323_v6 = vpop.f32.mrf.mxu1 }
 0x3b0   : > { %v1235_v62 = vadd.f32 %v1234_v15, %v6282_v63  ;;  %v1324_v20 = vadd.f32 %v1323_v6, %v6284_v38  ;;  %3949 = vmatpush.bf16.msra.mxu3 %v4998_v2 }
 0x3b1   : > { %v1956_v1 = vmax.f32 %v1411_v61, 0.0  ;;  %v1957_v7 = vmax.f32 %v1500_v40, 0.0 }
 0x3b2   : > { %v1969_v16 = vmax.f32 %v1235_v62, 0.0  ;;  %v1970_v8 = vmax.f32 %v1324_v20, 0.0 }
 0x3b3   : > { %v2683_v21 = vadd.f32 %v2682_v14, %v1956_v1  ;;  %v2720_v44 = vadd.f32 %v2719_v59, %v1957_v7 }
 0x3b4   : > { %v2610_v45 = vadd.f32 %v2609_v43, %v1969_v16  ;;  %v2647_v18 = vadd.f32 %v2646_v56, %v1970_v8  ;;  %3950 = vmatpush.bf16.msra.mxu3 %v4997_v51 }
 0x3b6   : > { %v1412_v41 = vpop.f32.mrf.mxu2  ;;  %v1501_v19 = vpop.f32.mrf.mxu3 }
 0x3b7   : > { %v1413_v39 = vadd.f32 %v1412_v41, %v6296_v50  ;;  %v1502_v42 = vadd.f32 %v1501_v19, %v6298_v9  ;;  %v1237_v46 = vpop.f32.mrf.mxu0  ;;  %v1326_v49 = vpop.f32.mrf.mxu1 }
 0x3b8   : > { %v1238_v52 = vadd.f32 %v1237_v46, %v6282_v63  ;;  %v1327_v55 = vadd.f32 %v1326_v49, %v6284_v38  ;;  %3951 = vmatpush.bf16.msra.mxu3 %v4996_v4 }
 0x3b9   : > { %v1971_v3 = vmax.f32 %v1413_v39, 0.0  ;;  %v1972_v57 = vmax.f32 %v1502_v42, 0.0 }
 0x3ba   : > { %v1984_v53 = vmax.f32 %v1238_v52, 0.0  ;;  %v1985_v13 = vmax.f32 %v1327_v55, 0.0  ;;  %4404 = vmatmul.msk.bf16.gmra.mxu0 %vm411_vm1, %v5664_v33  ;;  %4420 = vmatmul.msk.bf16.gmra.mxu1 %vm411_vm1, %v5664_v33 }
 0x3bb   : > { %v2684_v32 = vadd.f32 %v2683_v21, %v1971_v3  ;;  %v2721_v30 = vadd.f32 %v2720_v44, %v1972_v57  ;;  %4436 = vmatmul.msk.bf16.gmra.mxu2 %vm411_vm1, %v5664_v33  ;;  %4452 = vmatmul.msk.bf16.gmra.mxu3 %vm411_vm1, %v5664_v33 }
 0x3bc   : > { %v2611_v47 = vadd.f32 %v2610_v45, %v1984_v53  ;;  %v2648_v58 = vadd.f32 %v2647_v18, %v1985_v13  ;;  %3952 = vmatpush.bf16.msra.mxu3 %v4995_v0 }
 0x3be   : > { %v1415_v10 = vpop.f32.mrf.mxu2  ;;  %v1504_v48 = vpop.f32.mrf.mxu3 }
 0x3bf   : > { %v1416_v11 = vadd.f32 %v1415_v10, %v6296_v50  ;;  %v1505_v14 = vadd.f32 %v1504_v48, %v6298_v9  ;;  %v1239_v59 = vpop.f32.mrf.mxu0  ;;  %v1328_v54 = vpop.f32.mrf.mxu1 }
 0x3c0   : > { %v1240_v43 = vadd.f32 %v1239_v59, %v6282_v63  ;;  %v1329_v56 = vadd.f32 %v1328_v54, %v6284_v38  ;;  %3953 = vmatpush.bf16.msra.mxu3 %v4994_v37 }
 0x3c1   : > { %v1986_v60 = vmax.f32 %v1416_v11, 0.0  ;;  %v1987_v5 = vmax.f32 %v1505_v14, 0.0 }
 0x3c2   : > { %v1999_v61 = vmax.f32 %v1240_v43, 0.0  ;;  %v2000_v40 = vmax.f32 %v1329_v56, 0.0 }
 0x3c3   : > { %v2685_v15 = vadd.f32 %v2684_v32, %v1986_v60  ;;  %v2722_v6 = vadd.f32 %v2721_v30, %v1987_v5 }
 0x3c4   : > { %v2612_v62 = vadd.f32 %v2611_v47, %v1999_v61  ;;  %v2649_v20 = vadd.f32 %v2648_v58, %v2000_v40 }
 0x3c6   : > { %v1417_v1 = vpop.f32.mrf.mxu2  ;;  %v1506_v7 = vpop.f32.mrf.mxu3 }
 0x3c7   : > { %v1418_v16 = vadd.f32 %v1417_v1, %v6296_v50  ;;  %v1507_v8 = vadd.f32 %v1506_v7, %v6298_v9  ;;  %v1242_v21 = vpop.f32.mrf.mxu0  ;;  %v1331_v44 = vpop.f32.mrf.mxu1 }
 0x3c8   : > { %v1243_v45 = vadd.f32 %v1242_v21, %v6282_v63  ;;  %v1332_v18 = vadd.f32 %v1331_v44, %v6284_v38 }
 0x3c9   : > { %v2001_v41 = vmax.f32 %v1418_v16, 0.0  ;;  %v2002_v19 = vmax.f32 %v1507_v8, 0.0 }
 0x3ca   : > { %v2014_v39 = vmax.f32 %v1243_v45, 0.0  ;;  %v2015_v42 = vmax.f32 %v1332_v18, 0.0  ;;  %4405 = vmatmul.msk.bf16.gmra.mxu0 %vm411_vm1, %v5676_v35  ;;  %4421 = vmatmul.msk.bf16.gmra.mxu1 %vm411_vm1, %v5676_v35 }
 0x3cb   : > { %v2686_v46 = vadd.f32 %v2685_v15, %v2001_v41  ;;  %v2723_v49 = vadd.f32 %v2722_v6, %v2002_v19  ;;  %4437 = vmatmul.msk.bf16.gmra.mxu2 %vm411_vm1, %v5676_v35  ;;  %4453 = vmatmul.msk.bf16.gmra.mxu3 %vm411_vm1, %v5676_v35 }
 0x3cc   : > { %v2613_v52 = vadd.f32 %v2612_v62, %v2014_v39  ;;  %v2650_v55 = vadd.f32 %v2649_v20, %v2015_v42 }
 0x3ce   : > { %v1420_v2 = vpop.f32.mrf.mxu2  ;;  %v1509_v3 = vpop.f32.mrf.mxu3 }
 0x3cf   : > { %v1421_v57 = vadd.f32 %v1420_v2, %v6296_v50  ;;  %v1510_v53 = vadd.f32 %v1509_v3, %v6298_v9  ;;  %v1244_v13 = vpop.f32.mrf.mxu0  ;;  %v1333_v32 = vpop.f32.mrf.mxu1 }
 0x3d0   : > { %v1245_v30 = vadd.f32 %v1244_v13, %v6282_v63  ;;  %v1334_v47 = vadd.f32 %v1333_v32, %v6284_v38 }
 0x3d1   : > { %v2016_v58 = vmax.f32 %v1421_v57, 0.0  ;;  %v2017_v51 = vmax.f32 %v1510_v53, 0.0  ;;  %v2927_v53 = vperm.slane %v6321_v12, 0 }
 0x3d2   : > { %v2029_v10 = vmax.f32 %v1245_v30, 0.0  ;;  %v2030_v48 = vmax.f32 %v1334_v47, 0.0 }
 0x3d3   : > { %v2687_v11 = vadd.f32 %v2686_v46, %v2016_v58  ;;  %v2724_v14 = vadd.f32 %v2723_v49, %v2017_v51 }
 0x3d4   : > { %v2614_v59 = vadd.f32 %v2613_v52, %v2029_v10  ;;  %v2651_v54 = vadd.f32 %v2650_v55, %v2030_v48  ;;  %v5009_v48 = vld [vmem:[#allocation9 + $0xb8] sm:$0xff] }
 0x3d6   : > { %v1422_v43 = vpop.f32.mrf.mxu2  ;;  %v1511_v56 = vpop.f32.mrf.mxu3 }
 0x3d7   : > { %v1423_v4 = vadd.f32 %v1422_v43, %v6296_v50  ;;  %v1512_v60 = vadd.f32 %v1511_v56, %v6298_v9  ;;  %v1247_v5 = vpop.f32.mrf.mxu0  ;;  %v1336_v61 = vpop.f32.mrf.mxu1 }
 0x3d8   : > { %v1248_v40 = vadd.f32 %v1247_v5, %v6282_v63  ;;  %v1337_v15 = vadd.f32 %v1336_v61, %v6284_v38  ;;  %v5008_v5 = vld [vmem:[#allocation9 + $0xb0] sm:$0xff] }
 0x3d9   : > { %v2031_v6 = vmax.f32 %v1423_v4, 0.0  ;;  %v2032_v62 = vmax.f32 %v1512_v60, 0.0 }
 0x3da   : > { %v2044_v20 = vmax.f32 %v1248_v40, 0.0  ;;  %v2045_v0 = vmax.f32 %v1337_v15, 0.0  ;;  %4406 = vmatmul.msk.bf16.gmra.mxu0 %vm411_vm1, %v5808_v17  ;;  %4422 = vmatmul.msk.bf16.gmra.mxu1 %vm411_vm1, %v5808_v17 }
 0x3db   : > { %v2688_v1 = vadd.f32 %v2687_v11, %v2031_v6  ;;  %v2725_v7 = vadd.f32 %v2724_v14, %v2032_v62  ;;  %4438 = vmatmul.msk.bf16.gmra.mxu2 %vm411_vm1, %v5808_v17  ;;  %4454 = vmatmul.msk.bf16.gmra.mxu3 %vm411_vm1, %v5808_v17 }
 0x3dc   : > { %v2615_v16 = vadd.f32 %v2614_v59, %v2044_v20  ;;  %v2652_v8 = vadd.f32 %v2651_v54, %v2045_v0  ;;  %v2957_v59 = vpack.c.bf16 %v2927_v53, %v2927_v53  ;;  %v5005_v53 = vld [vmem:[#allocation9 + $0x98] sm:$0xff] }
 0x3de   : > { %v1425_v21 = vpop.f32.mrf.mxu2  ;;  %v1514_v44 = vpop.f32.mrf.mxu3 }
 0x3df   : > { %v1426_v45 = vadd.f32 %v1425_v21, %v6296_v50  ;;  %v1515_v18 = vadd.f32 %v1514_v44, %v6298_v9  ;;  %v1249_v37 = vpop.f32.mrf.mxu0  ;;  %v1338_v41 = vpop.f32.mrf.mxu1 }
 0x3e0   : > { %v1250_v19 = vadd.f32 %v1249_v37, %v6282_v63  ;;  %v1339_v39 = vadd.f32 %v1338_v41, %v6284_v38 }
 0x3e1   : > { %v2046_v42 = vmax.f32 %v1426_v45, 0.0  ;;  %v2047_v46 = vmax.f32 %v1515_v18, 0.0 }
 0x3e2   : > { %v2059_v49 = vmax.f32 %v1250_v19, 0.0  ;;  %v2060_v52 = vmax.f32 %v1339_v39, 0.0  ;;  %v5006_v39 = vld [vmem:[#allocation9 + $0xa0] sm:$0xff] }
 0x3e3   : > { %v2689_v55 = vadd.f32 %v2688_v1, %v2046_v42  ;;  %v2726_v2 = vadd.f32 %v2725_v7, %v2047_v46  ;;  %v2928_v42 = vperm.slane %v6321_v12, 1 }
 0x3e4   : > { %v2616_v3 = vadd.f32 %v2615_v16, %v2059_v49  ;;  %v2653_v57 = vadd.f32 %v2652_v8, %v2060_v52 }
 0x3e6   : > { %v1427_v13 = vpop.f32.mrf.mxu2  ;;  %v1516_v32 = vpop.f32.mrf.mxu3 }
 0x3e7   : > { %v1428_v30 = vadd.f32 %v1427_v13, %v6296_v50  ;;  %v1252_v47 = vpop.f32.mrf.mxu0  ;;  %v1341_v58 = vpop.f32.mrf.mxu1  ;;  %v1517_v14 = vadd.f32 %v1516_v32, %v6298_v9 }
 0x3e8   : > { %v1253_v51 = vadd.f32 %v1252_v47, %v6282_v63  ;;  %v1342_v10 = vadd.f32 %v1341_v58, %v6284_v38 }
 0x3e9   : > { %v2061_v11 = vmax.f32 %v1428_v30, 0.0  ;;  %v2062_v61 = vmax.f32 %v1517_v14, 0.0  ;;  %v2958_v30 = vpack.c.bf16 %v2928_v42, %v2928_v42 }
 0x3ea   : > { %v2074_v54 = vmax.f32 %v1253_v51, 0.0  ;;  %v2075_v43 = vmax.f32 %v1342_v10, 0.0  ;;  %4455 = vmatmul.msk.bf16.vlgmr.msrb.gmra.mxu0 %vm411_vm1, %v5594_v22  ;;  %4471 = vmatmul.msk.bf16.vlgmr.msrb.gmra.mxu1 %vm411_vm1, %v5594_v22 }
 0x3eb   : > { %v2690_v56 = vadd.f32 %v2689_v55, %v2061_v11  ;;  %4487 = vmatmul.msk.bf16.vlgmr.msrb.gmra.mxu2 %vm411_vm1, %v5594_v22  ;;  %3941 = vmatmul.bf16.vlgmr.msrb.gmra.mxu3 %v2957_v59  ;;  %v5007_v22 = vld [vmem:[#allocation9 + $0xa8] sm:$0xff]  ;;  %v2727_v16 = vadd.f32 %v2726_v2, %v2062_v61  ;;  %v5004_v11 = vld [vmem:[#allocation9 + $0x90] sm:$0xff] }
 0x3ec   : > { %v2617_v4 = vadd.f32 %v2616_v3, %v2074_v54  ;;  %v2654_v60 = vadd.f32 %v2653_v57, %v2075_v43  ;;  %3959 = vmatpush.bf16.msrb.mxu3 %v5009_v48 }
 0x3ee   : > { %v1430_v40 = vpop.f32.mrf.mxu2  ;;  %v1519_v15 = vpop.f32.mrf.mxu3 }
 0x3ef   : > { %v1431_v6 = vadd.f32 %v1430_v40, %v6296_v50  ;;  %v1520_v62 = vadd.f32 %v1519_v15, %v6298_v9  ;;  %v1254_v20 = vpop.f32.mrf.mxu0  ;;  %v1343_v0 = vpop.f32.mrf.mxu1 }
 0x3f0   : > { %3960 = vmatpush.bf16.msrb.mxu3 %v5008_v5  ;;  %v1255_v1 = vadd.f32 %v1254_v20, %v6282_v63  ;;  %v1344_v7 = vadd.f32 %v1343_v0, %v6284_v38 }
 0x3f1   : > { %v2076_v8 = vmax.f32 %v1431_v6, 0.0  ;;  %v2077_v21 = vmax.f32 %v1520_v62, 0.0 }
 0x3f2   : > { %v2089_v44 = vmax.f32 %v1255_v1, 0.0  ;;  %v2090_v45 = vmax.f32 %v1344_v7, 0.0 }
 0x3f3   : > { %v2691_v18 = vadd.f32 %v2690_v56, %v2076_v8  ;;  %v2728_v37 = vadd.f32 %v2727_v16, %v2077_v21  ;;  %v5002_v16 = vld [vmem:[#allocation9 + $0x80] sm:$0xff]  ;;  %v5017_v8 = vld [vmem:[#allocation9 + $0xf8] sm:$0xff]  ;;  %v2929_v21 = vperm.slane %v6321_v12, 2 }
 0x3f4   : > { %v2618_v41 = vadd.f32 %v2617_v4, %v2089_v44  ;;  %v2655_v19 = vadd.f32 %v2654_v60, %v2090_v45  ;;  %3961 = vmatpush.bf16.msrb.mxu3 %v5007_v22 }
 0x3f6   : > { %v1432_v46 = vpop.f32.mrf.mxu2  ;;  %v1521_v49 = vpop.f32.mrf.mxu3 }
 0x3f7   : > { %v1433_v52 = vadd.f32 %v1432_v46, %v6296_v50  ;;  %v1257_v55 = vpop.f32.mrf.mxu0  ;;  %v1346_v3 = vpop.f32.mrf.mxu1  ;;  %v1522_v32 = vadd.f32 %v1521_v49, %v6298_v9  ;;  %v2959_v49 = vpack.c.bf16 %v2929_v21, %v2929_v21 }
 0x3f8   : > { %3962 = vmatpush.bf16.msrb.mxu3 %v5006_v39  ;;  %v1258_v2 = vadd.f32 %v1257_v55, %v6282_v63  ;;  %v1347_v57 = vadd.f32 %v1346_v3, %v6284_v38 }
 0x3f9   : > { %v2091_v13 = vmax.f32 %v1433_v52, 0.0  ;;  %v2092_v14 = vmax.f32 %v1522_v32, 0.0  ;;  %v5016_v52 = vld [vmem:[#allocation9 + $0xf0] sm:$0xff]  ;;  %v5015_v32 = vld [vmem:[#allocation9 + $0xe8] sm:$0xff] }
 0x3fa   : > { %v2104_v47 = vmax.f32 %v1258_v2, 0.0  ;;  %v2105_v58 = vmax.f32 %v1347_v57, 0.0  ;;  %4456 = vmatmul.msk.bf16.gmra.mxu0 %vm411_vm1, %v5606_v24  ;;  %4472 = vmatmul.msk.bf16.gmra.mxu1 %vm411_vm1, %v5606_v24 }
 0x3fb   : > { %v2692_v51 = vadd.f32 %v2691_v18, %v2091_v13  ;;  %4488 = vmatmul.msk.bf16.gmra.mxu2 %vm411_vm1, %v5606_v24  ;;  %3954 = vmatmul.bf16.vlgmr.msra.gmra.mxu3 %v2958_v30  ;;  %v5003_v24 = vld [vmem:[#allocation9 + $0x88] sm:$0xff]  ;;  %v2729_v40 = vadd.f32 %v2728_v37, %v2092_v14 }
 0x3fc   : > { %v2619_v10 = vadd.f32 %v2618_v41, %v2104_v47  ;;  %v2656_v48 = vadd.f32 %v2655_v19, %v2105_v58  ;;  %3963 = vmatpush.bf16.msrb.mxu3 %v5005_v53 }
 0x3fe   : > { %v1435_v59 = vpop.f32.mrf.mxu2  ;;  %v1524_v54 = vpop.f32.mrf.mxu3 }
 0x3ff   : > { %v1436_v43 = vadd.f32 %v1435_v59, %v6296_v50  ;;  %v1525_v56 = vadd.f32 %v1524_v54, %v6298_v9  ;;  %v1259_v4 = vpop.f32.mrf.mxu0  ;;  %v1348_v60 = vpop.f32.mrf.mxu1 }
 0x400   : > { %3964 = vmatpush.bf16.msrb.mxu3 %v5004_v11  ;;  %v1260_v5 = vadd.f32 %v1259_v4, %v6282_v63  ;;  %v1349_v61 = vadd.f32 %v1348_v60, %v6284_v38 }
 0x401   : > { %v2106_v15 = vmax.f32 %v1436_v43, 0.0  ;;  %v2107_v6 = vmax.f32 %v1525_v56, 0.0  ;;  %v5014_v43 = vld [vmem:[#allocation9 + $0xe0] sm:$0xff] }
 0x402   : > { %v2119_v62 = vmax.f32 %v1260_v5, 0.0  ;;  %v2120_v20 = vmax.f32 %v1349_v61, 0.0 }
 0x403   : > { %v2693_v0 = vadd.f32 %v2692_v51, %v2106_v15  ;;  %v2730_v1 = vadd.f32 %v2729_v40, %v2107_v6  ;;  %v5013_v40 = vld [vmem:[#allocation9 + $0xd8] sm:$0xff] }
 0x404   : > { %v2620_v7 = vadd.f32 %v2619_v10, %v2119_v62  ;;  %v2657_v22 = vadd.f32 %v2656_v48, %v2120_v20  ;;  %3965 = vmatpush.bf16.msrb.mxu3 %v5003_v24 }
 0x406   : > { %v1437_v44 = vpop.f32.mrf.mxu2  ;;  %v1526_v45 = vpop.f32.mrf.mxu3 }
 0x407   : > { %v1438_v18 = vadd.f32 %v1437_v44, %v6296_v50  ;;  %v1262_v41 = vpop.f32.mrf.mxu0  ;;  %v1351_v19 = vpop.f32.mrf.mxu1  ;;  %v1527_v46 = vadd.f32 %v1526_v45, %v6298_v9 }
 0x408   : > { %3966 = vmatpush.bf16.msrb.mxu3 %v5002_v16  ;;  %v1263_v37 = vadd.f32 %v1262_v41, %v6282_v63  ;;  %v1352_v39 = vadd.f32 %v1351_v19, %v6284_v38 }
 0x409   : > { %v2121_v42 = vmax.f32 %v1438_v18, 0.0  ;;  %v2122_v13 = vmax.f32 %v1527_v46, 0.0 }
 0x40a   : > { %v2134_v55 = vmax.f32 %v1263_v37, 0.0  ;;  %v2135_v3 = vmax.f32 %v1352_v39, 0.0  ;;  %4457 = vmatmul.msk.bf16.gmra.mxu0 %vm411_vm1, %v5618_v26  ;;  %4473 = vmatmul.msk.bf16.gmra.mxu1 %vm411_vm1, %v5618_v26  ;;  %v5011_v37 = vld [vmem:[#allocation9 + $0xc8] sm:$0xff] }
 0x40b   : > { %v2694_v2 = vadd.f32 %v2693_v0, %v2121_v42  ;;  %4489 = vmatmul.msk.bf16.gmra.mxu2 %vm411_vm1, %v5618_v26  ;;  %3967 = vmatmul.bf16.vlgmr.msrb.gmra.mxu3 %v2959_v49  ;;  %v2731_v59 = vadd.f32 %v2730_v1, %v2122_v13  ;;  %v5010_v13 = vld [vmem:[#allocation9 + $0xc0] sm:$0xff] }
 0x40c   : > { %3972 = vmatpush.bf16.msra.mxu3 %v5017_v8  ;;  %v2621_v57 = vadd.f32 %v2620_v7, %v2134_v55  ;;  %v2658_v53 = vadd.f32 %v2657_v22, %v2135_v3  ;;  %v5012_v8 = vld [vmem:[#allocation9 + $0xd0] sm:$0xff] }
 0x40e   : > { %v1440_v30 = vpop.f32.mrf.mxu2  ;;  %v1529_v47 = vpop.f32.mrf.mxu3 }
 0x40f   : > { %v1441_v58 = vadd.f32 %v1440_v30, %v6296_v50  ;;  %v1530_v51 = vadd.f32 %v1529_v47, %v6298_v9  ;;  %v1264_v10 = vpop.f32.mrf.mxu0  ;;  %v1353_v48 = vpop.f32.mrf.mxu1  ;;  %v5025_v47 = vld [vmem:[#allocation9 + $0x138] sm:$0xff] }
 0x410   : > { %3973 = vmatpush.bf16.msra.mxu3 %v5016_v52  ;;  %v1265_v11 = vadd.f32 %v1264_v10, %v6282_v63  ;;  %v1354_v14 = vadd.f32 %v1353_v48, %v6284_v38 }
 0x411   : > { %v2136_v26 = vmax.f32 %v1441_v58, 0.0  ;;  %v2137_v54 = vmax.f32 %v1530_v51, 0.0  ;;  %v2930_v58 = vperm.slane %v6321_v12, 3 }
 0x412   : > { %v2149_v56 = vmax.f32 %v1265_v11, 0.0  ;;  %v2150_v4 = vmax.f32 %v1354_v14, 0.0 }
 0x413   : > { %v2695_v60 = vadd.f32 %v2694_v2, %v2136_v26  ;;  %v2732_v5 = vadd.f32 %v2731_v59, %v2137_v54  ;;  %v2960_v26 = vpack.c.bf16 %v2930_v58, %v2930_v58  ;;  %v5024_v54 = vld [vmem:[#allocation9 + $0x130] sm:$0xff] }
 0x414   : > { %3974 = vmatpush.bf16.msra.mxu3 %v5015_v32  ;;  %v2622_v61 = vadd.f32 %v2621_v57, %v2149_v56  ;;  %v2659_v24 = vadd.f32 %v2658_v53, %v2150_v4 }
 0x416   : > { %v1442_v15 = vpop.f32.mrf.mxu2  ;;  %v1531_v6 = vpop.f32.mrf.mxu3 }
 0x417   : > { %v1443_v62 = vadd.f32 %v1442_v15, %v6296_v50  ;;  %v1267_v20 = vpop.f32.mrf.mxu0  ;;  %v1356_v0 = vpop.f32.mrf.mxu1  ;;  %v1532_v16 = vadd.f32 %v1531_v6, %v6298_v9  ;;  %v6803_v15 = vld [vmem:[#allocation16_spill] sm:$0xff] }
 0x418   : > { %3975 = vmatpush.bf16.msra.mxu3 %v5014_v43  ;;  %v1268_v1 = vadd.f32 %v1267_v20, %v6282_v63  ;;  %v1357_v7 = vadd.f32 %v1356_v0, %v6284_v38  ;;  %v5023_v6 = vld [vmem:[#allocation9 + $0x128] sm:$0xff] }
 0x419   : > { %v2151_v22 = vmax.f32 %v1443_v62, 0.0  ;;  %v2152_v19 = vmax.f32 %v1532_v16, 0.0  ;;  %v5022_v16 = vld [vmem:[#allocation9 + $0x120] sm:$0xff] }
 0x41a   : > { %v2164_v21 = vmax.f32 %v1268_v1, 0.0  ;;  %v2165_v44 = vmax.f32 %v1357_v7, 0.0  ;;  %4458 = vmatmul.msk.bf16.gmra.mxu0 %vm411_vm1, %v5630_v28  ;;  %4474 = vmatmul.msk.bf16.gmra.mxu1 %vm411_vm1, %v5630_v28 }
 0x41b   : > { %v2696_v45 = vadd.f32 %v2695_v60, %v2151_v22  ;;  %4490 = vmatmul.msk.bf16.gmra.mxu2 %vm411_vm1, %v5630_v28  ;;  %v2733_v57 = vadd.f32 %v2732_v5, %v2152_v19 }
 0x41c   : > { %3976 = vmatpush.bf16.msra.mxu3 %v5013_v40  ;;  %v2623_v18 = vadd.f32 %v2622_v61, %v2164_v21  ;;  %v2660_v41 = vadd.f32 %v2659_v24, %v2165_v44 }
 0x41e   : > { %v1445_v39 = vpop.f32.mrf.mxu2  ;;  %v1534_v42 = vpop.f32.mrf.mxu3 }
 0x41f   : > { %v1446_v46 = vadd.f32 %v1445_v39, %v6296_v50  ;;  %v1535_v49 = vadd.f32 %v1534_v42, %v6298_v9  ;;  %v1269_v52 = vpop.f32.mrf.mxu0  ;;  %v1358_v55 = vpop.f32.mrf.mxu1 }
 0x420   : > { %3977 = vmatpush.bf16.msra.mxu3 %v5012_v8  ;;  %v1270_v3 = vadd.f32 %v1269_v52, %v6282_v63  ;;  %v1359_v2 = vadd.f32 %v1358_v55, %v6284_v38 }
 0x421   : > { %v2166_v53 = vmax.f32 %v1446_v46, 0.0  ;;  %v2167_v28 = vmax.f32 %v1535_v49, 0.0  ;;  %v5021_v49 = vld [vmem:[#allocation9 + $0x118] sm:$0xff] }
 0x422   : > { %v2179_v32 = vmax.f32 %v1270_v3, 0.0  ;;  %v2180_v30 = vmax.f32 %v1359_v2, 0.0 }
 0x423   : > { %v2697_v51 = vadd.f32 %v2696_v45, %v2166_v53  ;;  %v2734_v10 = vadd.f32 %v2733_v57, %v2167_v28  ;;  %v5020_v28 = vld [vmem:[#allocation9 + $0x110] sm:$0xff] }
 0x424   : > { %3978 = vmatpush.bf16.msra.mxu3 %v5011_v37  ;;  %v2624_v48 = vadd.f32 %v2623_v18, %v2179_v32  ;;  %v2661_v11 = vadd.f32 %v2660_v41, %v2180_v30 }
 0x426   : > { %v1447_v14 = vpop.f32.mrf.mxu2  ;;  %v1536_v59 = vpop.f32.mrf.mxu3 }
 0x427   : > { %v1448_v43 = vadd.f32 %v1447_v14, %v6296_v50  ;;  %v1272_v56 = vpop.f32.mrf.mxu0  ;;  %v1361_v4 = vpop.f32.mrf.mxu1  ;;  %v1537_v61 = vadd.f32 %v1536_v59, %v6298_v9  ;;  %v6804_v14 = vld [vmem:[#allocation17_spill] sm:$0xff] }
 0x428   : > { %3979 = vmatpush.bf16.msra.mxu3 %v5010_v13  ;;  %v1273_v60 = vadd.f32 %v1272_v56, %v6282_v63  ;;  %v1362_v5 = vadd.f32 %v1361_v4, %v6284_v38  ;;  %v5019_v59 = vld [vmem:[#allocation9 + $0x108] sm:$0xff] }
 0x429   : > { %v2181_v12 = vmax.f32 %v1448_v43, 0.0  ;;  %v2182_v1 = vmax.f32 %v1537_v61, 0.0 }
 0x42a   : > { %v2194_v24 = vmax.f32 %v1273_v60, 0.0  ;;  %v2195_v40 = vmax.f32 %v1362_v5, 0.0  ;;  %4459 = vmatmul.msk.bf16.gmra.mxu0 %vm411_vm1, %v6803_v15  ;;  %4475 = vmatmul.msk.bf16.gmra.mxu1 %vm411_vm1, %v6803_v15  ;;  %v5018_v5 = vld [vmem:[#allocation9 + $0x100] sm:$0xff] }
 0x42b   : > { %3980 = vmatmul.bf16.vlgmr.msra.gmra.mxu3 %v2960_v26  ;;  %v2698_v62 = vadd.f32 %v2697_v51, %v2181_v12  ;;  %4491 = vmatmul.msk.bf16.gmra.mxu2 %vm411_vm1, %v6803_v15  ;;  %v2735_v19 = vadd.f32 %v2734_v10, %v2182_v1  ;;  %v5033_v15 = vld [vmem:[#allocation9 + $0x178] sm:$0xff] }
 0x42c   : > { %3985 = vmatpush.bf16.msrb.mxu3 %v5025_v47  ;;  %v2625_v20 = vadd.f32 %v2624_v48, %v2194_v24  ;;  %v2662_v0 = vadd.f32 %v2661_v11, %v2195_v40 }
 0x42e   : > { %v1450_v7 = vpop.f32.mrf.mxu2  ;;  %v1539_v22 = vpop.f32.mrf.mxu3 }
 0x42f   : > { %v1451_v8 = vadd.f32 %v1450_v7, %v6296_v50  ;;  %v1540_v21 = vadd.f32 %v1539_v22, %v6298_v9  ;;  %v1274_v44 = vpop.f32.mrf.mxu0  ;;  %v1363_v45 = vpop.f32.mrf.mxu1 }
 0x430   : > { %3986 = vmatpush.bf16.msrb.mxu3 %v5024_v54  ;;  %v1275_v18 = vadd.f32 %v1274_v44, %v6282_v63  ;;  %v1364_v41 = vadd.f32 %v1363_v45, %v6284_v38 }
 0x431   : > { %v2196_v37 = vmax.f32 %v1451_v8, 0.0  ;;  %v2197_v39 = vmax.f32 %v1540_v21, 0.0 }
 0x432   : > { %v2209_v42 = vmax.f32 %v1275_v18, 0.0  ;;  %v2210_v46 = vmax.f32 %v1364_v41, 0.0  ;;  %v5032_v18 = vld [vmem:[#allocation9 + $0x170] sm:$0xff] }
 0x433   : > { %v2699_v52 = vadd.f32 %v2698_v62, %v2196_v37  ;;  %v2736_v55 = vadd.f32 %v2735_v19, %v2197_v39 }
 0x434   : > { %3987 = vmatpush.bf16.msrb.mxu3 %v5023_v6  ;;  %v2626_v3 = vadd.f32 %v2625_v20, %v2209_v42  ;;  %v2663_v2 = vadd.f32 %v2662_v0, %v2210_v46  ;;  %v6510_v6 = vld [vmem:[#allocation2] sm:$0xff] }
 0x435   : > { %v2931_v62 = vperm.slane %v6510_v6, 4 }
 0x436   : > { %v1452_v57 = vpop.f32.mrf.mxu2  ;;  %v1541_v53 = vpop.f32.mrf.mxu3 }
 0x437   : > { %v1453_v13 = vadd.f32 %v1452_v57, %v6296_v50  ;;  %v1277_v32 = vpop.f32.mrf.mxu0  ;;  %v1366_v30 = vpop.f32.mrf.mxu1  ;;  %v1542_v10 = vadd.f32 %v1541_v53, %v6298_v9  ;;  %v2961_v45 = vpack.c.bf16 %v2931_v62, %v2931_v62 }
 0x438   : > { %3988 = vmatpush.bf16.msrb.mxu3 %v5022_v16  ;;  %v1278_v47 = vadd.f32 %v1277_v32, %v6282_v63  ;;  %v1367_v58 = vadd.f32 %v1366_v30, %v6284_v38 }
 0x439   : > { %v2211_v51 = vmax.f32 %v1453_v13, 0.0  ;;  %v2212_v56 = vmax.f32 %v1542_v10, 0.0 }
 0x43a   : > { %v2224_v48 = vmax.f32 %v1278_v47, 0.0  ;;  %v2225_v11 = vmax.f32 %v1367_v58, 0.0  ;;  %4460 = vmatmul.msk.bf16.gmra.mxu0 %vm411_vm1, %v6804_v14  ;;  %4476 = vmatmul.msk.bf16.gmra.mxu1 %vm411_vm1, %v6804_v14  ;;  %v5030_v47 = vld [vmem:[#allocation9 + $0x160] sm:$0xff] }
 0x43b   : > { %v2700_v26 = vadd.f32 %v2699_v52, %v2211_v51  ;;  %4492 = vmatmul.msk.bf16.gmra.mxu2 %vm411_vm1, %v6804_v14  ;;  %v2737_v1 = vadd.f32 %v2736_v55, %v2212_v56  ;;  %v5031_v55 = vld [vmem:[#allocation9 + $0x168] sm:$0xff] }
 0x43c   : > { %3989 = vmatpush.bf16.msrb.mxu3 %v5021_v49  ;;  %v2627_v54 = vadd.f32 %v2626_v3, %v2224_v48  ;;  %v2664_v43 = vadd.f32 %v2663_v2, %v2225_v11 }
 0x43e   : > { %v1455_v4 = vpop.f32.mrf.mxu2  ;;  %v1544_v60 = vpop.f32.mrf.mxu3 }
 0x43f   : > { %v1456_v12 = vadd.f32 %v1455_v4, %v6296_v50  ;;  %v1545_v61 = vadd.f32 %v1544_v60, %v6298_v9  ;;  %v1279_v24 = vpop.f32.mrf.mxu0  ;;  %v1368_v40 = vpop.f32.mrf.mxu1 }
 0x440   : > { %3990 = vmatpush.bf16.msrb.mxu3 %v5020_v28  ;;  %v1280_v20 = vadd.f32 %v1279_v24, %v6282_v63  ;;  %v1369_v0 = vadd.f32 %v1368_v40, %v6284_v38  ;;  %v5028_v24 = vld [vmem:[#allocation9 + $0x150] sm:$0xff] }
 0x441   : > { %v2226_v7 = vmax.f32 %v1456_v12, 0.0  ;;  %v2227_v22 = vmax.f32 %v1545_v61, 0.0 }
 0x442   : > { %v2239_v16 = vmax.f32 %v1280_v20, 0.0  ;;  %v2240_v8 = vmax.f32 %v1369_v0, 0.0 }
 0x443   : > { %v2701_v21 = vadd.f32 %v2700_v26, %v2226_v7  ;;  %v2738_v44 = vadd.f32 %v2737_v1, %v2227_v22 }
 0x444   : > { %3991 = vmatpush.bf16.msrb.mxu3 %v5019_v59  ;;  %v2628_v41 = vadd.f32 %v2627_v54, %v2239_v16  ;;  %v2665_v19 = vadd.f32 %v2664_v43, %v2240_v8  ;;  %v5029_v54 = vld [vmem:[#allocation9 + $0x158] sm:$0xff]  ;;  %v5027_v16 = vld [vmem:[#allocation9 + $0x148] sm:$0xff] }
 0x446   : > { %v1457_v37 = vpop.f32.mrf.mxu2  ;;  %v1546_v39 = vpop.f32.mrf.mxu3 }
 0x447   : > { %v1458_v42 = vadd.f32 %v1457_v37, %v6296_v50  ;;  %v1547_v46 = vadd.f32 %v1546_v39, %v6298_v9  ;;  %v1282_v49 = vpop.f32.mrf.mxu0  ;;  %v1371_v52 = vpop.f32.mrf.mxu1  ;;  %v5026_v39 = vld [vmem:[#allocation9 + $0x140] sm:$0xff] }
 0x448   : > { %3992 = vmatpush.bf16.msrb.mxu3 %v5018_v5  ;;  %v1283_v3 = vadd.f32 %v1282_v49, %v6282_v63  ;;  %v1372_v2 = vadd.f32 %v1371_v52, %v6284_v38  ;;  %v5041_v49 = vld [vmem:[#allocation9 + $0x1b8] sm:$0xff]  ;;  %v2932_v52 = vperm.slane %v6510_v6, 5 }
 0x449   : > { %v2241_v57 = vmax.f32 %v1458_v42, 0.0  ;;  %v2242_v53 = vmax.f32 %v1547_v46, 0.0 }
 0x44a   : > { %v2254_v28 = vmax.f32 %v1283_v3, 0.0  ;;  %v2255_v13 = vmax.f32 %v1372_v2, 0.0  ;;  %4461 = vmatmul.msk.bf16.gmra.mxu0 %vm411_vm1, %v5666_v34  ;;  %4477 = vmatmul.msk.bf16.gmra.mxu1 %vm411_vm1, %v5666_v34 }
 0x44b   : > { %3993 = vmatmul.bf16.vlgmr.msrb.gmra.mxu3 %v2961_v45  ;;  %v2702_v32 = vadd.f32 %v2701_v21, %v2241_v57  ;;  %v2739_v30 = vadd.f32 %v2738_v44, %v2242_v53  ;;  %4493 = vmatmul.msk.bf16.gmra.mxu2 %vm411_vm1, %v5666_v34 }
 0x44c   : > { %3998 = vmatpush.bf16.msra.mxu3 %v5033_v15  ;;  %v2629_v58 = vadd.f32 %v2628_v41, %v2254_v28  ;;  %v2666_v51 = vadd.f32 %v2665_v19, %v2255_v13 }
 0x44e   : > { %v1460_v10 = vpop.f32.mrf.mxu2  ;;  %v1549_v48 = vpop.f32.mrf.mxu3 }
 0x44f   : > { %v1461_v11 = vadd.f32 %v1460_v10, %v6296_v50  ;;  %v1550_v14 = vadd.f32 %v1549_v48, %v6298_v9  ;;  %v1284_v59 = vpop.f32.mrf.mxu0  ;;  %v1373_v26 = vpop.f32.mrf.mxu1 }
 0x450   : > { %3999 = vmatpush.bf16.msra.mxu3 %v5032_v18  ;;  %v1285_v43 = vadd.f32 %v1284_v59, %v6282_v63  ;;  %v1374_v56 = vadd.f32 %v1373_v26, %v6284_v38  ;;  %v5039_v26 = vld [vmem:[#allocation9 + $0x1a8] sm:$0xff] }
 0x451   : > { %v2256_v4 = vmax.f32 %v1461_v11, 0.0  ;;  %v2257_v60 = vmax.f32 %v1550_v14, 0.0 }
 0x452   : > { %v2269_v5 = vmax.f32 %v1285_v43, 0.0  ;;  %v2270_v12 = vmax.f32 %v1374_v56, 0.0 }
 0x453   : > { %v2703_v61 = vadd.f32 %v2702_v32, %v2256_v4  ;;  %v2740_v34 = vadd.f32 %v2739_v30, %v2257_v60  ;;  %v2962_v30 = vpack.c.bf16 %v2932_v52, %v2932_v52 }
 0x454   : > { %4000 = vmatpush.bf16.msra.mxu3 %v5031_v55  ;;  %v2630_v40 = vadd.f32 %v2629_v58, %v2269_v5  ;;  %v2667_v15 = vadd.f32 %v2666_v51, %v2270_v12 }
 0x456   : > { %v1462_v62 = vpop.f32.mrf.mxu2  ;;  %v1551_v20 = vpop.f32.mrf.mxu3 }
 0x457   : > { %v1463_v0 = vadd.f32 %v1462_v62, %v6296_v50  ;;  %v1552_v1 = vadd.f32 %v1551_v20, %v6298_v9  ;;  %v1287_v7 = vpop.f32.mrf.mxu0  ;;  %v1376_v22 = vpop.f32.mrf.mxu1 }
 0x458   : > { %4001 = vmatpush.bf16.msra.mxu3 %v5030_v47  ;;  %v1288_v8 = vadd.f32 %v1287_v7, %v6282_v63  ;;  %v1377_v21 = vadd.f32 %v1376_v22, %v6284_v38  ;;  %v5040_v47 = vld [vmem:[#allocation9 + $0x1b0] sm:$0xff] }
 0x459   : > { %v2271_v44 = vmax.f32 %v1463_v0, 0.0  ;;  %v2272_v45 = vmax.f32 %v1552_v1, 0.0 }
 0x45a   : > { %v2284_v18 = vmax.f32 %v1288_v8, 0.0  ;;  %v2285_v41 = vmax.f32 %v1377_v21, 0.0  ;;  %4462 = vmatmul.msk.bf16.gmra.mxu0 %vm411_vm1, %v5678_v36  ;;  %4478 = vmatmul.msk.bf16.gmra.mxu1 %vm411_vm1, %v5678_v36  ;;  %v5073_v8 = vld [vmem:[#allocation9 + $0x2b8] sm:$0xff] }
 0x45b   : > { %v2704_v19 = vadd.f32 %v2703_v61, %v2271_v44  ;;  %v2741_v37 = vadd.f32 %v2740_v34, %v2272_v45  ;;  %4494 = vmatmul.msk.bf16.gmra.mxu2 %vm411_vm1, %v5678_v36  ;;  %v5038_v34 = vld [vmem:[#allocation9 + $0x1a0] sm:$0xff] }
 0x45c   : > { %4002 = vmatpush.bf16.msra.mxu3 %v5029_v54  ;;  %v2631_v42 = vadd.f32 %v2630_v40, %v2284_v18  ;;  %v2668_v46 = vadd.f32 %v2667_v15, %v2285_v41  ;;  %v5205_v15 = vld [vmem:[#allocation8 + $0x8] sm:$0xff]  ;;  %4063 = vmatpush.bf16.msra.mxu2 %v5073_v8 }
 0x45d   : > { %v6546_v62 = vperm.slane %v5205_v15, 4  ;;  %v6548_v20 = vperm.slane %v5205_v15, 5 }
 0x45e   : > { %v1465_v55 = vpop.f32.mrf.mxu2  ;;  %v1554_v3 = vpop.f32.mrf.mxu3 }
 0x45f   : > { %v1466_v2 = vadd.f32 %v1465_v55, %v6296_v50  ;;  %v1555_v57 = vadd.f32 %v1554_v3, %v6298_v9  ;;  %v1289_v53 = vpop.f32.mrf.mxu0  ;;  %v1378_v28 = vpop.f32.mrf.mxu1  ;;  %v6560_v55 = vperm.slane %v5205_v15, 6  ;;  %v5034_v15 = vld [vmem:[#allocation9 + $0x180] sm:$0xff] }
 0x460   : > { %4003 = vmatpush.bf16.msra.mxu3 %v5028_v24  ;;  %v1290_v13 = vadd.f32 %v1289_v53, %v6282_v63  ;;  %v1379_v32 = vadd.f32 %v1378_v28, %v6284_v38 }
 0x461   : > { %v2286_v36 = vmax.f32 %v1466_v2, 0.0  ;;  %v2287_v58 = vmax.f32 %v1555_v57, 0.0  ;;  %v5036_v57 = vld [vmem:[#allocation9 + $0x190] sm:$0xff] }
 0x462   : > { %v2299_v51 = vmax.f32 %v1290_v13, 0.0  ;;  %v2300_v10 = vmax.f32 %v1379_v32, 0.0 }
 0x463   : > { %v2705_v48 = vadd.f32 %v2704_v19, %v2286_v36  ;;  %v2742_v11 = vadd.f32 %v2741_v37, %v2287_v58 }
 0x464   : > { %4004 = vmatpush.bf16.msra.mxu3 %v5027_v16  ;;  %v2632_v14 = vadd.f32 %v2631_v42, %v2299_v51  ;;  %v2669_v59 = vadd.f32 %v2668_v46, %v2300_v10  ;;  %v5037_v16 = vld [vmem:[#allocation9 + $0x198] sm:$0xff] }
 0x466   : > { %v2633_v54 = vrot.slane %v2632_v14, 4  ;;  %v2670_v43 = vrot.slane %v2669_v59, 4  ;;  %v1467_v56 = vpop.f32.mrf.mxu2  ;;  %v1556_v4 = vpop.f32.mrf.mxu3 }
 0x467   : > { %v1468_v63 = vadd.f32 %v1467_v56, %v6296_v50  ;;  %v1557_v38 = vadd.f32 %v1556_v4, %v6298_v9  ;;  %v1568_v60 = vpop.f32.mrf.mxu0  ;;  %v1657_v5 = vpop.f32.mrf.mxu1 }
 0x468   : > { %4005 = vmatpush.bf16.msra.mxu3 %v5026_v39  ;;  %v2634_v12 = vadd.f32 %v2633_v54, %v2632_v14  ;;  %v2671_v61 = vadd.f32 %v2670_v43, %v2669_v59  ;;  %v1569_v45 = vadd.f32 %v1568_v60, %v6546_v62  ;;  %v1658_v18 = vadd.f32 %v1657_v5, %v6548_v20  ;;  %v5035_v59 = vld [vmem:[#allocation9 + $0x188] sm:$0xff]  ;;  %v5065_v54 = vld [vmem:[#allocation9 + $0x278] sm:$0xff] }
 0x469   : > { %v2301_v24 = vmax.f32 %v1468_v63, 0.0  ;;  %v2302_v40 = vmax.f32 %v1557_v38, 0.0  ;;  %4050 = vmatpush.bf16.msra.mxu1 %v5065_v54 }
 0x46a   : > { %v2635_v0 = vrot.slane %v2634_v12, 2  ;;  %v2672_v1 = vrot.slane %v2671_v61, 2  ;;  %4463 = vmatmul.msk.bf16.gmra.mxu0 %vm411_vm1, %v5604_v23  ;;  %4479 = vmatmul.msk.bf16.gmra.mxu1 %vm411_vm1, %v5604_v23  ;;  %v1838_v13 = vmax.f32 %v1569_v45, 0.0  ;;  %v1839_v32 = vmax.f32 %v1658_v18, 0.0 }
 0x46b   : > { %4006 = vmatmul.bf16.vlgmr.msra.gmra.mxu3 %v2962_v30  ;;  %v2706_v50 = vadd.f32 %v2705_v48, %v2301_v24  ;;  %v2743_v9 = vadd.f32 %v2742_v11, %v2302_v40  ;;  %4495 = vmatmul.msk.bf16.gmra.mxu2 %vm411_vm1, %v5604_v23 }
 0x46c   : > { %4011 = vmatpush.bf16.msrb.mxu3 %v5041_v49  ;;  %v2636_v7 = vadd.f32 %v2635_v0, %v2634_v12  ;;  %v2673_v22 = vadd.f32 %v2672_v1, %v2671_v61  ;;  %v2933_v0 = vperm.slane %v6510_v6, 6 }
 0x46d   : > { %v2707_v21 = vrot.slane %v2706_v50, 4  ;;  %v2744_v44 = vrot.slane %v2743_v9, 4 }
 0x46e   : > { %v2637_v41 = vrot.slane %v2636_v7, 1  ;;  %v2674_v19 = vrot.slane %v2673_v22, 1  ;;  %v1746_v37 = vpop.f32.mrf.mxu2  ;;  %v6558_v39 = vpop.f32.mrf.mxu3 }
 0x46f   : > { %v2708_v42 = vadd.f32 %v2707_v21, %v2706_v50  ;;  %v2745_v46 = vadd.f32 %v2744_v44, %v2743_v9  ;;  %v1570_v49 = vpop.f32.mrf.mxu0  ;;  %v1659_v52 = vpop.f32.mrf.mxu1  ;;  %v1747_v4 = vadd.f32 %v1746_v37, %v6560_v55 }
 0x470   : > { %4012 = vmatpush.bf16.msrb.mxu3 %v5040_v47  ;;  %v2675_v23 = vadd.f32 %v2674_v19, %v2673_v22  ;;  %v1571_v3 = vadd.f32 %v1570_v49, %v6546_v62  ;;  %v1660_v2 = vadd.f32 %v1659_v52, %v6548_v20  ;;  %v2638_v30 = vadd.f32 %v2637_v41, %v2636_v7  ;;  %v5049_v22 = vld [vmem:[#allocation9 + $0x1f8] sm:$0xff] }
 0x471   : > { %v2709_v53 = vrot.slane %v2708_v42, 2  ;;  %v2746_v28 = vrot.slane %v2745_v46, 2  ;;  %v1840_v9 = vmax.f32 %v1747_v4, 0.0 }
 0x472   : > { %v2885_v47 = vrot.slane %v2675_v23, 7  ;;  %v1853_v36 = vmax.f32 %v1571_v3, 0.0  ;;  %v1854_v58 = vmax.f32 %v1660_v2, 0.0 }
 0x473   : > { %v2710_v51 = vadd.f32 %v2709_v53, %v2708_v42  ;;  %v2747_v10 = vadd.f32 %v2746_v28, %v2745_v46  ;;  %v2963_v42 = vpack.c.bf16 %v2933_v0, %v2933_v0  ;;  %v5048_v46 = vld [vmem:[#allocation9 + $0x1f0] sm:$0xff] }
 0x474   : > { %4013 = vmatpush.bf16.msrb.mxu3 %v5039_v26  ;;  %v2904_v48 = vsel %vm2891_vm2, %v2638_v30, %v2885_v47  ;;  %v2750_v11 = vadd.f32 %v1853_v36, %v1838_v13  ;;  %v2787_v14 = vadd.f32 %v1854_v58, %v1839_v32  ;;  %v5057_v26 = vld [vmem:[#allocation9 + $0x238] sm:$0xff]  ;;  %v5046_v58 = vld [vmem:[#allocation9 + $0x1e0] sm:$0xff] }
 0x475   : > { %v2711_v43 = vrot.slane %v2710_v51, 1  ;;  %v2748_v56 = vrot.slane %v2747_v10, 1  ;;  %4037 = vmatpush.bf16.msra.mxu0 %v5057_v26 }
 0x476   : > { %v1748_v63 = vpop.f32.mrf.mxu2  ;;  %v3944_v38 = vpop.f32.mrf.mxu3 }
 0x477   : > { %v2712_v60 = vadd.f32 %v2711_v43, %v2710_v51  ;;  %v2749_v5 = vadd.f32 %v2748_v56, %v2747_v10  ;;  %v1749_v12 = vadd.f32 %v1748_v63, %v6560_v55  ;;  %v1573_v61 = vpop.f32.mrf.mxu0  ;;  %v5045_v43 = vld [vmem:[#allocation9 + $0x1d8] sm:$0xff] }
 0x478   : > { %4014 = vmatpush.bf16.msrb.mxu3 %v5038_v34  ;;  %v1662_v34 = vpop.f32.mrf.mxu1  ;;  %v1574_v24 = vadd.f32 %v1573_v61, %v6546_v62 }
 0x479   : > { %v1663_v40 = vadd.f32 %v1662_v34, %v6548_v20  ;;  %v2886_v1 = vrot.slane %v2712_v60, 6  ;;  %v2887_v50 = vrot.slane %v2749_v5, 5  ;;  %v1855_v7 = vmax.f32 %v1749_v12, 0.0  ;;  %v5044_v5 = vld [vmem:[#allocation9 + $0x1d0] sm:$0xff] }
 0x47a   : > { %v1868_v8 = vmax.f32 %v1574_v24, 0.0  ;;  %4464 = vmatmul.msk.bf16.gmra.mxu0 %vm411_vm1, %v5616_v25  ;;  %4480 = vmatmul.msk.bf16.gmra.mxu1 %vm411_vm1, %v5616_v25  ;;  %v5072_v12 = vld [vmem:[#allocation9 + $0x2b0] sm:$0xff] }
 0x47b   : > { %v1869_v21 = vmax.f32 %v1663_v40, 0.0  ;;  %v2905_v44 = vsel %vm2893_vm3, %v2886_v1, %v2887_v50  ;;  %v2824_v45 = vadd.f32 %v1855_v7, %v1840_v9  ;;  %4496 = vmatmul.msk.bf16.gmra.mxu2 %vm411_vm1, %v5616_v25  ;;  %v5047_v25 = vld [vmem:[#allocation9 + $0x1e8] sm:$0xff] }
 0x47c   : > { %4015 = vmatpush.bf16.msrb.mxu3 %v5037_v16  ;;  %v3212_v16 = vld [vmem:[%s6785_s4] sm:$0x1]  ;;  %v6579_v18 = vsel %vm460_vm0, %v2904_v48, %v2905_v44  ;;  %v2751_v41 = vadd.f32 %v2750_v11, %v1868_v8  ;;  %4064 = vmatpush.bf16.msra.mxu2 %v5072_v12  ;;  %v5042_v44 = vld [vmem:[#allocation9 + $0x1c0] sm:$0xff] }
 0x47d   : > { %v2788_v19 = vadd.f32 %v2787_v14, %v1869_v21  ;;  %v3943_v37 = vadd.f32 %v6558_v39, %v3212_v16  ;;  %v5043_v7 = vld [vmem:[#allocation9 + $0x1c8] sm:$0xff] }
 0x47e   : > { %v1751_v49 = vpop.f32.mrf.mxu2  ;;  %v3955_v52 = vpop.f32.mrf.mxu3 }
 0x47f   : > { %v1752_v23 = vadd.f32 %v1751_v49, %v6560_v55  ;;  %v3956_v3 = vadd.f32 %v3955_v52, %v3943_v37  ;;  %v1575_v2 = vpop.f32.mrf.mxu0 }
 0x480   : > { %4016 = vmatpush.bf16.msrb.mxu3 %v5036_v57  ;;  %v1664_v57 = vpop.f32.mrf.mxu1  ;;  %v1576_v53 = vadd.f32 %v1575_v2, %v6546_v62 }
 0x481   : > { %v1665_v28 = vadd.f32 %v1664_v57, %v6548_v20  ;;  %v1870_v13 = vmax.f32 %v1752_v23, 0.0 }
 0x482   : > { %v1883_v32 = vmax.f32 %v1576_v53, 0.0 }
 0x483   : > { %v1884_v39 = vmax.f32 %v1665_v28, 0.0  ;;  %v2825_v30 = vadd.f32 %v2824_v45, %v1870_v13  ;;  %v5056_v45 = vld [vmem:[#allocation9 + $0x230] sm:$0xff] }
 0x484   : > { %4017 = vmatpush.bf16.msrb.mxu3 %v5035_v59  ;;  %v2752_v47 = vadd.f32 %v2751_v41, %v1883_v32  ;;  %v5064_v41 = vld [vmem:[#allocation9 + $0x270] sm:$0xff]  ;;  %4038 = vmatpush.bf16.msra.mxu0 %v5056_v45 }
 0x485   : > { %v2789_v36 = vadd.f32 %v2788_v19, %v1884_v39  ;;  %4051 = vmatpush.bf16.msra.mxu1 %v5064_v41 }
 0x486   : > { %v1753_v51 = vpop.f32.mrf.mxu2  ;;  %v3957_v10 = vpop.f32.mrf.mxu3 }
 0x487   : > { %v1754_v48 = vadd.f32 %v1753_v51, %v6560_v55  ;;  %v1578_v11 = vpop.f32.mrf.mxu0 }
 0x488   : > { %4018 = vmatpush.bf16.msrb.mxu3 %v5034_v15  ;;  %v1667_v14 = vpop.f32.mrf.mxu1  ;;  %v1579_v59 = vadd.f32 %v1578_v11, %v6546_v62 }
 0x489   : > { %v1668_v26 = vadd.f32 %v1667_v14, %v6548_v20  ;;  %v1885_v54 = vmax.f32 %v1754_v48, 0.0 }
 0x48a   : > { %v1898_v56 = vmax.f32 %v1579_v59, 0.0  ;;  %4465 = vmatmul.msk.bf16.gmra.mxu0 %vm411_vm1, %v5628_v27  ;;  %4481 = vmatmul.msk.bf16.gmra.mxu1 %vm411_vm1, %v5628_v27 }
 0x48b   : > { %4019 = vmatmul.bf16.vlgmr.msrb.gmra.mxu3 %v2963_v42  ;;  %v1899_v4 = vmax.f32 %v1668_v26, 0.0  ;;  %v2826_v63 = vadd.f32 %v2825_v30, %v1885_v54  ;;  %4497 = vmatmul.msk.bf16.gmra.mxu2 %vm411_vm1, %v5628_v27  ;;  %v2934_v42 = vperm.slane %v6510_v6, 7 }
 0x48c   : > { %4024 = vmatpush.bf16.msra.mxu3 %v5049_v22  ;;  %v2753_v38 = vadd.f32 %v2752_v47, %v1898_v56 }
 0x48d   : > { %v2790_v60 = vadd.f32 %v2789_v36, %v1899_v4  ;;  %v2964_v28 = vpack.c.bf16 %v2934_v42, %v2934_v42 }
 0x48e   : > { %v1756_v61 = vpop.f32.mrf.mxu2  ;;  %v3968_v34 = vpop.f32.mrf.mxu3 }
 0x48f   : > { %v1757_v24 = vadd.f32 %v1756_v61, %v6560_v55  ;;  %v6597_v40 = vadd.f32 %v3968_v34, %v3956_v3  ;;  %v1580_v15 = vpop.f32.mrf.mxu0 }
 0x490   : > { %4025 = vmatpush.bf16.msra.mxu3 %v5048_v46  ;;  %v1669_v0 = vpop.f32.mrf.mxu1  ;;  %v1581_v1 = vadd.f32 %v1580_v15, %v6546_v62  ;;  %v5071_v15 = vld [vmem:[#allocation9 + $0x2a8] sm:$0xff] }
 0x491   : > { %v1670_v50 = vadd.f32 %v1669_v0, %v6548_v20  ;;  %v1900_v9 = vmax.f32 %v1757_v24, 0.0  ;;  %4065 = vmatpush.bf16.msra.mxu2 %v5071_v15 }
 0x492   : > { %v1913_v27 = vmax.f32 %v1581_v1, 0.0 }
 0x493   : > { %v1914_v22 = vmax.f32 %v1670_v50, 0.0  ;;  %v2827_v16 = vadd.f32 %v2826_v63, %v1900_v9 }
 0x494   : > { %4026 = vmatpush.bf16.msra.mxu3 %v5047_v25  ;;  %v2754_v8 = vadd.f32 %v2753_v38, %v1913_v27 }
 0x495   : > { %v2791_v21 = vadd.f32 %v2790_v60, %v1914_v22 }
 0x496   : > { %v1758_v19 = vpop.f32.mrf.mxu2  ;;  %v3970_v37 = vpop.f32.mrf.mxu3 }
 0x497   : > { %v1759_v46 = vadd.f32 %v1758_v19, %v6560_v55  ;;  %v1583_v49 = vpop.f32.mrf.mxu0 }
 0x498   : > { %4027 = vmatpush.bf16.msra.mxu3 %v5046_v58  ;;  %v1672_v52 = vpop.f32.mrf.mxu1  ;;  %v1584_v23 = vadd.f32 %v1583_v49, %v6546_v62 }
 0x499   : > { %v1673_v3 = vadd.f32 %v1672_v52, %v6548_v20  ;;  %v1915_v2 = vmax.f32 %v1759_v46, 0.0 }
 0x49a   : > { %v1928_v57 = vmax.f32 %v1584_v23, 0.0  ;;  %4466 = vmatmul.msk.bf16.gmra.mxu0 %vm411_vm1, %v5640_v29  ;;  %4482 = vmatmul.msk.bf16.gmra.mxu1 %vm411_vm1, %v5640_v29 }
 0x49b   : > { %v1929_v53 = vmax.f32 %v1673_v3, 0.0  ;;  %v2828_v13 = vadd.f32 %v2827_v16, %v1915_v2  ;;  %4498 = vmatmul.msk.bf16.gmra.mxu2 %vm411_vm1, %v5640_v29 }
 0x49c   : > { %4028 = vmatpush.bf16.msra.mxu3 %v5045_v43  ;;  %v2755_v6 = vadd.f32 %v2754_v8, %v1928_v57 }
 0x49d   : > { %v2792_v25 = vadd.f32 %v2791_v21, %v1929_v53  ;;  %v5055_v21 = vld [vmem:[#allocation9 + $0x228] sm:$0xff] }
 0x49e   : > { %v1761_v32 = vpop.f32.mrf.mxu2  ;;  %4039 = vmatpush.bf16.msra.mxu0 %v5055_v21  ;;  %v5062_v21 = vld [vmem:[#allocation9 + $0x260] sm:$0xff] }
 0x49f   : > { %v1762_v39 = vadd.f32 %v1761_v32, %v6560_v55  ;;  %v1585_v30 = vpop.f32.mrf.mxu0 }
 0x4a0   : > { %4029 = vmatpush.bf16.msra.mxu3 %v5044_v5  ;;  %v1674_v47 = vpop.f32.mrf.mxu1  ;;  %v1586_v36 = vadd.f32 %v1585_v30, %v6546_v62 }
 0x4a1   : > { %v1675_v58 = vadd.f32 %v1674_v47, %v6548_v20  ;;  %v1930_v51 = vmax.f32 %v1762_v39, 0.0 }
 0x4a2   : > { %v1943_v10 = vmax.f32 %v1586_v36, 0.0 }
 0x4a3   : > { %v1944_v48 = vmax.f32 %v1675_v58, 0.0  ;;  %v2829_v11 = vadd.f32 %v2828_v13, %v1930_v51 }
 0x4a4   : > { %4030 = vmatpush.bf16.msra.mxu3 %v5043_v7  ;;  %v2756_v14 = vadd.f32 %v2755_v6, %v1943_v10 }
 0x4a5   : > { %v2793_v59 = vadd.f32 %v2792_v25, %v1944_v48 }
 0x4a6   : > { %v1763_v26 = vpop.f32.mrf.mxu2 }
 0x4a7   : > { %v1764_v54 = vadd.f32 %v1763_v26, %v6560_v55  ;;  %v1588_v29 = vpop.f32.mrf.mxu0 }
 0x4a8   : > { %4031 = vmatpush.bf16.msra.mxu3 %v5042_v44  ;;  %v1589_v43 = vadd.f32 %v1588_v29, %v6546_v62  ;;  %v1677_v56 = vpop.f32.mrf.mxu1 }
 0x4a9   : > { %v1945_v4 = vmax.f32 %v1764_v54, 0.0  ;;  %v1678_v63 = vadd.f32 %v1677_v56, %v6548_v20 }
 0x4aa   : > { %v1958_v38 = vmax.f32 %v1589_v43, 0.0  ;;  %4467 = vmatmul.msk.bf16.gmra.mxu0 %vm411_vm1, %v5652_v31  ;;  %4483 = vmatmul.msk.bf16.gmra.mxu1 %vm411_vm1, %v5652_v31 }
 0x4ab   : > { %4032 = vmatmul.bf16.vlgmr.msra.gmra.mxu3 %v2964_v28  ;;  %v2830_v60 = vadd.f32 %v2829_v11, %v1945_v4  ;;  %v1959_v5 = vmax.f32 %v1678_v63, 0.0  ;;  %4499 = vmatmul.msk.bf16.gmra.mxu2 %vm411_vm1, %v5652_v31 }
 0x4ac   : > { %v2757_v61 = vadd.f32 %v2756_v14, %v1958_v38 }
 0x4ad   : > { %v2794_v24 = vadd.f32 %v2793_v59, %v1959_v5 }
 0x4ae   : > { %v3981_v12 = vpop.f32.mrf.mxu3  ;;  %v1766_v0 = vpop.f32.mrf.mxu2 }
 0x4af   : > { %v3982_v34 = vadd.f32 %v3981_v12, %v6597_v40  ;;  %v1767_v1 = vadd.f32 %v1766_v0, %v6560_v55  ;;  %v1590_v50 = vpop.f32.mrf.mxu0  ;;  %v5063_v40 = vld [vmem:[#allocation9 + $0x268] sm:$0xff] }
 0x4b0   : > { %v1679_v9 = vpop.f32.mrf.mxu1  ;;  %v1591_v27 = vadd.f32 %v1590_v50, %v6546_v62  ;;  %4052 = vmatpush.bf16.msra.mxu1 %v5063_v40 }
 0x4b1   : > { %v1960_v7 = vmax.f32 %v1767_v1, 0.0  ;;  %v1680_v16 = vadd.f32 %v1679_v9, %v6548_v20 }
 0x4b2   : > { %v1973_v44 = vmax.f32 %v1591_v27, 0.0 }
 0x4b3   : > { %v2831_v22 = vadd.f32 %v2830_v60, %v1960_v7  ;;  %v1974_v31 = vmax.f32 %v1680_v16, 0.0  ;;  %v5070_v60 = vld [vmem:[#allocation9 + $0x2a0] sm:$0xff] }
 0x4b4   : > { %v2758_v49 = vadd.f32 %v2757_v61, %v1973_v44  ;;  %4066 = vmatpush.bf16.msra.mxu2 %v5070_v60  ;;  %4053 = vmatpush.bf16.msra.mxu1 %v5062_v21 }
 0x4b5   : > { %v2795_v23 = vadd.f32 %v2794_v24, %v1974_v31 }
 0x4b6   : > { %v3983_v8 = vpop.f32.mrf.mxu3  ;;  %v1768_v45 = vpop.f32.mrf.mxu2 }
 0x4b7   : > { %v1593_v41 = vpop.f32.mrf.mxu0  ;;  %v1769_v42 = vadd.f32 %v1768_v45, %v6560_v55  ;;  %v5054_v8 = vld [vmem:[#allocation9 + $0x220] sm:$0xff] }
 0x4b8   : > { %v1594_v19 = vadd.f32 %v1593_v41, %v6546_v62  ;;  %v1682_v37 = vpop.f32.mrf.mxu1  ;;  %4040 = vmatpush.bf16.msra.mxu0 %v5054_v8 }
 0x4b9   : > { %v1683_v46 = vadd.f32 %v1682_v37, %v6548_v20  ;;  %v1975_v57 = vmax.f32 %v1769_v42, 0.0 }
 0x4ba   : > { %v1988_v52 = vmax.f32 %v1594_v19, 0.0  ;;  %4468 = vmatmul.msk.bf16.gmra.mxu0 %vm411_vm1, %v5664_v33  ;;  %4484 = vmatmul.msk.bf16.gmra.mxu1 %vm411_vm1, %v5664_v33 }
 0x4bb   : > { %v1989_v3 = vmax.f32 %v1683_v46, 0.0  ;;  %4500 = vmatmul.msk.bf16.gmra.mxu2 %vm411_vm1, %v5664_v33  ;;  %v2832_v32 = vadd.f32 %v2831_v22, %v1975_v57 }
 0x4bc   : > { %v2759_v2 = vadd.f32 %v2758_v49, %v1988_v52 }
 0x4bd   : > { %v2796_v53 = vadd.f32 %v2795_v23, %v1989_v3 }
 0x4be   : > { %v1771_v28 = vpop.f32.mrf.mxu2 }
 0x4bf   : > { %v1772_v13 = vadd.f32 %v1771_v28, %v6560_v55  ;;  %v1595_v6 = vpop.f32.mrf.mxu0 }
 0x4c0   : > { %v1684_v25 = vpop.f32.mrf.mxu1  ;;  %v1596_v30 = vadd.f32 %v1595_v6, %v6546_v62 }
 0x4c1   : > { %v1990_v39 = vmax.f32 %v1772_v13, 0.0  ;;  %v1685_v36 = vadd.f32 %v1684_v25, %v6548_v20 }
 0x4c2   : > { %v2003_v58 = vmax.f32 %v1596_v30, 0.0 }
 0x4c3   : > { %v2833_v47 = vadd.f32 %v2832_v32, %v1990_v39  ;;  %v2004_v10 = vmax.f32 %v1685_v36, 0.0 }
 0x4c4   : > { %v2760_v54 = vadd.f32 %v2759_v2, %v2003_v58 }
 0x4c5   : > { %v2797_v56 = vadd.f32 %v2796_v53, %v2004_v10 }
 0x4c6   : > { %v1773_v51 = vpop.f32.mrf.mxu2 }
 0x4c7   : > { %v1598_v48 = vpop.f32.mrf.mxu0  ;;  %v1774_v29 = vadd.f32 %v1773_v51, %v6560_v55 }
 0x4c8   : > { %v1599_v33 = vadd.f32 %v1598_v48, %v6546_v62  ;;  %v1687_v14 = vpop.f32.mrf.mxu1 }
 0x4c9   : > { %v1688_v26 = vadd.f32 %v1687_v14, %v6548_v20  ;;  %v2005_v5 = vmax.f32 %v1774_v29, 0.0 }
 0x4ca   : > { %v2018_v43 = vmax.f32 %v1599_v33, 0.0  ;;  %4469 = vmatmul.msk.bf16.gmra.mxu0 %vm411_vm1, %v5676_v35  ;;  %4485 = vmatmul.msk.bf16.gmra.mxu1 %vm411_vm1, %v5676_v35 }
 0x4cb   : > { %v2019_v4 = vmax.f32 %v1688_v26, 0.0  ;;  %4501 = vmatmul.msk.bf16.gmra.mxu2 %vm411_vm1, %v5676_v35  ;;  %v2834_v50 = vadd.f32 %v2833_v47, %v2005_v5 }
 0x4cc   : > { %v2761_v63 = vadd.f32 %v2760_v54, %v2018_v43 }
 0x4cd   : > { %v2798_v38 = vadd.f32 %v2797_v56, %v2019_v4 }
 0x4ce   : > { %v3994_v11 = vpop.f32.mrf.mxu3  ;;  %v1776_v12 = vpop.f32.mrf.mxu2 }
 0x4cf   : > { %v3995_v59 = vadd.f32 %v3994_v11, %v3982_v34  ;;  %v1600_v61 = vpop.f32.mrf.mxu0  ;;  %v1777_v34 = vadd.f32 %v1776_v12, %v6560_v55 }
 0x4d0   : > { %v1601_v15 = vadd.f32 %v1600_v61, %v6546_v62  ;;  %v1689_v0 = vpop.f32.mrf.mxu1 }
 0x4d1   : > { %v1690_v1 = vadd.f32 %v1689_v0, %v6548_v20  ;;  %v2020_v9 = vmax.f32 %v1777_v34, 0.0 }
 0x4d2   : > { %v2033_v7 = vmax.f32 %v1601_v15, 0.0 }
 0x4d3   : > { %v2034_v27 = vmax.f32 %v1690_v1, 0.0  ;;  %v2835_v22 = vadd.f32 %v2834_v50, %v2020_v9  ;;  %v5053_v9 = vld [vmem:[#allocation9 + $0x218] sm:$0xff] }
 0x4d4   : > { %v2762_v35 = vadd.f32 %v2761_v63, %v2033_v7  ;;  %v5069_v63 = vld [vmem:[#allocation9 + $0x298] sm:$0xff]  ;;  %4041 = vmatpush.bf16.msra.mxu0 %v5053_v9 }
 0x4d5   : > { %v2799_v16 = vadd.f32 %v2798_v38, %v2034_v27  ;;  %4067 = vmatpush.bf16.msra.mxu2 %v5069_v63  ;;  %v5061_v7 = vld [vmem:[#allocation9 + $0x258] sm:$0xff] }
 0x4d6   : > { %v3996_v24 = vpop.f32.mrf.mxu3  ;;  %v1778_v40 = vpop.f32.mrf.mxu2  ;;  %4054 = vmatpush.bf16.msra.mxu1 %v5061_v7 }
 0x4d7   : > { %v1603_v44 = vpop.f32.mrf.mxu0  ;;  %v1779_v45 = vadd.f32 %v1778_v40, %v6560_v55 }
 0x4d8   : > { %v1604_v31 = vadd.f32 %v1603_v44, %v6546_v62  ;;  %v1692_v41 = vpop.f32.mrf.mxu1 }
 0x4d9   : > { %v1693_v19 = vadd.f32 %v1692_v41, %v6548_v20  ;;  %v2035_v37 = vmax.f32 %v1779_v45, 0.0 }
 0x4da   : > { %v2048_v42 = vmax.f32 %v1604_v31, 0.0  ;;  %4470 = vmatmul.msk.bf16.gmra.mxu0 %vm411_vm1, %v5808_v17  ;;  %4486 = vmatmul.msk.bf16.gmra.mxu1 %vm411_vm1, %v5808_v17 }
 0x4db   : > { %v2049_v46 = vmax.f32 %v1693_v19, 0.0  ;;  %v2836_v49 = vadd.f32 %v2835_v22, %v2035_v37  ;;  %4502 = vmatmul.msk.bf16.gmra.mxu2 %vm411_vm1, %v5808_v17 }
 0x4dc   : > { %v2763_v52 = vadd.f32 %v2762_v35, %v2048_v42 }
 0x4dd   : > { %v2800_v23 = vadd.f32 %v2799_v16, %v2049_v46 }
 0x4de   : > { %v1781_v3 = vpop.f32.mrf.mxu2 }
 0x4df   : > { %v1605_v2 = vpop.f32.mrf.mxu0  ;;  %v1782_v57 = vadd.f32 %v1781_v3, %v6560_v55 }
 0x4e0   : > { %v1606_v53 = vadd.f32 %v1605_v2, %v6546_v62  ;;  %v1694_v28 = vpop.f32.mrf.mxu1 }
 0x4e1   : > { %v1695_v13 = vadd.f32 %v1694_v28, %v6548_v20  ;;  %v2050_v6 = vmax.f32 %v1782_v57, 0.0 }
 0x4e2   : > { %v2063_v25 = vmax.f32 %v1606_v53, 0.0 }
 0x4e3   : > { %v2064_v32 = vmax.f32 %v1695_v13, 0.0  ;;  %v2837_v39 = vadd.f32 %v2836_v49, %v2050_v6 }
 0x4e4   : > { %v2764_v30 = vadd.f32 %v2763_v52, %v2063_v25 }
 0x4e5   : > { %v2801_v47 = vadd.f32 %v2800_v23, %v2064_v32 }
 0x4e6   : > { %v1783_v51 = vpop.f32.mrf.mxu2 }
 0x4e7   : > { %v1608_v17 = vpop.f32.mrf.mxu0  ;;  %v1784_v10 = vadd.f32 %v1783_v51, %v6560_v55 }
 0x4e8   : > { %v1609_v48 = vadd.f32 %v1608_v17, %v6546_v62  ;;  %v1697_v11 = vpop.f32.mrf.mxu1 }
 0x4e9   : > { %v1698_v33 = vadd.f32 %v1697_v11, %v6548_v20  ;;  %v2065_v14 = vmax.f32 %v1784_v10, 0.0 }
 0x4ea   : > { %v2078_v26 = vmax.f32 %v1609_v48, 0.0 }
 0x4eb   : > { %v2079_v54 = vmax.f32 %v1698_v33, 0.0  ;;  %v2838_v29 = vadd.f32 %v2837_v39, %v2065_v14 }
 0x4ec   : > { %v2765_v43 = vadd.f32 %v2764_v30, %v2078_v26 }
 0x4ed   : > { %v2802_v56 = vadd.f32 %v2801_v47, %v2079_v54 }
 0x4ee   : > { %v4007_v36 = vpop.f32.mrf.mxu3  ;;  %v1786_v38 = vpop.f32.mrf.mxu2 }
 0x4ef   : > { %v4008_v58 = vadd.f32 %v4007_v36, %v3995_v59  ;;  %v1610_v60 = vpop.f32.mrf.mxu0  ;;  %v1787_v59 = vadd.f32 %v1786_v38, %v6560_v55  ;;  %v5052_v38 = vld [vmem:[#allocation9 + $0x210] sm:$0xff] }
 0x4f0   : > { %v1611_v5 = vadd.f32 %v1610_v60, %v6546_v62  ;;  %v1699_v12 = vpop.f32.mrf.mxu1  ;;  %v5060_v60 = vld [vmem:[#allocation9 + $0x250] sm:$0xff]  ;;  %4042 = vmatpush.bf16.msra.mxu0 %v5052_v38 }
 0x4f1   : > { %v1700_v61 = vadd.f32 %v1699_v12, %v6548_v20  ;;  %v2080_v34 = vmax.f32 %v1787_v59, 0.0  ;;  %4055 = vmatpush.bf16.msra.mxu1 %v5060_v60 }
 0x4f2   : > { %v2093_v24 = vmax.f32 %v1611_v5, 0.0 }
 0x4f3   : > { %v2094_v15 = vmax.f32 %v1700_v61, 0.0  ;;  %v2839_v0 = vadd.f32 %v2838_v29, %v2080_v34 }
 0x4f4   : > { %v2766_v1 = vadd.f32 %v2765_v43, %v2093_v24 }
 0x4f5   : > { %v2803_v50 = vadd.f32 %v2802_v56, %v2094_v15 }
 0x4f6   : > { %v4009_v4 = vpop.f32.mrf.mxu3  ;;  %v1788_v27 = vpop.f32.mrf.mxu2 }
 0x4f7   : > { %v1613_v22 = vpop.f32.mrf.mxu0  ;;  %v1789_v35 = vadd.f32 %v1788_v27, %v6560_v55  ;;  %v5067_v27 = vld [vmem:[#allocation9 + $0x288] sm:$0xff] }
 0x4f8   : > { %v1614_v16 = vadd.f32 %v1613_v22, %v6546_v62  ;;  %v1702_v8 = vpop.f32.mrf.mxu1 }
 0x4f9   : > { %v1703_v21 = vadd.f32 %v1702_v8, %v6548_v20  ;;  %v2095_v40 = vmax.f32 %v1789_v35, 0.0  ;;  %v5051_v8 = vld [vmem:[#allocation9 + $0x208] sm:$0xff] }
 0x4fa   : > { %v2108_v44 = vmax.f32 %v1614_v16, 0.0  ;;  %4043 = vmatpush.bf16.msra.mxu0 %v5051_v8 }
 0x4fb   : > { %v2109_v45 = vmax.f32 %v1703_v21, 0.0  ;;  %v2840_v31 = vadd.f32 %v2839_v0, %v2095_v40  ;;  %v5059_v21 = vld [vmem:[#allocation9 + $0x248] sm:$0xff] }
 0x4fc   : > { %v2767_v41 = vadd.f32 %v2766_v1, %v2108_v44  ;;  %4056 = vmatpush.bf16.msra.mxu1 %v5059_v21 }
 0x4fd   : > { %v2804_v19 = vadd.f32 %v2803_v50, %v2109_v45 }
 0x4fe   : > { %v1791_v37 = vpop.f32.mrf.mxu2 }
 0x4ff   : > { %v1615_v42 = vpop.f32.mrf.mxu0  ;;  %v1792_v46 = vadd.f32 %v1791_v37, %v6560_v55 }
 0x500   : > { %v1616_v49 = vadd.f32 %v1615_v42, %v6546_v62  ;;  %v1704_v52 = vpop.f32.mrf.mxu1 }
 0x501   : > { %v1705_v23 = vadd.f32 %v1704_v52, %v6548_v20  ;;  %v2110_v3 = vmax.f32 %v1792_v46, 0.0 }
 0x502   : > { %v2123_v2 = vmax.f32 %v1616_v49, 0.0 }
 0x503   : > { %v2124_v53 = vmax.f32 %v1705_v23, 0.0  ;;  %v2841_v13 = vadd.f32 %v2840_v31, %v2110_v3 }
 0x504   : > { %v2768_v6 = vadd.f32 %v2767_v41, %v2123_v2 }
 0x505   : > { %v2805_v25 = vadd.f32 %v2804_v19, %v2124_v53 }
 0x506   : > { %v1793_v32 = vpop.f32.mrf.mxu2 }
 0x507   : > { %v1618_v39 = vpop.f32.mrf.mxu0  ;;  %v1794_v30 = vadd.f32 %v1793_v32, %v6560_v55 }
 0x508   : > { %v1619_v47 = vadd.f32 %v1618_v39, %v6546_v62  ;;  %v1707_v36 = vpop.f32.mrf.mxu1 }
 0x509   : > { %v1708_v51 = vadd.f32 %v1707_v36, %v6548_v20  ;;  %v2125_v17 = vmax.f32 %v1794_v30, 0.0 }
 0x50a   : > { %v2138_v10 = vmax.f32 %v1619_v47, 0.0 }
 0x50b   : > { %v2139_v11 = vmax.f32 %v1708_v51, 0.0  ;;  %v2842_v33 = vadd.f32 %v2841_v13, %v2125_v17 }
 0x50c   : > { %v2769_v14 = vadd.f32 %v2768_v6, %v2138_v10  ;;  %v5081_v10 = vld [vmem:[#allocation9 + $0x2f8] sm:$0xff] }
 0x50d   : > { %v2806_v26 = vadd.f32 %v2805_v25, %v2139_v11  ;;  %4076 = vmatpush.bf16.msrb.mxu3 %v5081_v10 }
 0x50e   : > { %v4020_v57 = vpop.f32.mrf.mxu3  ;;  %v1796_v54 = vpop.f32.mrf.mxu2 }
 0x50f   : > { %v4021_v28 = vadd.f32 %v4020_v57, %v4008_v58  ;;  %v5068_v58 = vld [vmem:[#allocation9 + $0x290] sm:$0xff]  ;;  %v1620_v29 = vpop.f32.mrf.mxu0  ;;  %v1797_v43 = vadd.f32 %v1796_v54, %v6560_v55 }
 0x510   : > { %4068 = vmatpush.bf16.msra.mxu2 %v5068_v58  ;;  %v1709_v56 = vpop.f32.mrf.mxu1  ;;  %v1621_v37 = vadd.f32 %v1620_v29, %v6546_v62 }
 0x511   : > { %v2140_v4 = vmax.f32 %v1797_v43, 0.0  ;;  %v1710_v46 = vadd.f32 %v1709_v56, %v6548_v20 }
 0x512   : > { %v2153_v57 = vmax.f32 %v1621_v37, 0.0 }
 0x513   : > { %v2843_v63 = vadd.f32 %v2842_v33, %v2140_v4 }
 0x514   : > { %4069 = vmatpush.bf16.msra.mxu2 %v5067_v27  ;;  %v2770_v47 = vadd.f32 %v2769_v14, %v2153_v57 }
 0x516   : > { %v4022_v48 = vpop.f32.mrf.mxu3  ;;  %v1798_v59 = vpop.f32.mrf.mxu2 }
 0x517   : > { %v1623_v5 = vpop.f32.mrf.mxu0  ;;  %v1799_v23 = vadd.f32 %v1798_v59, %v6560_v55 }
 0x518   : > { %v1712_v12 = vpop.f32.mrf.mxu1  ;;  %v1624_v3 = vadd.f32 %v1623_v5, %v6546_v62 }
 0x519   : > { %v1713_v2 = vadd.f32 %v1712_v12, %v6548_v20  ;;  %v2155_v25 = vmax.f32 %v1799_v23, 0.0 }
 0x51a   : > { %v2168_v32 = vmax.f32 %v1624_v3, 0.0 }
 0x51b   : > { %v2169_v39 = vmax.f32 %v1713_v2, 0.0  ;;  %v2844_v43 = vadd.f32 %v2843_v63, %v2155_v25 }
 0x51c   : > { %v2771_v14 = vadd.f32 %v2770_v47, %v2168_v32 }
 0x51e   : > { %v1801_v61 = vpop.f32.mrf.mxu2 }
 0x51f   : > { %v1625_v15 = vpop.f32.mrf.mxu0  ;;  %v1802_v53 = vadd.f32 %v1801_v61, %v6560_v55  ;;  %v5080_v61 = vld [vmem:[#allocation9 + $0x2f0] sm:$0xff] }
 0x520   : > { %v1714_v0 = vpop.f32.mrf.mxu1  ;;  %v1626_v13 = vadd.f32 %v1625_v15, %v6546_v62  ;;  %4077 = vmatpush.bf16.msrb.mxu3 %v5080_v61  ;;  %v5089_v61 = vld [vmem:[#allocation9 + $0x338] sm:$0xff] }
 0x521   : > { %v1715_v6 = vadd.f32 %v1714_v0, %v6548_v20  ;;  %v2170_v36 = vmax.f32 %v1802_v53, 0.0 }
 0x522   : > { %v2183_v11 = vmax.f32 %v1626_v13, 0.0 }
 0x523   : > { %v2184_v33 = vmax.f32 %v1715_v6, 0.0  ;;  %v2845_v5 = vadd.f32 %v2844_v43, %v2170_v36 }
 0x526   : > { %v1803_v1 = vpop.f32.mrf.mxu2 }
 0x527   : > { %v1628_v9 = vpop.f32.mrf.mxu0  ;;  %v1804_v56 = vadd.f32 %v1803_v1, %v6560_v55 }
 0x528   : > { %v1717_v7 = vpop.f32.mrf.mxu1  ;;  %v1629_v30 = vadd.f32 %v1628_v9, %v6546_v62 }
 0x529   : > { %v1718_v51 = vadd.f32 %v1717_v7, %v6548_v20  ;;  %v311_v7 = vlaneseq }
 0x52a   : > { %v2198_v60 = vmax.f32 %v1629_v30, 0.0 }
 0x52b   : > { %v2199_v12 = vmax.f32 %v1718_v51, 0.0  ;;  %vm6712_vm8 = vcmp.lt.s32.totalorder %v311_v7, 896  ;;  %v5078_v51 = vld [vmem:[#allocation9 + $0x2e0] sm:$0xff] }
 0x52e   : > { %v4033_v34 = vpop.f32.mrf.mxu3  ;;  %v6681_v22 = vpop.f32.mrf.mxu2 }
 0x52f   : > { %v6679_v24 = vadd.f32 %v4033_v34, %v4021_v28  ;;  %v1630_v35 = vpop.f32.mrf.mxu0  ;;  %v2154_v28 = vmax.f32 %v1710_v46, 0.0  ;;  %v2772_v34 = vadd.f32 %v2771_v14, %v2183_v11  ;;  %v5079_v46 = vld [vmem:[#allocation9 + $0x2e8] sm:$0xff]  ;;  %v5050_v14 = vld [vmem:[#allocation9 + $0x200] sm:$0xff] }
 0x530   : > { %v1719_v16 = vpop.f32.mrf.mxu1  ;;  %v1631_v58 = vadd.f32 %v1630_v35, %v6546_v62  ;;  %v1807_v35 = vadd.f32 %v6681_v22, %v6560_v55  ;;  %4078 = vmatpush.bf16.msrb.mxu3 %v5079_v46  ;;  %4044 = vmatpush.bf16.msra.mxu0 %v5050_v14 }
 0x531   : > { %v2807_v48 = vadd.f32 %v2806_v26, %v2154_v28  ;;  %v1720_v4 = vadd.f32 %v1719_v16, %v6548_v20  ;;  %v2773_v27 = vadd.f32 %v2772_v34, %v2198_v60 }
 0x532   : > { %v2213_v0 = vmax.f32 %v1631_v58, 0.0  ;;  %v2200_v6 = vmax.f32 %v1807_v35, 0.0  ;;  %v5076_v35 = vld [vmem:[#allocation9 + $0x2d0] sm:$0xff] }
 0x533   : > { %v2808_v38 = vadd.f32 %v2807_v48, %v2169_v39  ;;  %v2214_v1 = vmax.f32 %v1720_v4, 0.0  ;;  %v5066_v4 = vld [vmem:[#allocation9 + $0x280] sm:$0xff] }
 0x534   : > { %4079 = vmatpush.bf16.msrb.mxu3 %v5078_v51  ;;  %4070 = vmatpush.bf16.msra.mxu2 %v5066_v4  ;;  %v5093_v4 = vld [vmem:[#allocation9 + $0x358] sm:$0xff] }
 0x535   : > { %v2809_v15 = vadd.f32 %v2808_v38, %v2184_v33  ;;  %v5058_v38 = vld [vmem:[#allocation9 + $0x240] sm:$0xff]  ;;  %4089 = vmatpush.bf16.msrb.mxu0 %v5089_v61  ;;  %v5084_v61 = vld [vmem:[#allocation9 + $0x310] sm:$0xff] }
 0x536   : > { %v4035_v50 = vpop.f32.mrf.mxu3  ;;  %v6683_v40 = vpop.f32.mrf.mxu2  ;;  %4057 = vmatpush.bf16.msra.mxu1 %v5058_v38 }
 0x537   : > { %v1633_v44 = vpop.f32.mrf.mxu0  ;;  %v2185_v50 = vmax.f32 %v1804_v56, 0.0  ;;  %v2810_v21 = vadd.f32 %v2809_v15, %v2199_v12  ;;  %v1809_v23 = vadd.f32 %v6683_v40, %v6560_v55 }
 0x538   : > { %v1722_v45 = vpop.f32.mrf.mxu1  ;;  %v1634_v59 = vadd.f32 %v1633_v44, %v6546_v62 }
 0x539   : > { %v1723_v26 = vadd.f32 %v1722_v45, %v6548_v20  ;;  %v2811_v53 = vadd.f32 %v2810_v21, %v2214_v1  ;;  %v2215_v10 = vmax.f32 %v1809_v23, 0.0  ;;  %v5097_v1 = vld [vmem:[#allocation9 + $0x378] sm:$0xff] }
 0x53a   : > { %v2228_v16 = vmax.f32 %v1634_v59, 0.0  ;;  %4102 = vmatpush.bf16.msrb.mxu1 %v5097_v1 }
 0x53b   : > { %v2229_v44 = vmax.f32 %v1723_v26, 0.0  ;;  %v5077_v26 = vld [vmem:[#allocation9 + $0x2d8] sm:$0xff] }
 0x53c   : > { %4080 = vmatpush.bf16.msrb.mxu3 %v5077_v26 }
 0x53d   : > { %v2812_v39 = vadd.f32 %v2811_v53, %v2229_v44  ;;  %v5088_v44 = vld [vmem:[#allocation9 + $0x330] sm:$0xff]  ;;  %v5087_v53 = vld [vmem:[#allocation9 + $0x328] sm:$0xff] }
 0x53e   : > { %v6685_v31 = vpop.f32.mrf.mxu2  ;;  %4090 = vmatpush.bf16.msrb.mxu0 %v5088_v44  ;;  %v5098_v44 = vld [vmem:[#allocation9 + $0x380] sm:$0xff] }
 0x53f   : > { %v1635_v41 = vpop.f32.mrf.mxu0  ;;  %v1812_v40 = vadd.f32 %v6685_v31, %v6560_v55 }
 0x540   : > { %v1724_v19 = vpop.f32.mrf.mxu1  ;;  %v1636_v63 = vadd.f32 %v1635_v41, %v6546_v62  ;;  %4081 = vmatpush.bf16.msrb.mxu3 %v5076_v35 }
 0x541   : > { %v1725_v9 = vadd.f32 %v1724_v19, %v6548_v20  ;;  %v2774_v19 = vadd.f32 %v2773_v27, %v2213_v0  ;;  %v2230_v43 = vmax.f32 %v1812_v40, 0.0  ;;  %v5103_v40 = vld [vmem:[#allocation9 + $0x3a8] sm:$0xff] }
 0x542   : > { %v2243_v3 = vmax.f32 %v1636_v63, 0.0  ;;  %4091 = vmatpush.bf16.msrb.mxu0 %v5087_v53 }
 0x543   : > { %v2244_v28 = vmax.f32 %v1725_v9, 0.0  ;;  %v2775_v25 = vadd.f32 %v2774_v19, %v2228_v16 }
 0x545   : > { %v2776_v48 = vadd.f32 %v2775_v25, %v2243_v3  ;;  %v2813_v58 = vadd.f32 %v2812_v39, %v2244_v28  ;;  %v5104_v3 = vld [vmem:[#allocation9 + $0x3b0] sm:$0xff]  ;;  %v5095_v28 = vld [vmem:[#allocation9 + $0x368] sm:$0xff] }
 0x546   : > { %v6688_v42 = vpop.f32.mrf.mxu2 }
 0x547   : > { %v1638_v49 = vpop.f32.mrf.mxu0  ;;  %v1814_v11 = vadd.f32 %v6688_v42, %v6560_v55 }
 0x548   : > { %v1727_v52 = vpop.f32.mrf.mxu1  ;;  %v1639_v8 = vadd.f32 %v1638_v49, %v6546_v62  ;;  %v5423_v49 = vmov 0.0  }
 0x549   : > { %v1728_v45 = vadd.f32 %v1727_v52, %v6548_v20  ;;  %315 = vst.msk [vmem:[#allocation2 + $0x8] sm:$0x7f] %vm6712_vm8, %v5423_v49  ;;  %v2846_v52 = vadd.f32 %v2845_v5, %v2185_v50  ;;  %v2245_v34 = vmax.f32 %v1814_v11, 0.0  ;;  %v5094_v11 = vld [vmem:[#allocation9 + $0x360] sm:$0xff] }
 0x54a   : > { %v2258_v32 = vmax.f32 %v1639_v8, 0.0 }
 0x54b   : > { %v2259_v30 = vmax.f32 %v1728_v45, 0.0  ;;  %v5096_v45 = vld [vmem:[#allocation9 + $0x370] sm:$0xff] }
 0x54c   : > { %v2777_v31 = vadd.f32 %v2776_v48, %v2258_v32  ;;  %4103 = vmatpush.bf16.msrb.mxu1 %v5096_v45  ;;  %v5086_v48 = vld [vmem:[#allocation9 + $0x320] sm:$0xff] }
 0x54d   : > { %v2814_v60 = vadd.f32 %v2813_v58, %v2259_v30  ;;  %4092 = vmatpush.bf16.msrb.mxu0 %v5086_v48 }
 0x54e   : > { %v6699_v17 = vpop.f32.mrf.mxu2 }
 0x54f   : > { %v1640_v54 = vpop.f32.mrf.mxu0  ;;  %v1817_v56 = vadd.f32 %v6699_v17, %v6560_v55  ;;  %v5105_v17 = vld [vmem:[#allocation9 + $0x3b8] sm:$0xff] }
 0x550   : > { %v1729_v29 = vpop.f32.mrf.mxu1  ;;  %v1641_v22 = vadd.f32 %v1640_v54, %v6546_v62  ;;  %4115 = vmatpush.bf16.msrb.mxu2 %v5105_v17  ;;  %4104 = vmatpush.bf16.msrb.mxu1 %v5095_v28  ;;  %v5083_v17 = vld [vmem:[#allocation9 + $0x308] sm:$0xff] }
 0x551   : > { %v1730_v13 = vadd.f32 %v1729_v29, %v6548_v20  ;;  %v2847_v29 = vadd.f32 %v2846_v52, %v2200_v6  ;;  %v2260_v8 = vmax.f32 %v1817_v56, 0.0 }
 0x552   : > { %v2273_v33 = vmax.f32 %v1641_v22, 0.0 }
 0x553   : > { %v2274_v54 = vmax.f32 %v1730_v13, 0.0  ;;  %v2848_v42 = vadd.f32 %v2847_v29, %v2215_v10 }
 0x554   : > { %v2778_v15 = vadd.f32 %v2777_v31, %v2273_v33  ;;  %4116 = vmatpush.bf16.msrb.mxu2 %v5104_v3  ;;  %4105 = vmatpush.bf16.msrb.mxu1 %v5094_v11 }
 0x555   : > { %v2815_v9 = vadd.f32 %v2814_v60, %v2274_v54  ;;  %v2849_v16 = vadd.f32 %v2848_v42, %v2230_v43  ;;  %v5102_v54 = vld [vmem:[#allocation9 + $0x3a0] sm:$0xff]  ;;  %v5101_v60 = vld [vmem:[#allocation9 + $0x398] sm:$0xff]  ;;  %v5092_v42 = vld [vmem:[#allocation9 + $0x350] sm:$0xff] }
 0x556   : > { %v1818_v37 = vpop.f32.mrf.mxu2 }
 0x557   : > { %v1643_v2 = vpop.f32.mrf.mxu0  ;;  %v1819_v0 = vadd.f32 %v1818_v37, %v6560_v55 }
 0x558   : > { %v1732_v57 = vpop.f32.mrf.mxu1  ;;  %v1644_v47 = vadd.f32 %v1643_v2, %v6546_v62  ;;  %4117 = vmatpush.bf16.msrb.mxu2 %v5103_v40  ;;  %4106 = vmatpush.bf16.msrb.mxu1 %v5093_v4 }
 0x559   : > { %v1733_v36 = vadd.f32 %v1732_v57, %v6548_v20  ;;  %v2275_v22 = vmax.f32 %v1819_v0, 0.0  ;;  %v5075_v57 = vld [vmem:[#allocation9 + $0x2c8] sm:$0xff]  ;;  %v5100_v0 = vld [vmem:[#allocation9 + $0x390] sm:$0xff] }
 0x55a   : > { %v2288_v59 = vmax.f32 %v1644_v47, 0.0  ;;  %4082 = vmatpush.bf16.msrb.mxu3 %v5075_v57 }
 0x55b   : > { %v2289_v5 = vmax.f32 %v1733_v36, 0.0  ;;  %v5074_v36 = vld [vmem:[#allocation9 + $0x2c0] sm:$0xff] }
 0x55c   : > { %v2779_v37 = vadd.f32 %v2778_v15, %v2288_v59  ;;  %4118 = vmatpush.bf16.msrb.mxu2 %v5102_v54  ;;  %4107 = vmatpush.bf16.msrb.mxu1 %v5092_v42 }
 0x55d   : > { %v2816_v46 = vadd.f32 %v2815_v9, %v2289_v5  ;;  %v5091_v9 = vld [vmem:[#allocation9 + $0x348] sm:$0xff] }
 0x55e   : > { %v1821_v12 = vpop.f32.mrf.mxu2  ;;  %4083 = vmatpush.bf16.msrb.mxu3 %v5074_v36 }
 0x55f   : > { %v1645_v63 = vpop.f32.mrf.mxu0  ;;  %v1822_v21 = vadd.f32 %v1821_v12, %v6560_v55 }
 0x560   : > { %v1734_v50 = vpop.f32.mrf.mxu1  ;;  %v1646_v7 = vadd.f32 %v1645_v63, %v6546_v62  ;;  %v2850_v62 = vadd.f32 %v2849_v16, %v2245_v34  ;;  %4119 = vmatpush.bf16.msrb.mxu2 %v5101_v60  ;;  %4108 = vmatpush.bf16.msrb.mxu1 %v5091_v9  ;;  %v5082_v16 = vld [vmem:[#allocation9 + $0x300] sm:$0xff] }
 0x561   : > { %v1735_v27 = vadd.f32 %v1734_v50, %v6548_v20  ;;  %v2290_v52 = vmax.f32 %v1822_v21, 0.0  ;;  %v2862_v21 = vld [vmem:[#allocation2 + $0x8] sm:$0xff] }
 0x562   : > { %v2303_v19 = vmax.f32 %v1646_v7, 0.0  ;;  %v2851_v49 = vadd.f32 %v2850_v62, %v2260_v8  ;;  %v5099_v7 = vld [vmem:[#allocation9 + $0x388] sm:$0xff]  ;;  %v5090_v8 = vld [vmem:[#allocation9 + $0x340] sm:$0xff] }
 0x563   : > { %v2304_v23 = vmax.f32 %v1735_v27, 0.0 }
 0x564   : > { %v2780_v20 = vadd.f32 %v2779_v37, %v2303_v19  ;;  %v2852_v32 = vadd.f32 %v2851_v49, %v2275_v22  ;;  %4120 = vmatpush.bf16.msrb.mxu2 %v5100_v0  ;;  %4109 = vmatpush.bf16.msrb.mxu1 %v5090_v8 }
 0x565   : > { %v2817_v2 = vadd.f32 %v2816_v46, %v2304_v23 }
 0x566   : > { %v2781_v13 = vrot.slane %v2780_v20, 4  ;;  %v1823_v25 = vpop.f32.mrf.mxu2  ;;  %v2853_v51 = vadd.f32 %v2852_v32, %v2290_v52 }
 0x567   : > { %v2818_v6 = vrot.slane %v2817_v2, 4  ;;  %v1824_v39 = vadd.f32 %v1823_v25, %v6560_v55  ;;  %v5085_v55 = vld [vmem:[#allocation9 + $0x318] sm:$0xff] }
 0x568   : > { %v2782_v30 = vadd.f32 %v2781_v13, %v2780_v20  ;;  %4093 = vmatpush.bf16.msrb.mxu0 %v5085_v55  ;;  %4121 = vmatpush.bf16.msrb.mxu2 %v5099_v7 }
 0x569   : > { %v2819_v47 = vadd.f32 %v2818_v6, %v2817_v2  ;;  %v2305_v10 = vmax.f32 %v1824_v39, 0.0 }
 0x56a   : > { %v2783_v33 = vrot.slane %v2782_v30, 2 }
 0x56b   : > { %v2820_v58 = vrot.slane %v2819_v47, 2  ;;  %v2854_v29 = vadd.f32 %v2853_v51, %v2305_v10 }
 0x56c   : > { %v2784_v43 = vadd.f32 %v2783_v33, %v2782_v30  ;;  %4094 = vmatpush.bf16.msrb.mxu0 %v5084_v61  ;;  %4122 = vmatpush.bf16.msrb.mxu2 %v5098_v44 }
 0x56d   : > { %v2821_v31 = vadd.f32 %v2820_v58, %v2819_v47  ;;  %v2855_v56 = vrot.slane %v2854_v29, 4 }
 0x56e   : > { %v2785_v14 = vrot.slane %v2784_v43, 1 }
 0x56f   : > { %v2822_v38 = vrot.slane %v2821_v31, 1  ;;  %v2856_v59 = vadd.f32 %v2855_v56, %v2854_v29 }
 0x570   : > { %v2786_v5 = vadd.f32 %v2785_v14, %v2784_v43  ;;  %4095 = vmatpush.bf16.msrb.mxu0 %v5083_v17 }
 0x571   : > { %v2823_v12 = vadd.f32 %v2822_v38, %v2821_v31  ;;  %v2857_v26 = vrot.slane %v2856_v59, 2 }
 0x572   : > { %v2888_v34 = vrot.slane %v2786_v5, 4 }
 0x573   : > { %v2889_v15 = vrot.slane %v2823_v12, 3  ;;  %v2858_v63 = vadd.f32 %v2857_v26, %v2856_v59 }
 0x574   : > { %4096 = vmatpush.bf16.msrb.mxu0 %v5082_v16 }
 0x575   : > { %v2907_v50 = vsel %vm2896_vm4, %v2888_v34, %v2889_v15  ;;  %v2859_v1 = vrot.slane %v2858_v63, 1 }
 0x577   : > { %v2860_v27 = vadd.f32 %v2859_v1, %v2858_v63 }
 0x579   : > { %v2890_v35 = vrot.slane %v2860_v27, 2 }
 0x57b   : > { %v2908_v45 = vsel %vm2900_vm6, %v2907_v50, %v2890_v35 }
 0x57c   : > { %v2909_v37 = vsel %vm2902_vm7, %v6579_v18, %v2908_v45 }
 0x57d   : > { %v2913_v46 = vadd.f32 %v2909_v37, %v2862_v21 }
 0x57f   : > { %2919 = vst.msk [vmem:[#allocation2 + $0x8] sm:$0x7f] %vm6712_vm8, %v2913_v46 }
 0x586   : > { %v2924_v19 = vld [vmem:[#allocation2 + $0x8] sm:$0xff] }
 0x587   : > { %v2935_v23 = vperm.slane %v2924_v19, 0  ;;  %v2936_v3 = vperm.slane %v2924_v19, 1  ;;  %v2937_v62 = vperm.slane %v2924_v19, 2  ;;  %v2938_v22 = vperm.slane %v2924_v19, 3 }
 0x588   : > { %v2939_v18 = vperm.slane %v2924_v19, 4  ;;  %v2940_v52 = vperm.slane %v2924_v19, 5  ;;  %v2941_v53 = vperm.slane %v2924_v19, 6 }
 0x589   : > { %v2965_v20 = vpack.c.bf16 %v2935_v23, %v2935_v23  ;;  %v2966_v2 = vpack.c.bf16 %v2936_v3, %v2936_v3  ;;  %v2967_v57 = vpack.c.bf16 %v2937_v62, %v2937_v62  ;;  %v2968_v49 = vpack.c.bf16 %v2938_v22, %v2938_v22 }
 0x58a   : > { %v2969_v28 = vpack.c.bf16 %v2939_v18, %v2939_v18  ;;  %v2970_v13 = vpack.c.bf16 %v2940_v52, %v2940_v52  ;;  %v2971_v41 = vpack.c.bf16 %v2941_v53, %v2941_v53 }
 0x58b   : > { %4045 = vmatmul.bf16.vlgmr.msra.gmra.mxu0 %v2965_v20  ;;  %4058 = vmatmul.bf16.vlgmr.msra.gmra.mxu1 %v2966_v2 }
 0x58c   : > { %4071 = vmatmul.bf16.vlgmr.msra.gmra.mxu2 %v2967_v57  ;;  %4084 = vmatmul.bf16.vlgmr.msrb.gmra.mxu3 %v2968_v49 }
 0x59b   : > { %4097 = vmatmul.bf16.vlgmr.msrb.gmra.mxu0 %v2969_v28  ;;  %4110 = vmatmul.bf16.vlgmr.msrb.gmra.mxu1 %v2970_v13 }
 0x59c   : > { %4123 = vmatmul.bf16.vlgmr.msrb.gmra.mxu2 %v2971_v41 }
 0x608   : > { %v4046_v6 = vpop.f32.mrf.mxu0  ;;  %v4059_v25 = vpop.f32.mrf.mxu1 }
 0x609   : > { %v4047_v40 = vadd.f32 %v4046_v6, %v6679_v24 }
 0x60b   : > { %v4060_v36 = vadd.f32 %v4059_v25, %v4047_v40 }
 0x60f   : > { %v4072_v32 = vpop.f32.mrf.mxu2  ;;  %v4085_v39 = vpop.f32.mrf.mxu3 }
 0x610   : > { %v4048_v30 = vpop.f32.mrf.mxu0  ;;  %v4061_v47 = vpop.f32.mrf.mxu1  ;;  %v4073_v51 = vadd.f32 %v4072_v32, %v4060_v36 }
 0x612   : > { %v4086_v11 = vadd.f32 %v4085_v39, %v4073_v51 }
 0x617   : > { %v4074_v10 = vpop.f32.mrf.mxu2  ;;  %v4087_v48 = vpop.f32.mrf.mxu3 }
 0x618   : > { %v4098_v33 = vpop.f32.mrf.mxu0  ;;  %v4111_v58 = vpop.f32.mrf.mxu1 }
 0x619   : > { %v4099_v54 = vadd.f32 %v4098_v33, %v4086_v11 }
 0x61b   : > { %v4112_v24 = vadd.f32 %v4111_v58, %v4099_v54 }
 0x61f   : > { %v4124_v29 = vpop.f32.mrf.mxu2 }
 0x620   : > { %v4125_v43 = vadd.f32 %v4124_v29, %v4112_v24  ;;  %v4100_v31 = vpop.f32.mrf.mxu0  ;;  %v4113_v56 = vpop.f32.mrf.mxu1 }
 0x622   : > { %4128 = vst [vmem:[%s303_s13] sm:$0x1] %v4125_v43 }
 0x623   : > { %5353 = shalt.err (!%p5350_p0)
}
 0x624   : > { %5120 = dma.vmem_to_hbm [thread:$0]  (%p5543_p3), %s4141_s24, 16, %s4143_s25, %s4130_s30  }
 0x627   : > { %v4126_v55 = vpop.f32.mrf.mxu2 }
 0x628 PF: > { %s4154_s12 = sand.u32 1, %s5396_s18   ;;  %p5137_p5 = pnand %p4254_p9, %p5503_p6 }
 0x629   : > { %s4155_s1 = scalar_lea.sflag [#allocation5], %s4154_s12 }
 0x62a   : > { %p5138_p7 = pneg %p5137_p5 }
 0x62c   : > { %5391 = dma.done.wait (%p5138_p7), %s4155_s1, 16  }
 0x62d   : > { %5393 = vsyncadd (%p5138_p7), %s4155_s1, 4294967280  ;;  %s23_s23 = sadd.s32 1, %s5416_s23   ;;  %s6807_s18 = smov %s5400_s19 }
 0x62e   : > { %p20_p10 = scmp.ge.s32.totalorder %s23_s23, 4   ;;  %s6808_s19 = smov %s5404_s20 }
 0x62f   : > { %s6809_s20 = smov %s5559_s27  ;;  %s6810_s21 = smov %s5412_s22 }
 0x630   : > { %s6811_s22 = smov %s6813_s15  ;;  %22 = sbr.rel (!%p20_p10) target bundleno = 10 (0xa), region = 106 }
 0x635   :  { %4160 = vsyncpa [#allocation4], 1 }
 0x636   :  { %4162 = vsyncpa [#allocation4 + $0x1], 1 }
 0x637   :  { %4163 = vsyncpa [#allocation7], 1 }
 0x638   :  { %4164 = vsyncpa [#allocation10], 1 }
 0x639   :  { %4165 = vsyncpa [#allocation5], 1 }
 0x63a   :  { %4167 = vsyncpa [#allocation5 + $0x1], 1 }

</bundles_post_ra>
